<compile_context>
chip_gen: v7x
topology: tpu7x:2x2x1
jax: 0.10.0
libtpu: 0.0.40
codegen_flags: <defaults>
</compile_context>

<pallas_src>
import functools

import jax
import jax.numpy as jnp
from jax import lax
from jax.experimental import pallas as pl
from jax.experimental.pallas import tpu as pltpu


def _silu(v):
    return v * jax.nn.sigmoid(v)


# ---------------------------------------------------------------------------
# Fused GroupNorm(affine) + SiLU + 3x3 conv (+bias/emb, +residual, +GN stats)
# ---------------------------------------------------------------------------

def _fused_body(x_ref, top_ref, bot_ref, consts_ref, w_ref, res_ref,
                o_ref, stats_ref, xp_buf):
    # x_ref     : (1, TH, W, Cin)   f32  current row strip
    # top_ref   : (1, 1,  W, Cin)   f32  row above the strip (clamped at border)
    # bot_ref   : (1, 1,  W, Cin)   f32  row below the strip (clamped at border)
    # consts_ref: (1, 3, C)         f32  [GN scale, GN shift, conv bias (+emb)]
    # w_ref     : (3, 3*Cin, Cout)  bf16 conv taps, kw folded into K
    # res_ref   : (1, TH, W, Cout)  f32  optional residual (skip connection)
    # o_ref     : (1, TH, W, Cout)  f32
    # stats_ref : (1, 1, 2, Cout)   f32  optional per-channel [sum, sum-of-sq]
    # xp_buf    : (TH+2, W, 3*Cin)  bf16 activated strip, 3 kw-shifted copies
    _, TH, W, Cin = x_ref.shape
    Cout = o_ref.shape[3]
    K = 3 * Cin
    M = TH * W
    t = pl.program_id(1)
    nt = pl.num_programs(1)

    sc = consts_ref[0, 0:1, :]      # (1, Cin)  GroupNorm scale (gamma * rstd)
    sh = consts_ref[0, 1:2, :]      # (1, Cin)  GroupNorm shift (beta - mean*scale)
    add = consts_ref[0, 2:3, :]     # (1, Cout) conv bias (+ emb_out for conv1)

    def norm_act(v):                # GroupNorm affine + SiLU, single bf16 cast
        vn = v.astype(jnp.float32) * sc + sh
        return (vn * jax.nn.sigmoid(vn)).astype(jnp.bfloat16)

    def write_rows(r0, nrows, vb):
        # Writes rows [r0, r0+nrows) of all three kw-shifted copies.  Every
        # element of those rows is overwritten, so no buffer-wide zero fill.
        z = jnp.zeros((nrows, 1, Cin), jnp.bfloat16)
        xp_buf[r0:r0 + nrows, :, Cin:2 * Cin] = vb                       # kw=1
        xp_buf[r0:r0 + nrows, 1:W, 0:Cin] = vb[:, 0:W - 1, :]            # kw=0
        xp_buf[r0:r0 + nrows, 0:1, 0:Cin] = z
        xp_buf[r0:r0 + nrows, 0:W - 1, 2 * Cin:K] = vb[:, 1:W, :]        # kw=2
        xp_buf[r0:r0 + nrows, W - 1:W, 2 * Cin:K] = z

    write_rows(1, TH, norm_act(x_ref[0]))
    top = norm_act(top_ref[0])
    bot = norm_act(bot_ref[0])
    # Zero the halo rows at the image border (== conv zero padding); jnp.where
    # (not mul-by-0) so non-finite upstream values cannot leak NaNs into padding.
    write_rows(0, 1, jnp.where(t > 0, top, jnp.zeros_like(top)))
    write_rows(TH + 1, 1, jnp.where(t < nt - 1, bot, jnp.zeros_like(bot)))

    # 3x3 conv == 3 MXU matmuls with K = 3*Cin (kw folded into K), bf16
    # operands, f32 accumulation; accumulator initialized by the first dot.
    acc = jnp.dot(xp_buf[0:TH].reshape(M, K), w_ref[0],
                  preferred_element_type=jnp.float32)
    acc = acc + jnp.dot(xp_buf[1:TH + 1].reshape(M, K), w_ref[1],
                        preferred_element_type=jnp.float32)
    acc = acc + jnp.dot(xp_buf[2:TH + 2].reshape(M, K), w_ref[2],
                        preferred_element_type=jnp.float32)

    out2d = acc + add
    if res_ref is not None:
        out2d = out2d + res_ref[0].astype(jnp.float32).reshape(M, Cout)
    o_ref[0] = out2d.reshape(TH, W, Cout).astype(o_ref.dtype)

    if stats_ref is not None:
        # Per-channel partial sums for the *next* GroupNorm so the wrapper never
        # re-reads h from HBM just to get its statistics.
        stats_ref[0, 0, 0:1, :] = jnp.sum(out2d, axis=0, keepdims=True)
        stats_ref[0, 0, 1:2, :] = jnp.sum(out2d * out2d, axis=0, keepdims=True)


def _make_kernel(with_res, with_stats):
    def kernel(*refs):
        x_ref, top_ref, bot_ref, consts_ref, w_ref = refs[:5]
        i = 5
        res_ref = None
        if with_res:
            res_ref = refs[i]
            i += 1
        o_ref = refs[i]
        i += 1
        stats_ref = None
        if with_stats:
            stats_ref = refs[i]
            i += 1
        xp_buf = refs[i]
        _fused_body(x_ref, top_ref, bot_ref, consts_ref, w_ref, res_ref,
                    o_ref, stats_ref, xp_buf)
    return kernel


# ---------------------------------------------------------------------------
# VMEM accounting & generation-aware tiling
# ---------------------------------------------------------------------------

def _vmem_capacity_bytes():
    try:
        info = pltpu.get_tpu_info()
        cap = getattr(info, "vmem_capacity_bytes", None)
        if cap:
            return int(cap)
    except Exception:
        pass
    return 64 * 1024 * 1024          # conservative: v7x per-TensorCore VMEM


def _vmem_budget_bytes(TH, W, Cin, Cout, with_res):
    """Explicit accounting: double-buffered pipelined blocks + scratch + acc."""
    db = 2                                    # Pallas double-buffers every block
    strip_in = TH * W * Cin * 4
    halos = 2 * W * Cin * 4
    consts = 3 * max(Cin, Cout) * 4
    weights = 3 * 3 * Cin * Cout * 2
    strip_out = TH * W * Cout * 4
    stats = 2 * Cout * 4
    res = TH * W * Cout * 4 if with_res else 0
    xp = (TH + 2) * W * 3 * Cin * 2           # bf16 scratch
    acc = TH * W * Cout * 4                   # compiler-materialized accumulator
    return (db * (strip_in + halos + consts + weights + strip_out + stats + res)
            + xp + 2 * acc)


def _pick_row_tile(N, H, W, Cin, Cout, with_res, vmem_cap):
    # Bigger strips on 128 MiB chips (v5e/v6e), smaller on 64 MiB v7x; keep at
    # least 2 grid steps so both v7x TensorCores get work.
    m_cap = 8192 if vmem_cap >= (96 << 20) else 2048
    best = 1
    for th in range(1, H + 1):
        if H % th:
            continue
        if th * W > m_cap:
            continue
        if _vmem_budget_bytes(th, W, Cin, Cout, with_res) > int(0.55 * vmem_cap):
            continue
        if N * (H // th) < 2 and th != 1:
            continue
        best = th
    return best


# ---------------------------------------------------------------------------
# pallas_call wrapper for one fused GN + SiLU + conv3x3
# ---------------------------------------------------------------------------

def _fused_gn_silu_conv(x, scale, shift, add, w3, *, residual=None,
                        emit_stats=False, row_tile=None):
    """out[n] = conv3x3(silu(x[n]*scale[n] + shift[n]), w3) + add[n] (+residual).

    Optionally also returns per-(n, strip) per-channel [sum, sum-of-squares]
    of the output (for the next GroupNorm's statistics)."""
    N, H, W, Cin = x.shape
    Cout = w3.shape[-1]
    # TODO(synk): out_channels != channels (conv / 1x1-conv skip) not implemented.
    assert Cin == Cout, (Cin, Cout)
    with_res = residual is not None

    vmem_cap = _vmem_capacity_bytes()
    TH = row_tile if row_tile is not None else _pick_row_tile(
        N, H, W, Cin, Cout, with_res, vmem_cap)
    assert H % TH == 0, (H, TH)
    nh = H // TH

    budget = _vmem_budget_bytes(TH, W, Cin, Cout, with_res)
    vmem_limit = int(min(0.9 * vmem_cap, max(32 << 20, 2 * budget + (4 << 20))))

    # One small per-n constants array (GN scale, GN shift, bias+emb):
    # a single DMA per grid step instead of three.
    consts = jnp.stack([scale, shift, add], axis=1).astype(jnp.float32)  # (N,3,C)

    in_specs = [
        pl.BlockSpec((1, TH, W, Cin), lambda n, t: (n, t, 0, 0)),
        pl.BlockSpec((1, 1, W, Cin),
                     lambda n, t: (n, jnp.maximum(t * TH - 1, 0), 0, 0)),
        pl.BlockSpec((1, 1, W, Cin),
                     lambda n, t: (n, jnp.minimum(t * TH + TH, H - 1), 0, 0)),
        pl.BlockSpec((1, 3, Cin), lambda n, t: (n, 0, 0)),
        pl.BlockSpec((3, 3 * Cin, Cout), lambda n, t: (0, 0, 0)),
    ]
    args = [x, x, x, consts, w3]
    if with_res:
        in_specs.append(pl.BlockSpec((1, TH, W, Cout), lambda n, t: (n, t, 0, 0)))
        args.append(residual)

    if emit_stats:
        out_shape = (jax.ShapeDtypeStruct((N, H, W, Cout), jnp.float32),
                     jax.ShapeDtypeStruct((N, nh, 2, Cout), jnp.float32))
        out_specs = (pl.BlockSpec((1, TH, W, Cout), lambda n, t: (n, t, 0, 0)),
                     pl.BlockSpec((1, 1, 2, Cout), lambda n, t: (n, t, 0, 0)))
    else:
        out_shape = jax.ShapeDtypeStruct((N, H, W, Cout), jnp.float32)
        out_specs = pl.BlockSpec((1, TH, W, Cout), lambda n, t: (n, t, 0, 0))

    return pl.pallas_call(
        _make_kernel(with_res, emit_stats),
        out_shape=out_shape,
        grid=(N, nh),
        in_specs=in_specs,
        out_specs=out_specs,
        scratch_shapes=[pltpu.VMEM((TH + 2, W, 3 * Cin), jnp.bfloat16)],
        compiler_params=pltpu.CompilerParams(
            dimension_semantics=("parallel", "parallel"),
            vmem_limit_bytes=vmem_limit),
    )(*args)


# ---------------------------------------------------------------------------
# ResBlock wrapper (JAX glue around the fused kernels)
# ---------------------------------------------------------------------------

def _prep_w(w_oihw):
    # PyTorch (c_out, c_in, 3, 3) -> (kh, kw*c_in, c_out) bf16: kw folded into K.
    co, ci, kh, kw = w_oihw.shape
    w = jnp.transpose(w_oihw, (2, 3, 1, 0))          # (kh, kw, ci, co)
    return w.reshape(kh, kw * ci, co).astype(jnp.bfloat16)


def _gn_scale_shift_from_x(x_nhwc, gamma, beta, num_groups, eps):
    """Fold GroupNorm into a per-(n, c) affine: y = x*scale + shift."""
    N, H, W, C = x_nhwc.shape
    G = num_groups
    Cg = C // G
    xr = x_nhwc.reshape(N, H * W, G, Cg).astype(jnp.float32)
    mean = jnp.mean(xr, axis=(1, 3))                          # (N, G)
    var = jnp.var(xr, axis=(1, 3))                            # (N, G), biased
    rstd = lax.rsqrt(var + eps)
    scale = jnp.repeat(rstd, Cg, axis=1) * gamma[None, :]
    shift = beta[None, :] - jnp.repeat(mean * rstd, Cg, axis=1) * gamma[None, :]
    return scale, shift


def _gn_scale_shift_from_stats(stats, gamma, beta, hw, num_groups, eps):
    """Same affine, but from per-strip per-channel [sum, sum-of-squares]."""
    N, _, _, C = stats.shape
    G = num_groups
    Cg = C // G
    tot = jnp.sum(stats, axis=1)                              # (N, 2, C)
    gtot = tot.reshape(N, 2, G, Cg).sum(axis=-1)              # (N, 2, G)
    cnt = float(hw * Cg)
    mean = gtot[:, 0, :] / cnt
    var = gtot[:, 1, :] / cnt - mean * mean
    rstd = lax.rsqrt(jnp.maximum(var, 0.0) + eps)
    scale = jnp.repeat(rstd, Cg, axis=1) * gamma[None, :]
    shift = beta[None, :] - jnp.repeat(mean * rstd, Cg, axis=1) * gamma[None, :]
    return scale, shift


def resblock_forward(x_nchw, emb, params, *, num_groups=32, eps=1e-5,
                     row_tile=None):
    """ResBlock forward (dims=2, use_scale_shift_norm=False,
    out_channels == channels -> Identity skip, dropout in eval mode)."""
    N, C, H, W = x_nchw.shape
    # TODO(synk): a real model should keep activations NHWC end-to-end; these
    # transposes only exist to match the PyTorch NCHW interface.
    x = jnp.transpose(x_nchw, (0, 2, 3, 1)).astype(jnp.float32)      # NHWC

    # emb_layer: SiLU -> Linear (tiny; plain JAX glue).
    emb_out = _silu(emb.astype(jnp.float32)) @ params["emb_w"].T + params["emb_b"]

    # in_layer: GroupNorm -> SiLU -> conv3x3 (+ conv bias + broadcast emb_out),
    # fused in one Pallas kernel; also emits GN2 partial statistics.
    sc1, sh1 = _gn_scale_shift_from_x(x, params["gn1_gamma"], params["gn1_beta"],
                                      num_groups, eps)
    add1 = params["conv1_b"][None, :] + emb_out
    h, h_stats = _fused_gn_silu_conv(x, sc1, sh1, add1,
                                     _prep_w(params["conv1_w"]),
                                     residual=None, emit_stats=True,
                                     row_tile=row_tile)

    # out_layer: GroupNorm -> SiLU -> Dropout -> conv3x3 (+ bias), fused, with
    # the Identity skip connection added in the kernel epilogue.  GN2 stats
    # come from kernel 1's partial sums (no extra HBM pass over h).
    # TODO(synk): Dropout is eval-mode identity here (no in-kernel PRNG masking).
    sc2, sh2 = _gn_scale_shift_from_stats(h_stats, params["gn2_gamma"],
                                          params["gn2_beta"], H * W,
                                          num_groups, eps)
    add2 = jnp.broadcast_to(params["conv2_b"][None, :], (N, C))
    out = _fused_gn_silu_conv(h, sc2, sh2, add2, _prep_w(params["conv2_w"]),
                              residual=x, emit_stats=False, row_tile=row_tile)

    # TODO(synk): use_scale_shift_norm=True and out_channels != channels
    # (conv / 1x1-conv skip) variants are not implemented.
    return jnp.transpose(out, (0, 3, 1, 2))                          # NCHW


# ---------------------------------------------------------------------------
# Pure-JAX reference (same bf16 cast points, f32 accumulation) + test
# ---------------------------------------------------------------------------

def _reference(x_nchw, emb, p, num_groups, eps):
    x = jnp.transpose(x_nchw, (0, 2, 3, 1)).astype(jnp.float32)

    def conv3(a_bf16, w_oihw, b):
        w = jnp.transpose(w_oihw, (2, 3, 1, 0)).astype(jnp.bfloat16)   # HWIO
        y = lax.conv_general_dilated(
            a_bf16, w, window_strides=(1, 1), padding=((1, 1), (1, 1)),
            dimension_numbers=("NHWC", "HWIO", "NHWC"),
            preferred_element_type=jnp.float32)
        return y + b[None, None, None, :]

    sc1, sh1 = _gn_scale_shift_from_x(x, p["gn1_gamma"], p["gn1_beta"],
                                      num_groups, eps)
    a1 = _silu(x * sc1[:, None, None, :] + sh1[:, None, None, :]).astype(jnp.bfloat16)
    emb_out = _silu(emb.astype(jnp.float32)) @ p["emb_w"].T + p["emb_b"]
    h = conv3(a1, p["conv1_w"], p["conv1_b"]) + emb_out[:, None, None, :]
    sc2, sh2 = _gn_scale_shift_from_x(h, p["gn2_gamma"], p["gn2_beta"],
                                      num_groups, eps)
    a2 = _silu(h * sc2[:, None, None, :] + sh2[:, None, None, :]).astype(jnp.bfloat16)
    out = x + conv3(a2, p["conv2_w"], p["conv2_b"])
    return jnp.transpose(out, (0, 3, 1, 2))


if __name__ == "__main__":
    key = jax.random.PRNGKey(0)
    ks = jax.random.split(key, 12)

    N, C, H, W = 2, 32, 16, 16           # channels multiple of 32 (GroupNorm32)
    emb_dim = 64
    num_groups = 32

    x = jax.random.normal(ks[0], (N, C, H, W), dtype=jnp.float32)
    emb = jax.random.normal(ks[1], (N, emb_dim), dtype=jnp.float32)
    params = {
        "gn1_gamma": 1.0 + 0.1 * jax.random.normal(ks[2], (C,), jnp.float32),
        "gn1_beta": 0.1 * jax.random.normal(ks[3], (C,), jnp.float32),
        "conv1_w": 0.1 * jax.random.normal(ks[4], (C, C, 3, 3), jnp.float32),
        "conv1_b": 0.1 * jax.random.normal(ks[5], (C,), jnp.float32),
        "emb_w": 0.1 * jax.random.normal(ks[6], (C, emb_dim), jnp.float32),
        "emb_b": 0.1 * jax.random.normal(ks[7], (C,), jnp.float32),
        "gn2_gamma": 1.0 + 0.1 * jax.random.normal(ks[8], (C,), jnp.float32),
        "gn2_beta": 0.1 * jax.random.normal(ks[9], (C,), jnp.float32),
        # zero_module() zeroes this conv at init; random values here so the
        # kernel path is actually exercised (forward math is unchanged).
        "conv2_w": 0.05 * jax.random.normal(ks[10], (C, C, 3, 3), jnp.float32),
        "conv2_b": 0.05 * jax.random.normal(ks[11], (C,), jnp.float32),
    }

    # row_tile=8 -> grid (N, 2): exercises the halo / border-masking path.
    fwd = jax.jit(functools.partial(resblock_forward, num_groups=num_groups,
                                    row_tile=8))
    out = jax.block_until_ready(fwd(x, emb, params))
    assert out.shape == (N, C, H, W), out.shape

    ref = _reference(x, emb, params, num_groups, 1e-5)
    err = float(jnp.max(jnp.abs(out - ref)))
    assert err < 5e-2, err
    print("KERNEL_OK")
</pallas_src>

<mosaic_0001>
module attributes {stable_mosaic.version = 11 : i64} {
  func.func @kernel(%arg0: i32, %arg1: i32, %arg2: memref<1x8x16x32xf32, #tpu.memory_space<vmem>>, %arg3: memref<1x1x16x32xf32, #tpu.memory_space<vmem>>, %arg4: memref<1x1x16x32xf32, #tpu.memory_space<vmem>>, %arg5: memref<1x3x32xf32, #tpu.memory_space<vmem>>, %arg6: memref<3x96x32xbf16, #tpu.memory_space<vmem>>, %arg7: memref<1x8x16x32xf32, #tpu.memory_space<vmem>>, %arg8: memref<1x8x16x32xf32, #tpu.memory_space<vmem>>, %arg9: memref<10x16x96xbf16, #tpu.memory_space<vmem>>) attributes {dimension_semantics = [#tpu.dimension_semantics<parallel>, #tpu.dimension_semantics<parallel>], iteration_bounds = array<i64: 2, 2>, scalar_prefetch = 0 : i64, scratch_operands = 1 : i64, tpu.core_type = #tpu.core_type<tc>, window_params = [{transform_indices = @transform_0, window_bounds = array<i64: 1, 8, 16, 32>}, {transform_indices = @transform_1, window_bounds = array<i64: 1, 1, 16, 32>}, {transform_indices = @transform_2, window_bounds = array<i64: 1, 1, 16, 32>}, {transform_indices = @transform_3, window_bounds = array<i64: 1, 3, 32>}, {pipeline_mode = #tpu.pipeline_mode<synchronous>, transform_indices = @transform_4, window_bounds = array<i64: 3, 96, 32>}, {transform_indices = @transform_5, window_bounds = array<i64: 1, 8, 16, 32>}, {transform_indices = @transform_6, window_bounds = array<i64: 1, 8, 16, 32>}]} {
    %c0 = arith.constant 0 : index
    %c0_0 = arith.constant 0 : index
    %c0_1 = arith.constant 0 : index
    %0 = vector.load %arg5[%c0, %c0_0, %c0_1] : memref<1x3x32xf32, #tpu.memory_space<vmem>>, vector<1x1x32xf32>
    %1 = vector.shape_cast %0 : vector<1x1x32xf32> to vector<1x32xf32>
    %c0_2 = arith.constant 0 : index
    %c1 = arith.constant 1 : index
    %c0_3 = arith.constant 0 : index
    %2 = vector.load %arg5[%c0_2, %c1, %c0_3] : memref<1x3x32xf32, #tpu.memory_space<vmem>>, vector<1x1x32xf32>
    %3 = vector.shape_cast %2 : vector<1x1x32xf32> to vector<1x32xf32>
    %c0_4 = arith.constant 0 : index
    %c2 = arith.constant 2 : index
    %c0_5 = arith.constant 0 : index
    %4 = vector.load %arg5[%c0_4, %c2, %c0_5] : memref<1x3x32xf32, #tpu.memory_space<vmem>>, vector<1x1x32xf32>
    %5 = vector.shape_cast %4 : vector<1x1x32xf32> to vector<1x32xf32>
    %c0_6 = arith.constant 0 : index
    %c0_7 = arith.constant 0 : index
    %c0_8 = arith.constant 0 : index
    %c0_9 = arith.constant 0 : index
    %6 = vector.load %arg2[%c0_6, %c0_7, %c0_8, %c0_9] : memref<1x8x16x32xf32, #tpu.memory_space<vmem>>, vector<1x8x16x32xf32>
    %7 = vector.shape_cast %6 : vector<1x8x16x32xf32> to vector<8x16x32xf32>
    %8 = vector.shape_cast %1 : vector<1x32xf32> to vector<1x1x32xf32>
    %9 = vector.broadcast %8 : vector<1x1x32xf32> to vector<8x16x32xf32>
    %10 = arith.mulf %7, %9 : vector<8x16x32xf32>
    %11 = vector.shape_cast %3 : vector<1x32xf32> to vector<1x1x32xf32>
    %12 = vector.broadcast %11 : vector<1x1x32xf32> to vector<8x16x32xf32>
    %13 = arith.addf %10, %12 : vector<8x16x32xf32>
    %14 = arith.negf %13 : vector<8x16x32xf32>
    %15 = math.exp %14 : vector<8x16x32xf32>
    %cst = arith.constant 1.000000e+00 : f32
    %16 = vector.broadcast %cst : f32 to vector<8x16x32xf32>
    %17 = arith.addf %16, %15 : vector<8x16x32xf32>
    %18 = arith.divf %16, %17 : vector<8x16x32xf32>
    %19 = arith.mulf %13, %18 : vector<8x16x32xf32>
    %20 = arith.truncf %19 : vector<8x16x32xf32> to vector<8x16x32xbf16>
    %cst_10 = arith.constant 0.000000e+00 : bf16
    %21 = vector.broadcast %cst_10 : bf16 to vector<8x1x32xbf16>
    %c1_11 = arith.constant 1 : index
    %c0_12 = arith.constant 0 : index
    %c32 = arith.constant 32 : index
    %22 = vector.load %arg9[%c1_11, %c0_12, %c32] : memref<10x16x96xbf16, #tpu.memory_space<vmem>>, vector<8x16x32xbf16>
    tpu.vector_store %arg9[%c1_11, %c0_12, %c32], %20 {strides = array<i32>} : memref<10x16x96xbf16, #tpu.memory_space<vmem>>, vector<8x16x32xbf16>,
    %23 = vector.extract_strided_slice %20 {offsets = [0, 0, 0], sizes = [8, 15, 32], strides = [1, 1, 1]} : vector<8x16x32xbf16> to vector<8x15x32xbf16>
    %c1_13 = arith.constant 1 : index
    %c1_14 = arith.constant 1 : index
    %c0_15 = arith.constant 0 : index
    %24 = vector.load %arg9[%c1_13, %c1_14, %c0_15] : memref<10x16x96xbf16, #tpu.memory_space<vmem>>, vector<8x15x32xbf16>
    tpu.vector_store %arg9[%c1_13, %c1_14, %c0_15], %23 {strides = array<i32>} : memref<10x16x96xbf16, #tpu.memory_space<vmem>>, vector<8x15x32xbf16>,
    %c1_16 = arith.constant 1 : index
    %c0_17 = arith.constant 0 : index
    %c0_18 = arith.constant 0 : index
    %25 = vector.load %arg9[%c1_16, %c0_17, %c0_18] : memref<10x16x96xbf16, #tpu.memory_space<vmem>>, vector<8x1x32xbf16>
    tpu.vector_store %arg9[%c1_16, %c0_17, %c0_18], %21 {strides = array<i32>} : memref<10x16x96xbf16, #tpu.memory_space<vmem>>, vector<8x1x32xbf16>,
    %26 = vector.extract_strided_slice %20 {offsets = [0, 1, 0], sizes = [8, 15, 32], strides = [1, 1, 1]} : vector<8x16x32xbf16> to vector<8x15x32xbf16>
    %c1_19 = arith.constant 1 : index
    %c0_20 = arith.constant 0 : index
    %c64 = arith.constant 64 : index
    %27 = vector.load %arg9[%c1_19, %c0_20, %c64] : memref<10x16x96xbf16, #tpu.memory_space<vmem>>, vector<8x15x32xbf16>
    tpu.vector_store %arg9[%c1_19, %c0_20, %c64], %26 {strides = array<i32>} : memref<10x16x96xbf16, #tpu.memory_space<vmem>>, vector<8x15x32xbf16>,
    %c1_21 = arith.constant 1 : index
    %c15 = arith.constant 15 : index
    %c64_22 = arith.constant 64 : index
    %28 = vector.load %arg9[%c1_21, %c15, %c64_22] : memref<10x16x96xbf16, #tpu.memory_space<vmem>>, vector<8x1x32xbf16>
    tpu.vector_store %arg9[%c1_21, %c15, %c64_22], %21 {strides = array<i32>} : memref<10x16x96xbf16, #tpu.memory_space<vmem>>, vector<8x1x32xbf16>,
    %c0_23 = arith.constant 0 : index
    %c0_24 = arith.constant 0 : index
    %c0_25 = arith.constant 0 : index
    %c0_26 = arith.constant 0 : index
    %29 = vector.load %arg3[%c0_23, %c0_24, %c0_25, %c0_26] : memref<1x1x16x32xf32, #tpu.memory_space<vmem>>, vector<1x1x16x32xf32>
    %30 = vector.shape_cast %29 : vector<1x1x16x32xf32> to vector<1x16x32xf32>
    %31 = vector.shape_cast %1 : vector<1x32xf32> to vector<1x1x32xf32>
    %32 = vector.broadcast %31 : vector<1x1x32xf32> to vector<1x16x32xf32>
    %33 = arith.mulf %30, %32 : vector<1x16x32xf32>
    %34 = vector.shape_cast %3 : vector<1x32xf32> to vector<1x1x32xf32>
    %35 = vector.broadcast %34 : vector<1x1x32xf32> to vector<1x16x32xf32>
    %36 = arith.addf %33, %35 : vector<1x16x32xf32>
    %37 = arith.negf %36 : vector<1x16x32xf32>
    %38 = math.exp %37 : vector<1x16x32xf32>
    %cst_27 = arith.constant 1.000000e+00 : f32
    %39 = vector.broadcast %cst_27 : f32 to vector<1x16x32xf32>
    %40 = arith.addf %39, %38 : vector<1x16x32xf32>
    %41 = arith.divf %39, %40 : vector<1x16x32xf32>
    %42 = arith.mulf %36, %41 : vector<1x16x32xf32>
    %43 = arith.truncf %42 : vector<1x16x32xf32> to vector<1x16x32xbf16>
    %c0_28 = arith.constant 0 : index
    %c0_29 = arith.constant 0 : index
    %c0_30 = arith.constant 0 : index
    %c0_31 = arith.constant 0 : index
    %44 = vector.load %arg4[%c0_28, %c0_29, %c0_30, %c0_31] : memref<1x1x16x32xf32, #tpu.memory_space<vmem>>, vector<1x1x16x32xf32>
    %45 = vector.shape_cast %44 : vector<1x1x16x32xf32> to vector<1x16x32xf32>
    %46 = vector.shape_cast %1 : vector<1x32xf32> to vector<1x1x32xf32>
    %47 = vector.broadcast %46 : vector<1x1x32xf32> to vector<1x16x32xf32>
    %48 = arith.mulf %45, %47 : vector<1x16x32xf32>
    %49 = vector.shape_cast %3 : vector<1x32xf32> to vector<1x1x32xf32>
    %50 = vector.broadcast %49 : vector<1x1x32xf32> to vector<1x16x32xf32>
    %51 = arith.addf %48, %50 : vector<1x16x32xf32>
    %52 = arith.negf %51 : vector<1x16x32xf32>
    %53 = math.exp %52 : vector<1x16x32xf32>
    %cst_32 = arith.constant 1.000000e+00 : f32
    %54 = vector.broadcast %cst_32 : f32 to vector<1x16x32xf32>
    %55 = arith.addf %54, %53 : vector<1x16x32xf32>
    %56 = arith.divf %54, %55 : vector<1x16x32xf32>
    %57 = arith.mulf %51, %56 : vector<1x16x32xf32>
    %58 = arith.truncf %57 : vector<1x16x32xf32> to vector<1x16x32xbf16>
    %c0_i32 = arith.constant 0 : i32
    %59 = arith.cmpi sgt, %arg1, %c0_i32 : i32
    %cst_33 = arith.constant 0.000000e+00 : bf16
    %60 = vector.broadcast %cst_33 : bf16 to vector<1x16x32xbf16>
    %61 = arith.select %59, %43, %60 : vector<1x16x32xbf16>
    %cst_34 = arith.constant 0.000000e+00 : bf16
    %62 = vector.broadcast %cst_34 : bf16 to vector<1x1x32xbf16>
    %c0_35 = arith.constant 0 : index
    %c0_36 = arith.constant 0 : index
    %c32_37 = arith.constant 32 : index
    %63 = vector.load %arg9[%c0_35, %c0_36, %c32_37] : memref<10x16x96xbf16, #tpu.memory_space<vmem>>, vector<1x16x32xbf16>
    tpu.vector_store %arg9[%c0_35, %c0_36, %c32_37], %61 {strides = array<i32>} : memref<10x16x96xbf16, #tpu.memory_space<vmem>>, vector<1x16x32xbf16>,
    %64 = vector.extract_strided_slice %61 {offsets = [0, 0, 0], sizes = [1, 15, 32], strides = [1, 1, 1]} : vector<1x16x32xbf16> to vector<1x15x32xbf16>
    %c0_38 = arith.constant 0 : index
    %c1_39 = arith.constant 1 : index
    %c0_40 = arith.constant 0 : index
    %65 = vector.load %arg9[%c0_38, %c1_39, %c0_40] : memref<10x16x96xbf16, #tpu.memory_space<vmem>>, vector<1x15x32xbf16>
    tpu.vector_store %arg9[%c0_38, %c1_39, %c0_40], %64 {strides = array<i32>} : memref<10x16x96xbf16, #tpu.memory_space<vmem>>, vector<1x15x32xbf16>,
    %c0_41 = arith.constant 0 : index
    %c0_42 = arith.constant 0 : index
    %c0_43 = arith.constant 0 : index
    %66 = vector.load %arg9[%c0_41, %c0_42, %c0_43] : memref<10x16x96xbf16, #tpu.memory_space<vmem>>, vector<1x1x32xbf16>
    tpu.vector_store %arg9[%c0_41, %c0_42, %c0_43], %62 {strides = array<i32>} : memref<10x16x96xbf16, #tpu.memory_space<vmem>>, vector<1x1x32xbf16>,
    %67 = vector.extract_strided_slice %61 {offsets = [0, 1, 0], sizes = [1, 15, 32], strides = [1, 1, 1]} : vector<1x16x32xbf16> to vector<1x15x32xbf16>
    %c0_44 = arith.constant 0 : index
    %c0_45 = arith.constant 0 : index
    %c64_46 = arith.constant 64 : index
    %68 = vector.load %arg9[%c0_44, %c0_45, %c64_46] : memref<10x16x96xbf16, #tpu.memory_space<vmem>>, vector<1x15x32xbf16>
    tpu.vector_store %arg9[%c0_44, %c0_45, %c64_46], %67 {strides = array<i32>} : memref<10x16x96xbf16, #tpu.memory_space<vmem>>, vector<1x15x32xbf16>,
    %c0_47 = arith.constant 0 : index
    %c15_48 = arith.constant 15 : index
    %c64_49 = arith.constant 64 : index
    %69 = vector.load %arg9[%c0_47, %c15_48, %c64_49] : memref<10x16x96xbf16, #tpu.memory_space<vmem>>, vector<1x1x32xbf16>
    tpu.vector_store %arg9[%c0_47, %c15_48, %c64_49], %62 {strides = array<i32>} : memref<10x16x96xbf16, #tpu.memory_space<vmem>>, vector<1x1x32xbf16>,
    %c1_i32 = arith.constant 1 : i32
    %70 = arith.cmpi slt, %arg1, %c1_i32 : i32
    %cst_50 = arith.constant 0.000000e+00 : bf16
    %71 = vector.broadcast %cst_50 : bf16 to vector<1x16x32xbf16>
    %72 = arith.select %70, %58, %71 : vector<1x16x32xbf16>
    %cst_51 = arith.constant 0.000000e+00 : bf16
    %73 = vector.broadcast %cst_51 : bf16 to vector<1x1x32xbf16>
    %c9 = arith.constant 9 : index
    %c0_52 = arith.constant 0 : index
    %c32_53 = arith.constant 32 : index
    %74 = vector.load %arg9[%c9, %c0_52, %c32_53] : memref<10x16x96xbf16, #tpu.memory_space<vmem>>, vector<1x16x32xbf16>
    tpu.vector_store %arg9[%c9, %c0_52, %c32_53], %72 {strides = array<i32>} : memref<10x16x96xbf16, #tpu.memory_space<vmem>>, vector<1x16x32xbf16>,
    %75 = vector.extract_strided_slice %72 {offsets = [0, 0, 0], sizes = [1, 15, 32], strides = [1, 1, 1]} : vector<1x16x32xbf16> to vector<1x15x32xbf16>
    %c9_54 = arith.constant 9 : index
    %c1_55 = arith.constant 1 : index
    %c0_56 = arith.constant 0 : index
    %76 = vector.load %arg9[%c9_54, %c1_55, %c0_56] : memref<10x16x96xbf16, #tpu.memory_space<vmem>>, vector<1x15x32xbf16>
    tpu.vector_store %arg9[%c9_54, %c1_55, %c0_56], %75 {strides = array<i32>} : memref<10x16x96xbf16, #tpu.memory_space<vmem>>, vector<1x15x32xbf16>,
    %c9_57 = arith.constant 9 : index
    %c0_58 = arith.constant 0 : index
    %c0_59 = arith.constant 0 : index
    %77 = vector.load %arg9[%c9_57, %c0_58, %c0_59] : memref<10x16x96xbf16, #tpu.memory_space<vmem>>, vector<1x1x32xbf16>
    tpu.vector_store %arg9[%c9_57, %c0_58, %c0_59], %73 {strides = array<i32>} : memref<10x16x96xbf16, #tpu.memory_space<vmem>>, vector<1x1x32xbf16>,
    %78 = vector.extract_strided_slice %72 {offsets = [0, 1, 0], sizes = [1, 15, 32], strides = [1, 1, 1]} : vector<1x16x32xbf16> to vector<1x15x32xbf16>
    %c9_60 = arith.constant 9 : index
    %c0_61 = arith.constant 0 : index
    %c64_62 = arith.constant 64 : index
    %79 = vector.load %arg9[%c9_60, %c0_61, %c64_62] : memref<10x16x96xbf16, #tpu.memory_space<vmem>>, vector<1x15x32xbf16>
    tpu.vector_store %arg9[%c9_60, %c0_61, %c64_62], %78 {strides = array<i32>} : memref<10x16x96xbf16, #tpu.memory_space<vmem>>, vector<1x15x32xbf16>,
    %c9_63 = arith.constant 9 : index
    %c15_64 = arith.constant 15 : index
    %c64_65 = arith.constant 64 : index
    %80 = vector.load %arg9[%c9_63, %c15_64, %c64_65] : memref<10x16x96xbf16, #tpu.memory_space<vmem>>, vector<1x1x32xbf16>
    tpu.vector_store %arg9[%c9_63, %c15_64, %c64_65], %73 {strides = array<i32>} : memref<10x16x96xbf16, #tpu.memory_space<vmem>>, vector<1x1x32xbf16>,
    %c0_66 = arith.constant 0 : index
    %c0_67 = arith.constant 0 : index
    %c0_68 = arith.constant 0 : index
    %81 = vector.load %arg9[%c0_66, %c0_67, %c0_68] : memref<10x16x96xbf16, #tpu.memory_space<vmem>>, vector<8x16x96xbf16>
    %82 = vector.shape_cast %81 : vector<8x16x96xbf16> to vector<128x96xbf16>
    %c0_69 = arith.constant 0 : index
    %c0_70 = arith.constant 0 : index
    %c0_71 = arith.constant 0 : index
    %83 = vector.load %arg6[%c0_69, %c0_70, %c0_71] : memref<3x96x32xbf16, #tpu.memory_space<vmem>>, vector<1x96x32xbf16>
    %84 = vector.shape_cast %83 : vector<1x96x32xbf16> to vector<96x32xbf16>
    %cst_72 = arith.constant dense<0.000000e+00> : vector<128x32xf32>
    %85 = tpu.matmul %82, %84, %cst_72 {dimension_numbers = #tpu.dot_dimension_numbers<[1], [0], [0], [1], [0, 0, 1, 1], [], []>} : vector<128x96xbf16>, vector<96x32xbf16>, vector<128x32xf32> -> vector<128x32xf32>
    %c1_73 = arith.constant 1 : index
    %c0_74 = arith.constant 0 : index
    %c0_75 = arith.constant 0 : index
    %86 = vector.load %arg9[%c1_73, %c0_74, %c0_75] : memref<10x16x96xbf16, #tpu.memory_space<vmem>>, vector<8x16x96xbf16>
    %87 = vector.shape_cast %86 : vector<8x16x96xbf16> to vector<128x96xbf16>
    %c1_76 = arith.constant 1 : index
    %c0_77 = arith.constant 0 : index
    %c0_78 = arith.constant 0 : index
    %88 = vector.load %arg6[%c1_76, %c0_77, %c0_78] : memref<3x96x32xbf16, #tpu.memory_space<vmem>>, vector<1x96x32xbf16>
    %89 = vector.shape_cast %88 : vector<1x96x32xbf16> to vector<96x32xbf16>
    %cst_79 = arith.constant dense<0.000000e+00> : vector<128x32xf32>
    %90 = tpu.matmul %87, %89, %cst_79 {dimension_numbers = #tpu.dot_dimension_numbers<[1], [0], [0], [1], [0, 0, 1, 1], [], []>} : vector<128x96xbf16>, vector<96x32xbf16>, vector<128x32xf32> -> vector<128x32xf32>
    %91 = arith.addf %85, %90 : vector<128x32xf32>
    %c2_80 = arith.constant 2 : index
    %c0_81 = arith.constant 0 : index
    %c0_82 = arith.constant 0 : index
    %92 = vector.load %arg9[%c2_80, %c0_81, %c0_82] : memref<10x16x96xbf16, #tpu.memory_space<vmem>>, vector<8x16x96xbf16>
    %93 = vector.shape_cast %92 : vector<8x16x96xbf16> to vector<128x96xbf16>
    %c2_83 = arith.constant 2 : index
    %c0_84 = arith.constant 0 : index
    %c0_85 = arith.constant 0 : index
    %94 = vector.load %arg6[%c2_83, %c0_84, %c0_85] : memref<3x96x32xbf16, #tpu.memory_space<vmem>>, vector<1x96x32xbf16>
    %95 = vector.shape_cast %94 : vector<1x96x32xbf16> to vector<96x32xbf16>
    %cst_86 = arith.constant dense<0.000000e+00> : vector<128x32xf32>
    %96 = tpu.matmul %93, %95, %cst_86 {dimension_numbers = #tpu.dot_dimension_numbers<[1], [0], [0], [1], [0, 0, 1, 1], [], []>} : vector<128x96xbf16>, vector<96x32xbf16>, vector<128x32xf32> -> vector<128x32xf32>
    %97 = arith.addf %91, %96 : vector<128x32xf32>
    %98 = vector.broadcast %5 : vector<1x32xf32> to vector<128x32xf32>
    %99 = arith.addf %97, %98 : vector<128x32xf32>
    %c0_87 = arith.constant 0 : index
    %c0_88 = arith.constant 0 : index
    %c0_89 = arith.constant 0 : index
    %c0_90 = arith.constant 0 : index
    %100 = vector.load %arg7[%c0_87, %c0_88, %c0_89, %c0_90] : memref<1x8x16x32xf32, #tpu.memory_space<vmem>>, vector<1x8x16x32xf32>
    %101 = vector.shape_cast %100 : vector<1x8x16x32xf32> to vector<8x16x32xf32>
    %102 = vector.shape_cast %101 : vector<8x16x32xf32> to vector<128x32xf32>
    %103 = arith.addf %99, %102 : vector<128x32xf32>
    %104 = vector.shape_cast %103 : vector<128x32xf32> to vector<8x16x32xf32>
    %c0_91 = arith.constant 0 : index
    %c0_92 = arith.constant 0 : index
    %c0_93 = arith.constant 0 : index
    %c0_94 = arith.constant 0 : index
    %105 = vector.load %arg8[%c0_91, %c0_92, %c0_93, %c0_94] : memref<1x8x16x32xf32, #tpu.memory_space<vmem>>, vector<1x8x16x32xf32>
    %106 = vector.shape_cast %105 : vector<1x8x16x32xf32> to vector<8x16x32xf32>
    %107 = vector.shape_cast %104 : vector<8x16x32xf32> to vector<1x8x16x32xf32>
    tpu.vector_store %arg8[%c0_91, %c0_92, %c0_93, %c0_94], %107 {strides = array<i32>} : memref<1x8x16x32xf32, #tpu.memory_space<vmem>>, vector<1x8x16x32xf32>,
    return
  }
  func.func @transform_0(%arg0: i32, %arg1: i32) -> (i32, i32, i32, i32) {
    %c0_i32 = arith.constant 0 : i32
    %c0_i32_0 = arith.constant 0 : i32
    %c0_i32_1 = arith.constant 0 : i32
    return %arg0, %arg1, %c0_i32, %c0_i32_0 : i32, i32, i32, i32
  }
  func.func @transform_1(%arg0: i32, %arg1: i32) -> (i32, i32, i32, i32) {
    %c8_i32 = arith.constant 8 : i32
    %0 = arith.muli %arg1, %c8_i32 : i32
    %c1_i32 = arith.constant 1 : i32
    %1 = arith.subi %0, %c1_i32 : i32
    %c0_i32 = arith.constant 0 : i32
    %2 = arith.maxsi %1, %c0_i32 : i32
    %c0_i32_0 = arith.constant 0 : i32
    %c0_i32_1 = arith.constant 0 : i32
    %c0_i32_2 = arith.constant 0 : i32
    return %arg0, %2, %c0_i32_0, %c0_i32_1 : i32, i32, i32, i32
  }
  func.func @transform_2(%arg0: i32, %arg1: i32) -> (i32, i32, i32, i32) {
    %c8_i32 = arith.constant 8 : i32
    %0 = arith.muli %arg1, %c8_i32 : i32
    %c8_i32_0 = arith.constant 8 : i32
    %1 = arith.addi %0, %c8_i32_0 : i32
    %c15_i32 = arith.constant 15 : i32
    %2 = arith.minsi %1, %c15_i32 : i32
    %c0_i32 = arith.constant 0 : i32
    %c0_i32_1 = arith.constant 0 : i32
    %c0_i32_2 = arith.constant 0 : i32
    return %arg0, %2, %c0_i32, %c0_i32_1 : i32, i32, i32, i32
  }
  func.func @transform_3(%arg0: i32, %arg1: i32) -> (i32, i32, i32) {
    %c0_i32 = arith.constant 0 : i32
    %c0_i32_0 = arith.constant 0 : i32
    %c0_i32_1 = arith.constant 0 : i32
    return %arg0, %c0_i32, %c0_i32_0 : i32, i32, i32
  }
  func.func @transform_4(%arg0: i32, %arg1: i32) -> (i32, i32, i32) {
    %c0_i32 = arith.constant 0 : i32
    %c0_i32_0 = arith.constant 0 : i32
    %c0_i32_1 = arith.constant 0 : i32
    %c0_i32_2 = arith.constant 0 : i32
    return %c0_i32, %c0_i32_0, %c0_i32_1 : i32, i32, i32
  }
  func.func @transform_5(%arg0: i32, %arg1: i32) -> (i32, i32, i32, i32) {
    %c0_i32 = arith.constant 0 : i32
    %c0_i32_0 = arith.constant 0 : i32
    %c0_i32_1 = arith.constant 0 : i32
    return %arg0, %arg1, %c0_i32, %c0_i32_0 : i32, i32, i32, i32
  }
  func.func @transform_6(%arg0: i32, %arg1: i32) -> (i32, i32, i32, i32) {
    %c0_i32 = arith.constant 0 : i32
    %c0_i32_0 = arith.constant 0 : i32
    %c0_i32_1 = arith.constant 0 : i32
    return %arg0, %arg1, %c0_i32, %c0_i32_0 : i32, i32, i32, i32
  }
}

module attributes {stable_mosaic.version = 11 : i64} {
  func.func @kernel(%arg0: i32, %arg1: i32, %arg2: memref<1x8x16x32xf32, #tpu.memory_space<vmem>>, %arg3: memref<1x1x16x32xf32, #tpu.memory_space<vmem>>, %arg4: memref<1x1x16x32xf32, #tpu.memory_space<vmem>>, %arg5: memref<1x3x32xf32, #tpu.memory_space<vmem>>, %arg6: memref<3x96x32xbf16, #tpu.memory_space<vmem>>, %arg7: memref<1x8x16x32xf32, #tpu.memory_space<vmem>>, %arg8: memref<1x1x2x32xf32, #tpu.memory_space<vmem>>, %arg9: memref<10x16x96xbf16, #tpu.memory_space<vmem>>) attributes {dimension_semantics = [#tpu.dimension_semantics<parallel>, #tpu.dimension_semantics<parallel>], iteration_bounds = array<i64: 2, 2>, scalar_prefetch = 0 : i64, scratch_operands = 1 : i64, tpu.core_type = #tpu.core_type<tc>, window_params = [{transform_indices = @transform_0, window_bounds = array<i64: 1, 8, 16, 32>}, {transform_indices = @transform_1, window_bounds = array<i64: 1, 1, 16, 32>}, {transform_indices = @transform_2, window_bounds = array<i64: 1, 1, 16, 32>}, {transform_indices = @transform_3, window_bounds = array<i64: 1, 3, 32>}, {pipeline_mode = #tpu.pipeline_mode<synchronous>, transform_indices = @transform_4, window_bounds = array<i64: 3, 96, 32>}, {transform_indices = @transform_5, window_bounds = array<i64: 1, 8, 16, 32>}, {transform_indices = @transform_6, window_bounds = array<i64: 1, 1, 2, 32>}]} {
    %c0 = arith.constant 0 : index
    %c0_0 = arith.constant 0 : index
    %c0_1 = arith.constant 0 : index
    %0 = vector.load %arg5[%c0, %c0_0, %c0_1] : memref<1x3x32xf32, #tpu.memory_space<vmem>>, vector<1x1x32xf32>
    %1 = vector.shape_cast %0 : vector<1x1x32xf32> to vector<1x32xf32>
    %c0_2 = arith.constant 0 : index
    %c1 = arith.constant 1 : index
    %c0_3 = arith.constant 0 : index
    %2 = vector.load %arg5[%c0_2, %c1, %c0_3] : memref<1x3x32xf32, #tpu.memory_space<vmem>>, vector<1x1x32xf32>
    %3 = vector.shape_cast %2 : vector<1x1x32xf32> to vector<1x32xf32>
    %c0_4 = arith.constant 0 : index
    %c2 = arith.constant 2 : index
    %c0_5 = arith.constant 0 : index
    %4 = vector.load %arg5[%c0_4, %c2, %c0_5] : memref<1x3x32xf32, #tpu.memory_space<vmem>>, vector<1x1x32xf32>
    %5 = vector.shape_cast %4 : vector<1x1x32xf32> to vector<1x32xf32>
    %c0_6 = arith.constant 0 : index
    %c0_7 = arith.constant 0 : index
    %c0_8 = arith.constant 0 : index
    %c0_9 = arith.constant 0 : index
    %6 = vector.load %arg2[%c0_6, %c0_7, %c0_8, %c0_9] : memref<1x8x16x32xf32, #tpu.memory_space<vmem>>, vector<1x8x16x32xf32>
    %7 = vector.shape_cast %6 : vector<1x8x16x32xf32> to vector<8x16x32xf32>
    %8 = vector.shape_cast %1 : vector<1x32xf32> to vector<1x1x32xf32>
    %9 = vector.broadcast %8 : vector<1x1x32xf32> to vector<8x16x32xf32>
    %10 = arith.mulf %7, %9 : vector<8x16x32xf32>
    %11 = vector.shape_cast %3 : vector<1x32xf32> to vector<1x1x32xf32>
    %12 = vector.broadcast %11 : vector<1x1x32xf32> to vector<8x16x32xf32>
    %13 = arith.addf %10, %12 : vector<8x16x32xf32>
    %14 = arith.negf %13 : vector<8x16x32xf32>
    %15 = math.exp %14 : vector<8x16x32xf32>
    %cst = arith.constant 1.000000e+00 : f32
    %16 = vector.broadcast %cst : f32 to vector<8x16x32xf32>
    %17 = arith.addf %16, %15 : vector<8x16x32xf32>
    %18 = arith.divf %16, %17 : vector<8x16x32xf32>
    %19 = arith.mulf %13, %18 : vector<8x16x32xf32>
    %20 = arith.truncf %19 : vector<8x16x32xf32> to vector<8x16x32xbf16>
    %cst_10 = arith.constant 0.000000e+00 : bf16
    %21 = vector.broadcast %cst_10 : bf16 to vector<8x1x32xbf16>
    %c1_11 = arith.constant 1 : index
    %c0_12 = arith.constant 0 : index
    %c32 = arith.constant 32 : index
    %22 = vector.load %arg9[%c1_11, %c0_12, %c32] : memref<10x16x96xbf16, #tpu.memory_space<vmem>>, vector<8x16x32xbf16>
    tpu.vector_store %arg9[%c1_11, %c0_12, %c32], %20 {strides = array<i32>} : memref<10x16x96xbf16, #tpu.memory_space<vmem>>, vector<8x16x32xbf16>,
    %23 = vector.extract_strided_slice %20 {offsets = [0, 0, 0], sizes = [8, 15, 32], strides = [1, 1, 1]} : vector<8x16x32xbf16> to vector<8x15x32xbf16>
    %c1_13 = arith.constant 1 : index
    %c1_14 = arith.constant 1 : index
    %c0_15 = arith.constant 0 : index
    %24 = vector.load %arg9[%c1_13, %c1_14, %c0_15] : memref<10x16x96xbf16, #tpu.memory_space<vmem>>, vector<8x15x32xbf16>
    tpu.vector_store %arg9[%c1_13, %c1_14, %c0_15], %23 {strides = array<i32>} : memref<10x16x96xbf16, #tpu.memory_space<vmem>>, vector<8x15x32xbf16>,
    %c1_16 = arith.constant 1 : index
    %c0_17 = arith.constant 0 : index
    %c0_18 = arith.constant 0 : index
    %25 = vector.load %arg9[%c1_16, %c0_17, %c0_18] : memref<10x16x96xbf16, #tpu.memory_space<vmem>>, vector<8x1x32xbf16>
    tpu.vector_store %arg9[%c1_16, %c0_17, %c0_18], %21 {strides = array<i32>} : memref<10x16x96xbf16, #tpu.memory_space<vmem>>, vector<8x1x32xbf16>,
    %26 = vector.extract_strided_slice %20 {offsets = [0, 1, 0], sizes = [8, 15, 32], strides = [1, 1, 1]} : vector<8x16x32xbf16> to vector<8x15x32xbf16>
    %c1_19 = arith.constant 1 : index
    %c0_20 = arith.constant 0 : index
    %c64 = arith.constant 64 : index
    %27 = vector.load %arg9[%c1_19, %c0_20, %c64] : memref<10x16x96xbf16, #tpu.memory_space<vmem>>, vector<8x15x32xbf16>
    tpu.vector_store %arg9[%c1_19, %c0_20, %c64], %26 {strides = array<i32>} : memref<10x16x96xbf16, #tpu.memory_space<vmem>>, vector<8x15x32xbf16>,
    %c1_21 = arith.constant 1 : index
    %c15 = arith.constant 15 : index
    %c64_22 = arith.constant 64 : index
    %28 = vector.load %arg9[%c1_21, %c15, %c64_22] : memref<10x16x96xbf16, #tpu.memory_space<vmem>>, vector<8x1x32xbf16>
    tpu.vector_store %arg9[%c1_21, %c15, %c64_22], %21 {strides = array<i32>} : memref<10x16x96xbf16, #tpu.memory_space<vmem>>, vector<8x1x32xbf16>,
    %c0_23 = arith.constant 0 : index
    %c0_24 = arith.constant 0 : index
    %c0_25 = arith.constant 0 : index
    %c0_26 = arith.constant 0 : index
    %29 = vector.load %arg3[%c0_23, %c0_24, %c0_25, %c0_26] : memref<1x1x16x32xf32, #tpu.memory_space<vmem>>, vector<1x1x16x32xf32>
    %30 = vector.shape_cast %29 : vector<1x1x16x32xf32> to vector<1x16x32xf32>
    %31 = vector.shape_cast %1 : vector<1x32xf32> to vector<1x1x32xf32>
    %32 = vector.broadcast %31 : vector<1x1x32xf32> to vector<1x16x32xf32>
    %33 = arith.mulf %30, %32 : vector<1x16x32xf32>
    %34 = vector.shape_cast %3 : vector<1x32xf32> to vector<1x1x32xf32>
    %35 = vector.broadcast %34 : vector<1x1x32xf32> to vector<1x16x32xf32>
    %36 = arith.addf %33, %35 : vector<1x16x32xf32>
    %37 = arith.negf %36 : vector<1x16x32xf32>
    %38 = math.exp %37 : vector<1x16x32xf32>
    %cst_27 = arith.constant 1.000000e+00 : f32
    %39 = vector.broadcast %cst_27 : f32 to vector<1x16x32xf32>
    %40 = arith.addf %39, %38 : vector<1x16x32xf32>
    %41 = arith.divf %39, %40 : vector<1x16x32xf32>
    %42 = arith.mulf %36, %41 : vector<1x16x32xf32>
    %43 = arith.truncf %42 : vector<1x16x32xf32> to vector<1x16x32xbf16>
    %c0_28 = arith.constant 0 : index
    %c0_29 = arith.constant 0 : index
    %c0_30 = arith.constant 0 : index
    %c0_31 = arith.constant 0 : index
    %44 = vector.load %arg4[%c0_28, %c0_29, %c0_30, %c0_31] : memref<1x1x16x32xf32, #tpu.memory_space<vmem>>, vector<1x1x16x32xf32>
    %45 = vector.shape_cast %44 : vector<1x1x16x32xf32> to vector<1x16x32xf32>
    %46 = vector.shape_cast %1 : vector<1x32xf32> to vector<1x1x32xf32>
    %47 = vector.broadcast %46 : vector<1x1x32xf32> to vector<1x16x32xf32>
    %48 = arith.mulf %45, %47 : vector<1x16x32xf32>
    %49 = vector.shape_cast %3 : vector<1x32xf32> to vector<1x1x32xf32>
    %50 = vector.broadcast %49 : vector<1x1x32xf32> to vector<1x16x32xf32>
    %51 = arith.addf %48, %50 : vector<1x16x32xf32>
    %52 = arith.negf %51 : vector<1x16x32xf32>
    %53 = math.exp %52 : vector<1x16x32xf32>
    %cst_32 = arith.constant 1.000000e+00 : f32
    %54 = vector.broadcast %cst_32 : f32 to vector<1x16x32xf32>
    %55 = arith.addf %54, %53 : vector<1x16x32xf32>
    %56 = arith.divf %54, %55 : vector<1x16x32xf32>
    %57 = arith.mulf %51, %56 : vector<1x16x32xf32>
    %58 = arith.truncf %57 : vector<1x16x32xf32> to vector<1x16x32xbf16>
    %c0_i32 = arith.constant 0 : i32
    %59 = arith.cmpi sgt, %arg1, %c0_i32 : i32
    %cst_33 = arith.constant 0.000000e+00 : bf16
    %60 = vector.broadcast %cst_33 : bf16 to vector<1x16x32xbf16>
    %61 = arith.select %59, %43, %60 : vector<1x16x32xbf16>
    %cst_34 = arith.constant 0.000000e+00 : bf16
    %62 = vector.broadcast %cst_34 : bf16 to vector<1x1x32xbf16>
    %c0_35 = arith.constant 0 : index
    %c0_36 = arith.constant 0 : index
    %c32_37 = arith.constant 32 : index
    %63 = vector.load %arg9[%c0_35, %c0_36, %c32_37] : memref<10x16x96xbf16, #tpu.memory_space<vmem>>, vector<1x16x32xbf16>
    tpu.vector_store %arg9[%c0_35, %c0_36, %c32_37], %61 {strides = array<i32>} : memref<10x16x96xbf16, #tpu.memory_space<vmem>>, vector<1x16x32xbf16>,
    %64 = vector.extract_strided_slice %61 {offsets = [0, 0, 0], sizes = [1, 15, 32], strides = [1, 1, 1]} : vector<1x16x32xbf16> to vector<1x15x32xbf16>
    %c0_38 = arith.constant 0 : index
    %c1_39 = arith.constant 1 : index
    %c0_40 = arith.constant 0 : index
    %65 = vector.load %arg9[%c0_38, %c1_39, %c0_40] : memref<10x16x96xbf16, #tpu.memory_space<vmem>>, vector<1x15x32xbf16>
    tpu.vector_store %arg9[%c0_38, %c1_39, %c0_40], %64 {strides = array<i32>} : memref<10x16x96xbf16, #tpu.memory_space<vmem>>, vector<1x15x32xbf16>,
    %c0_41 = arith.constant 0 : index
    %c0_42 = arith.constant 0 : index
    %c0_43 = arith.constant 0 : index
    %66 = vector.load %arg9[%c0_41, %c0_42, %c0_43] : memref<10x16x96xbf16, #tpu.memory_space<vmem>>, vector<1x1x32xbf16>
    tpu.vector_store %arg9[%c0_41, %c0_42, %c0_43], %62 {strides = array<i32>} : memref<10x16x96xbf16, #tpu.memory_space<vmem>>, vector<1x1x32xbf16>,
    %67 = vector.extract_strided_slice %61 {offsets = [0, 1, 0], sizes = [1, 15, 32], strides = [1, 1, 1]} : vector<1x16x32xbf16> to vector<1x15x32xbf16>
    %c0_44 = arith.constant 0 : index
    %c0_45 = arith.constant 0 : index
    %c64_46 = arith.constant 64 : index
    %68 = vector.load %arg9[%c0_44, %c0_45, %c64_46] : memref<10x16x96xbf16, #tpu.memory_space<vmem>>, vector<1x15x32xbf16>
    tpu.vector_store %arg9[%c0_44, %c0_45, %c64_46], %67 {strides = array<i32>} : memref<10x16x96xbf16, #tpu.memory_space<vmem>>, vector<1x15x32xbf16>,
    %c0_47 = arith.constant 0 : index
    %c15_48 = arith.constant 15 : index
    %c64_49 = arith.constant 64 : index
    %69 = vector.load %arg9[%c0_47, %c15_48, %c64_49] : memref<10x16x96xbf16, #tpu.memory_space<vmem>>, vector<1x1x32xbf16>
    tpu.vector_store %arg9[%c0_47, %c15_48, %c64_49], %62 {strides = array<i32>} : memref<10x16x96xbf16, #tpu.memory_space<vmem>>, vector<1x1x32xbf16>,
    %c1_i32 = arith.constant 1 : i32
    %70 = arith.cmpi slt, %arg1, %c1_i32 : i32
    %cst_50 = arith.constant 0.000000e+00 : bf16
    %71 = vector.broadcast %cst_50 : bf16 to vector<1x16x32xbf16>
    %72 = arith.select %70, %58, %71 : vector<1x16x32xbf16>
    %cst_51 = arith.constant 0.000000e+00 : bf16
    %73 = vector.broadcast %cst_51 : bf16 to vector<1x1x32xbf16>
    %c9 = arith.constant 9 : index
    %c0_52 = arith.constant 0 : index
    %c32_53 = arith.constant 32 : index
    %74 = vector.load %arg9[%c9, %c0_52, %c32_53] : memref<10x16x96xbf16, #tpu.memory_space<vmem>>, vector<1x16x32xbf16>
    tpu.vector_store %arg9[%c9, %c0_52, %c32_53], %72 {strides = array<i32>} : memref<10x16x96xbf16, #tpu.memory_space<vmem>>, vector<1x16x32xbf16>,
    %75 = vector.extract_strided_slice %72 {offsets = [0, 0, 0], sizes = [1, 15, 32], strides = [1, 1, 1]} : vector<1x16x32xbf16> to vector<1x15x32xbf16>
    %c9_54 = arith.constant 9 : index
    %c1_55 = arith.constant 1 : index
    %c0_56 = arith.constant 0 : index
    %76 = vector.load %arg9[%c9_54, %c1_55, %c0_56] : memref<10x16x96xbf16, #tpu.memory_space<vmem>>, vector<1x15x32xbf16>
    tpu.vector_store %arg9[%c9_54, %c1_55, %c0_56], %75 {strides = array<i32>} : memref<10x16x96xbf16, #tpu.memory_space<vmem>>, vector<1x15x32xbf16>,
    %c9_57 = arith.constant 9 : index
    %c0_58 = arith.constant 0 : index
    %c0_59 = arith.constant 0 : index
    %77 = vector.load %arg9[%c9_57, %c0_58, %c0_59] : memref<10x16x96xbf16, #tpu.memory_space<vmem>>, vector<1x1x32xbf16>
    tpu.vector_store %arg9[%c9_57, %c0_58, %c0_59], %73 {strides = array<i32>} : memref<10x16x96xbf16, #tpu.memory_space<vmem>>, vector<1x1x32xbf16>,
    %78 = vector.extract_strided_slice %72 {offsets = [0, 1, 0], sizes = [1, 15, 32], strides = [1, 1, 1]} : vector<1x16x32xbf16> to vector<1x15x32xbf16>
    %c9_60 = arith.constant 9 : index
    %c0_61 = arith.constant 0 : index
    %c64_62 = arith.constant 64 : index
    %79 = vector.load %arg9[%c9_60, %c0_61, %c64_62] : memref<10x16x96xbf16, #tpu.memory_space<vmem>>, vector<1x15x32xbf16>
    tpu.vector_store %arg9[%c9_60, %c0_61, %c64_62], %78 {strides = array<i32>} : memref<10x16x96xbf16, #tpu.memory_space<vmem>>, vector<1x15x32xbf16>,
    %c9_63 = arith.constant 9 : index
    %c15_64 = arith.constant 15 : index
    %c64_65 = arith.constant 64 : index
    %80 = vector.load %arg9[%c9_63, %c15_64, %c64_65] : memref<10x16x96xbf16, #tpu.memory_space<vmem>>, vector<1x1x32xbf16>
    tpu.vector_store %arg9[%c9_63, %c15_64, %c64_65], %73 {strides = array<i32>} : memref<10x16x96xbf16, #tpu.memory_space<vmem>>, vector<1x1x32xbf16>,
    %c0_66 = arith.constant 0 : index
    %c0_67 = arith.constant 0 : index
    %c0_68 = arith.constant 0 : index
    %81 = vector.load %arg9[%c0_66, %c0_67, %c0_68] : memref<10x16x96xbf16, #tpu.memory_space<vmem>>, vector<8x16x96xbf16>
    %82 = vector.shape_cast %81 : vector<8x16x96xbf16> to vector<128x96xbf16>
    %c0_69 = arith.constant 0 : index
    %c0_70 = arith.constant 0 : index
    %c0_71 = arith.constant 0 : index
    %83 = vector.load %arg6[%c0_69, %c0_70, %c0_71] : memref<3x96x32xbf16, #tpu.memory_space<vmem>>, vector<1x96x32xbf16>
    %84 = vector.shape_cast %83 : vector<1x96x32xbf16> to vector<96x32xbf16>
    %cst_72 = arith.constant dense<0.000000e+00> : vector<128x32xf32>
    %85 = tpu.matmul %82, %84, %cst_72 {dimension_numbers = #tpu.dot_dimension_numbers<[1], [0], [0], [1], [0, 0, 1, 1], [], []>} : vector<128x96xbf16>, vector<96x32xbf16>, vector<128x32xf32> -> vector<128x32xf32>
    %c1_73 = arith.constant 1 : index
    %c0_74 = arith.constant 0 : index
    %c0_75 = arith.constant 0 : index
    %86 = vector.load %arg9[%c1_73, %c0_74, %c0_75] : memref<10x16x96xbf16, #tpu.memory_space<vmem>>, vector<8x16x96xbf16>
    %87 = vector.shape_cast %86 : vector<8x16x96xbf16> to vector<128x96xbf16>
    %c1_76 = arith.constant 1 : index
    %c0_77 = arith.constant 0 : index
    %c0_78 = arith.constant 0 : index
    %88 = vector.load %arg6[%c1_76, %c0_77, %c0_78] : memref<3x96x32xbf16, #tpu.memory_space<vmem>>, vector<1x96x32xbf16>
    %89 = vector.shape_cast %88 : vector<1x96x32xbf16> to vector<96x32xbf16>
    %cst_79 = arith.constant dense<0.000000e+00> : vector<128x32xf32>
    %90 = tpu.matmul %87, %89, %cst_79 {dimension_numbers = #tpu.dot_dimension_numbers<[1], [0], [0], [1], [0, 0, 1, 1], [], []>} : vector<128x96xbf16>, vector<96x32xbf16>, vector<128x32xf32> -> vector<128x32xf32>
    %91 = arith.addf %85, %90 : vector<128x32xf32>
    %c2_80 = arith.constant 2 : index
    %c0_81 = arith.constant 0 : index
    %c0_82 = arith.constant 0 : index
    %92 = vector.load %arg9[%c2_80, %c0_81, %c0_82] : memref<10x16x96xbf16, #tpu.memory_space<vmem>>, vector<8x16x96xbf16>
    %93 = vector.shape_cast %92 : vector<8x16x96xbf16> to vector<128x96xbf16>
    %c2_83 = arith.constant 2 : index
    %c0_84 = arith.constant 0 : index
    %c0_85 = arith.constant 0 : index
    %94 = vector.load %arg6[%c2_83, %c0_84, %c0_85] : memref<3x96x32xbf16, #tpu.memory_space<vmem>>, vector<1x96x32xbf16>
    %95 = vector.shape_cast %94 : vector<1x96x32xbf16> to vector<96x32xbf16>
    %cst_86 = arith.constant dense<0.000000e+00> : vector<128x32xf32>
    %96 = tpu.matmul %93, %95, %cst_86 {dimension_numbers = #tpu.dot_dimension_numbers<[1], [0], [0], [1], [0, 0, 1, 1], [], []>} : vector<128x96xbf16>, vector<96x32xbf16>, vector<128x32xf32> -> vector<128x32xf32>
    %97 = arith.addf %91, %96 : vector<128x32xf32>
    %98 = vector.broadcast %5 : vector<1x32xf32> to vector<128x32xf32>
    %99 = arith.addf %97, %98 : vector<128x32xf32>
    %100 = vector.shape_cast %99 : vector<128x32xf32> to vector<8x16x32xf32>
    %c0_87 = arith.constant 0 : index
    %c0_88 = arith.constant 0 : index
    %c0_89 = arith.constant 0 : index
    %c0_90 = arith.constant 0 : index
    %101 = vector.load %arg7[%c0_87, %c0_88, %c0_89, %c0_90] : memref<1x8x16x32xf32, #tpu.memory_space<vmem>>, vector<1x8x16x32xf32>
    %102 = vector.shape_cast %101 : vector<1x8x16x32xf32> to vector<8x16x32xf32>
    %103 = vector.shape_cast %100 : vector<8x16x32xf32> to vector<1x8x16x32xf32>
    tpu.vector_store %arg7[%c0_87, %c0_88, %c0_89, %c0_90], %103 {strides = array<i32>} : memref<1x8x16x32xf32, #tpu.memory_space<vmem>>, vector<1x8x16x32xf32>,
    %cst_91 = arith.constant dense<0.000000e+00> : vector<32xf32>
    %104 = vector.multi_reduction <add>, %99, %cst_91 [0] : vector<128x32xf32> to vector<32xf32>
    %105 = vector.shape_cast %104 : vector<32xf32> to vector<1x32xf32>
    %c0_92 = arith.constant 0 : index
    %c0_93 = arith.constant 0 : index
    %c0_94 = arith.constant 0 : index
    %c0_95 = arith.constant 0 : index
    %106 = vector.load %arg8[%c0_92, %c0_93, %c0_94, %c0_95] : memref<1x1x2x32xf32, #tpu.memory_space<vmem>>, vector<1x1x1x32xf32>
    %107 = vector.shape_cast %106 : vector<1x1x1x32xf32> to vector<1x32xf32>
    %108 = vector.shape_cast %105 : vector<1x32xf32> to vector<1x1x1x32xf32>
    tpu.vector_store %arg8[%c0_92, %c0_93, %c0_94, %c0_95], %108 {strides = array<i32>} : memref<1x1x2x32xf32, #tpu.memory_space<vmem>>, vector<1x1x1x32xf32>,
    %109 = arith.mulf %99, %99 : vector<128x32xf32>
    %cst_96 = arith.constant dense<0.000000e+00> : vector<32xf32>
    %110 = vector.multi_reduction <add>, %109, %cst_96 [0] : vector<128x32xf32> to vector<32xf32>
    %111 = vector.shape_cast %110 : vector<32xf32> to vector<1x32xf32>
    %c0_97 = arith.constant 0 : index
    %c0_98 = arith.constant 0 : index
    %c1_99 = arith.constant 1 : index
    %c0_100 = arith.constant 0 : index
    %112 = vector.load %arg8[%c0_97, %c0_98, %c1_99, %c0_100] : memref<1x1x2x32xf32, #tpu.memory_space<vmem>>, vector<1x1x1x32xf32>
    %113 = vector.shape_cast %112 : vector<1x1x1x32xf32> to vector<1x32xf32>
    %114 = vector.shape_cast %111 : vector<1x32xf32> to vector<1x1x1x32xf32>
    tpu.vector_store %arg8[%c0_97, %c0_98, %c1_99, %c0_100], %114 {strides = array<i32>} : memref<1x1x2x32xf32, #tpu.memory_space<vmem>>, vector<1x1x1x32xf32>,
    return
  }
  func.func @transform_0(%arg0: i32, %arg1: i32) -> (i32, i32, i32, i32) {
    %c0_i32 = arith.constant 0 : i32
    %c0_i32_0 = arith.constant 0 : i32
    %c0_i32_1 = arith.constant 0 : i32
    return %arg0, %arg1, %c0_i32, %c0_i32_0 : i32, i32, i32, i32
  }
  func.func @transform_1(%arg0: i32, %arg1: i32) -> (i32, i32, i32, i32) {
    %c8_i32 = arith.constant 8 : i32
    %0 = arith.muli %arg1, %c8_i32 : i32
    %c1_i32 = arith.constant 1 : i32
    %1 = arith.subi %0, %c1_i32 : i32
    %c0_i32 = arith.constant 0 : i32
    %2 = arith.maxsi %1, %c0_i32 : i32
    %c0_i32_0 = arith.constant 0 : i32
    %c0_i32_1 = arith.constant 0 : i32
    %c0_i32_2 = arith.constant 0 : i32
    return %arg0, %2, %c0_i32_0, %c0_i32_1 : i32, i32, i32, i32
  }
  func.func @transform_2(%arg0: i32, %arg1: i32) -> (i32, i32, i32, i32) {
    %c8_i32 = arith.constant 8 : i32
    %0 = arith.muli %arg1, %c8_i32 : i32
    %c8_i32_0 = arith.constant 8 : i32
    %1 = arith.addi %0, %c8_i32_0 : i32
    %c15_i32 = arith.constant 15 : i32
    %2 = arith.minsi %1, %c15_i32 : i32
    %c0_i32 = arith.constant 0 : i32
    %c0_i32_1 = arith.constant 0 : i32
    %c0_i32_2 = arith.constant 0 : i32
    return %arg0, %2, %c0_i32, %c0_i32_1 : i32, i32, i32, i32
  }
  func.func @transform_3(%arg0: i32, %arg1: i32) -> (i32, i32, i32) {
    %c0_i32 = arith.constant 0 : i32
    %c0_i32_0 = arith.constant 0 : i32
    %c0_i32_1 = arith.constant 0 : i32
    return %arg0, %c0_i32, %c0_i32_0 : i32, i32, i32
  }
  func.func @transform_4(%arg0: i32, %arg1: i32) -> (i32, i32, i32) {
    %c0_i32 = arith.constant 0 : i32
    %c0_i32_0 = arith.constant 0 : i32
    %c0_i32_1 = arith.constant 0 : i32
    %c0_i32_2 = arith.constant 0 : i32
    return %c0_i32, %c0_i32_0, %c0_i32_1 : i32, i32, i32
  }
  func.func @transform_5(%arg0: i32, %arg1: i32) -> (i32, i32, i32, i32) {
    %c0_i32 = arith.constant 0 : i32
    %c0_i32_0 = arith.constant 0 : i32
    %c0_i32_1 = arith.constant 0 : i32
    return %arg0, %arg1, %c0_i32, %c0_i32_0 : i32, i32, i32, i32
  }
  func.func @transform_6(%arg0: i32, %arg1: i32) -> (i32, i32, i32, i32) {
    %c0_i32 = arith.constant 0 : i32
    %c0_i32_0 = arith.constant 0 : i32
    %c0_i32_1 = arith.constant 0 : i32
    return %arg0, %arg1, %c0_i32, %c0_i32_0 : i32, i32, i32, i32
  }
}

</mosaic_0001>

<bundles_post_ra>
// kernel: resblock_forward.3
= control target key start
LH: loop header
LB: loop body
LE: loop exit
PB: predicated region body
PF: predicated region fallthrough
CT: control target
= control target key end

     0   :  { %11 = vsyncpa [#allocation4], 0  ;;  %s3207_s0 = inlined_call_operand.vmem [shape: f32[2,16,16,32], index: 0, kind: input, shape index: {}, may-alias: {0,1,2}]   ;;  %s3208_s1 = inlined_call_operand.vmem [shape: f32[2,16,16,32], index: 1, kind: input, shape index: {}, may-alias: {0,1,2}]   ;;  %s3209_s2 = inlined_call_operand.vmem [shape: f32[2,16,16,32], index: 2, kind: input, shape index: {}, may-alias: {0,1,2}]   ;;  %s3210_s3 = inlined_call_operand.vmem [shape: f32[2,3,32], index: 3, kind: input, shape index: {}]   ;;  %s3211_s4 = inlined_call_operand.vmem [shape: bf16[3,96,32], index: 4, kind: input, shape index: {}]   ;;  %s3212_s5 = inlined_call_operand.vmem [shape: f32[2,16,16,32], index: 5, kind: input, shape index: {}]   ;;  %s3213_s6 = inlined_call_operand.hbm [shape: f32[2,16,16,32], index: 6, kind: output, shape index: {}]  }
   0x1   :  { %13 = vsyncpa [#allocation4 + $0x1], 0  ;;  %s2424_s21 = smov 0   ;;  %s2426_s22 = smov 0  }
   0x2   :  { %s2428_s23 = smov 0   ;;  %s2430_s24 = smov 0  }
   0x3   :  { %s2432_s25 = smov 0   ;;  %s2434_s26 = smov 0  }
   0x4   :  { %s2436_s27 = smov 0   ;;  %s2438_s28 = smov 0  }
   0x5 LB: > { %s1808_s29 = sadd.s32 4294967295, %s2382_s28   ;;  %s1809_s30 = sadd.s32 4294967294, %s2382_s28   ;;  %s2382_s28 = sphi %s2438_s28, %s19_s28   ;;  %s2378_s27 = sphi %s2436_s27, %s3236_s27   ;;  %s2374_s26 = sphi %s2434_s26, %s3235_s26   ;;  %s2370_s25 = sphi %s2432_s25, %s3234_s25   ;;  %s2366_s24 = sphi %s2430_s24, %s3233_s24   ;;  %s2362_s23 = sphi %s2428_s23, %s3232_s23   ;;  %s2358_s22 = sphi %s2426_s22, %s3231_s22   ;;  %s2354_s21 = sphi %s2424_s21, %s3230_s21  }
   0x6   : > { %s28_s7 = sadd.s32 1, %s2374_s26  ;;  %s31_s8 = sadd.s32 1, %s2378_s27 }
   0x7   : > { %p29_p0 = scmp.ge.s32.totalorder %s28_s7, 2  ;;  %p225_p1 = scmp.ne.s32.totalorder %s2362_s23, %s2358_s22 }
   0x8   : > { %p226_p2 = scmp.eq.s32.totalorder %s1808_s29, 3  ;;  %p231_p5 = scmp.ne.s32.totalorder %s2358_s22, %s2354_s21 }
   0x9   : > { %s3238_s7 = smov (%p29_p0, %s28_s7), 0  ;;  %s3240_s8 = smov (!%p29_p0, %s31_s8), %s2378_s27 }
   0xa   : > { %s211_s9 = ssub.s32 %s2374_s26, %s3238_s7  ;;  %p2475_p3 = por %p226_p2, %p225_p1 }
   0xb   : > { %p33_p4 = scmp.ge.s32.totalorder %s3240_s8, 2  ;;  %p232_p6 = scmp.eq.s32.totalorder %s1809_s30, 3 }
   0xc   : > { %p1818_p7 = scmp.ge.s32.totalorder %s2382_s28, 1  ;;  %p328_p9 = scmp.lt.s32.totalorder %s2382_s28, 5 }
   0xd   : > { %s3242_s8 = smov (%p33_p4, %s3240_s8), 0  ;;  %p2484_p8 = por %p232_p6, %p231_p5 }
   0xe   : > { %3216 = sst [smem:[#allocation6_spill]] %s3242_s8  ;;  %s210_s12 = ssub.s32 %s2378_s27, %s3242_s8 }
   0xf   : > { %s215_s13 = sadd.s32 1, %s2362_s23  ;;  %s212_s14 = sor.u32 %s211_s9, %s210_s12 }
  0x10   : > { %p329_p10 = pnand %p1818_p7, %p328_p9  ;;  %p213_p11 = scmp.eq.s32.totalorder %s212_s14, 0 }
  0x11   : > { %s2496_s16 = sshll.u32 (!%p329_p10), %s2366_s24, 3  ;;  %p404_p12 = scmp.lt.s32.totalorder (!%p329_p10), %s2370_s25, 1  ;;  %vm677_vm2 = vcmask (!%p329_p10), 523520   ;;  %vm750_vm3 = vcmask (!%p329_p10), 261120   ;;  %vm751_vm4 = vsmask.f32 (!%p329_p10), 7938 }
  0x12   : > { %s2493_s15 = scalar_select %p213_p11, %s2362_s23, %s215_s13  }
  0x13   : > { %332 = sbr.rel (%p329_p10) target bundleno = 517 (0x205), region = 44  ;;  %p406_p13 = scmp.lt.s32.totalorder (!%p329_p10), %s2496_s16, 15  ;;  %vm2870_vm5 = vmand (!%p329_p10), %vm750_vm3, %vm751_vm4  ;;  %vm777_vm6 = vcmask (!%p329_p10), 253952   ;;  %vm778_vm7 = vsmask.f32 (!%p329_p10), 256  ;;  %vm844_vm9 = vcmask (!%p329_p10), 785920  }
  0x14   : > { %s1825_s14 = sadd.s32 (!%p329_p10), 4294967295, %s2496_s16  ;;  %s432_s9 = sadd.s32 (!%p329_p10), 8, %s2496_s16  ;;  %vm2885_vm8 = vmand (!%p329_p10), %vm777_vm6, %vm778_vm7  ;;  %vm845_vm10 = vsmask.f32 (!%p329_p10), 7424  ;;  %vm871_vm12 = vcmask (!%p329_p10), 785927   ;;  %vm1088_vm15 = vcmask (!%p329_p10), 785408  }
  0x15   : > { %p416_p0 = scmp.gt.s32.totalorder (!%p329_p10), %s1825_s14, 0  ;;  %p1826_p1 = scmp.lt.s32.totalorder (!%p329_p10), %s1825_s14, 15  ;;  %vm2908_vm11 = vmand (!%p329_p10), %vm844_vm9, %vm845_vm10  ;;  %vm872_vm13 = vsmask.f32 (!%p329_p10), 7966 }
  0x16   : > { %p2580_p2 = scmp.lt.s32.totalorder (!%p329_p10), %s432_s9, 15  ;;  %p940_p4 = scmp.gt.s32.totalorder (!%p329_p10), %s2366_s24, 0  ;;  %vm2925_vm14 = vmand (!%p329_p10), %vm871_vm12, %vm872_vm13 }
  0x17   : > { %p975_p5 = scmp.lt.s32.totalorder (!%p329_p10), %s2366_s24, 1 }
  0x1a   : > { %s405_s17 = scalar_select %p404_p12, %s2370_s25, 1 }
  0x1b   : > { %s407_s18 = scalar_select %p406_p13, %s2496_s16, 15 }
  0x1c   : > { %s2502_s19 = sshll.u32 %s405_s17, 5  ;;  %s1841_s20 = sshll.u32 %s405_s17, 2 }
  0x1d   : > { %s1821_s29 = sshll.u32 %s407_s18, 1  ;;  %s2507_s12 = scalar_lea.vmem %s3210_s3, %s1841_s20 }
  0x1e   : > { %s2510_s13 = sadd.s32 %s2502_s19, %s1821_s29  ;;  %v2513_v0 = vld [vmem:[%s2507_s12] ss:$0 sm:$0xff]  ;;  %v2518_v1 = vld [vmem:[%s2507_s12 + $0x1] ss:$0 sm:$0xff]  ;;  %s3246_s9 = smov (!%p2580_p2, %s432_s9), 15 }
  0x1f   : > { %s1823_s8 = sshll.u32 %s2510_s13, 3  ;;  %s3248_s9 = smov (!%p2580_p2, %s3246_s9), 15 }
  0x20   : > { %s2525_s30 = scalar_lea.vmem %s3207_s0, %s1823_s8  ;;  %s400_s16 = sand.u32 1, %s2358_s22  }
  0x21   : > { %v470_v2 = vld [vmem:[%s2525_s30 + $0x10] sm:$0xff]  ;;  %v471_v3 = vld [vmem:[%s2525_s30 + $0x18] sm:$0xff]  ;;  %v468_v4 = vld [vmem:[%s2525_s30] sm:$0xff]  ;;  %s417_s20 = scalar_select %p416_p0, %s1825_s14, 0 }
  0x22   : > { %v490_v5 = vmul.f32 %v2513_v0, %v470_v2  ;;  %v491_v6 = vmul.f32 %v2513_v0, %v471_v3  ;;  %v469_v7 = vld [vmem:[%s2525_s30 + $0x8] sm:$0xff]  ;;  %v488_v8 = vmul.f32 %v2513_v0, %v468_v4  ;;  %v472_v9 = vld [vmem:[%s2525_s30 + $0x20] sm:$0xff]  ;;  %v474_v24 = vld [vmem:[%s2525_s30 + $0x30] sm:$0xff] }
  0x23   : > { %v473_v10 = vld [vmem:[%s2525_s30 + $0x28] sm:$0xff]  ;;  %v489_v11 = vmul.f32 %v2513_v0, %v469_v7  ;;  %v492_v12 = vmul.f32 %v2513_v0, %v472_v9  ;;  %s3244_s20 = smov (!%p1826_p1, %s417_s20), 15  ;;  %v476_v14 = vld [vmem:[%s2525_s30 + $0x40] sm:$0xff]  ;;  %v475_v25 = vld [vmem:[%s2525_s30 + $0x38] sm:$0xff]  ;;  %v494_v35 = vmul.f32 %v2513_v0, %v474_v24 }
  0x24   : > { %v493_v13 = vmul.f32 %v2513_v0, %v473_v10  ;;  %v477_v15 = vld [vmem:[%s2525_s30 + $0x48] sm:$0xff]  ;;  %v2543_v16 = vadd.f32 %v2518_v1, %v490_v5  ;;  %v2546_v17 = vadd.f32 %v2518_v1, %v491_v6  ;;  %v2549_v18 = vadd.f32 %v2518_v1, %v488_v8  ;;  %s1831_s29 = sshll.u32 %s3244_s20, 1  ;;  %v480_v26 = vld [vmem:[%s2525_s30 + $0x60] sm:$0xff]  ;;  %v478_v60 = vld [vmem:[%s2525_s30 + $0x50] sm:$0xff]  ;;  %s2384_s20 = smov 32  }
  0x25   : > { %v496_v19 = vmul.f32 %v2513_v0, %v476_v14  ;;  %v2553_v20 = vadd.f32 %v2518_v1, %v489_v11  ;;  %v2556_v21 = vadd.f32 %v2518_v1, %v492_v12  ;;  %v497_v23 = vmul.f32 %v2513_v0, %v477_v15  ;;  %s424_s14 = sadd.s32 %s1831_s29, %s2502_s19  ;;  %v481_v55 = vld [vmem:[%s2525_s30 + $0x68] sm:$0xff]  ;;  %v479_v2 = vld [vmem:[%s2525_s30 + $0x58] sm:$0xff]  ;;  %v482_v5 = vld [vmem:[%s2525_s30 + $0x70] sm:$0xff] }
  0x26   : > { %v2559_v22 = vadd.f32 %v2518_v1, %v493_v13  ;;  %v1850_v27 = vmul.f32 -1.442695, %v2543_v16  ;;  %v1851_v28 = vmul.f32 -1.442695, %v2546_v17  ;;  %v1848_v29 = vmul.f32 -1.442695, %v2549_v18 }
  0x27   : > { %v1849_v30 = vmul.f32 -1.442695, %v2553_v20  ;;  %v1852_v31 = vmul.f32 -1.442695, %v2556_v21  ;;  %v2573_v32 = vadd.f32 %v2518_v1, %v496_v19  ;;  %s1833_s17 = sshll.u32 %s424_s14, 3  ;;  %v2577_v34 = vadd.f32 %v2518_v1, %v497_v23  ;;  %s1838_s14 = sshll.u32 %s3248_s9, 1 }
  0x28   : > { %2208 = vpow2.f32 %v1850_v27  ;;  %v1853_v33 = vmul.f32 -1.442695, %v2559_v22  ;;  %s426_s29 = scalar_lea.vmem %s3208_s1, %s1833_s17  ;;  %v495_v37 = vmul.f32 %v2513_v0, %v475_v25  ;;  %v500_v38 = vmul.f32 %v2513_v0, %v480_v26  ;;  %s441_s17 = sadd.s32 %s1838_s14, %s2502_s19  ;;  %v483_v9 = vld [vmem:[%s2525_s30 + $0x78] sm:$0xff] }
  0x29   : > { %2210 = vpow2.f32 %v1851_v28  ;;  %v1856_v36 = vmul.f32 -1.442695, %v2573_v32  ;;  %v898_v39 = vld [vmem:[%s426_s29] sm:$0xff]  ;;  %v899_v40 = vld [vmem:[%s426_s29 + $0x8] sm:$0xff]  ;;  %v1857_v41 = vmul.f32 -1.442695, %v2577_v34  ;;  %v2592_v42 = vadd.f32 %v2518_v1, %v494_v35  ;;  %s3056_s14 = scalar_lea.vmem %s3212_s5, %s1823_s8 }
  0x2a   : > { %2212 = vpow2.f32 %v1848_v29  ;;  %v900_v43 = vmul.f32 %v2513_v0, %v898_v39  ;;  %v901_v44 = vmul.f32 %v2513_v0, %v899_v40  ;;  %v2599_v45 = vadd.f32 %v2518_v1, %v495_v37  ;;  %s1840_s9 = sshll.u32 %s441_s17, 3  ;;  %s1944_s8 = sshll.u32 %s2366_s24, 4 }
  0x2b   : > { %2214 = vpow2.f32 %v1849_v30  ;;  %v1854_v46 = vmul.f32 -1.442695, %v2592_v42  ;;  %v2603_v47 = vadd.f32 %v2518_v1, %v500_v38  ;;  %v501_v63 = vmul.f32 %v2513_v0, %v481_v55  ;;  %s443_s18 = scalar_lea.vmem %s3209_s2, %s1840_s9 }
  0x2c   : > { %2216 = vpow2.f32 %v1852_v31  ;;  %v2608_v48 = vadd.f32 %v2518_v1, %v900_v43  ;;  %v2611_v49 = vadd.f32 %v2518_v1, %v901_v44  ;;  %v1855_v50 = vmul.f32 -1.442695, %v2599_v45  ;;  %v919_v23 = vld [vmem:[%s443_s18] sm:$0xff]  ;;  %v920_v35 = vld [vmem:[%s443_s18 + $0x8] sm:$0xff]  ;;  %s941_s30 = scalar_select %p940_p4, 1, 0 }
  0x2d   : > { %2218 = vpow2.f32 %v1853_v33  ;;  %v1860_v53 = vmul.f32 -1.442695, %v2603_v47  ;;  %v498_v8 = vmul.f32 %v2513_v0, %v478_v60  ;;  %v499_v12 = vmul.f32 %v2513_v0, %v479_v2  ;;  %s2752_s17 = scalar_select %p975_p5, 1, 0 }
  0x2e   : > { %2220 = vpow2.f32 %v1856_v36  ;;  %v1864_v51 = vmul.f32 -1.442695, %v2608_v48  ;;  %v1865_v52 = vmul.f32 -1.442695, %v2611_v49  ;;  %v2630_v15 = vadd.f32 %v2518_v1, %v501_v63  ;;  %s3155_s18 = scalar_lea.sflag [#allocation4], %s400_s16 }
  0x2f   : > { %2222 = vpow2.f32 %v1857_v41  ;;  %v502_v19 = vmul.f32 %v2513_v0, %v482_v5  ;;  %v503_v26 = vmul.f32 %v2513_v0, %v483_v9  ;;  %v2635_v29 = vadd.f32 %v2518_v1, %v498_v8 }
  0x30   : > { %2224 = vpow2.f32 %v1854_v46  ;;  %v2638_v33 = vadd.f32 %v2518_v1, %v499_v12  ;;  %v921_v36 = vmul.f32 %v2513_v0, %v919_v23  ;;  %v1861_v39 = vmul.f32 -1.442695, %v2630_v15 }
  0x31   : > { %2226 = vpow2.f32 %v1864_v51  ;;  %v2643_v40 = vadd.f32 %v2518_v1, %v502_v19  ;;  %v2646_v44 = vadd.f32 %v2518_v1, %v503_v26  ;;  %v922_v51 = vmul.f32 %v2513_v0, %v920_v35 }
  0x32   : > { %v2209_v54 = vpop.eup %2208  ;;  %2228 = vpow2.f32 %v1865_v52  ;;  %v2654_v55 = vadd.f32 %v2518_v1, %v921_v36 }
  0x33   : > { %v2211_v56 = vpop.eup %2210  ;;  %v574_v57 = vadd.f32 1.0, %v2209_v54  ;;  %2230 = vpow2.f32 %v1855_v50  ;;  %v1858_v50 = vmul.f32 -1.442695, %v2635_v29  ;;  %v1859_v54 = vmul.f32 -1.442695, %v2638_v33 }
  0x34   : > { %v2213_v58 = vpop.eup %2212  ;;  %v575_v59 = vadd.f32 1.0, %v2211_v56  ;;  %2232 = vpow2.f32 %v1860_v53  ;;  %v1863_v60 = vmul.f32 -1.442695, %v2646_v44  ;;  %v2664_v63 = vadd.f32 %v2518_v1, %v922_v51 }
  0x35   : > { %v2215_v61 = vpop.eup %2214  ;;  %2234 = vrcp.f32 %v574_v57  ;;  %v572_v62 = vadd.f32 1.0, %v2213_v58  ;;  %v1862_v58 = vmul.f32 -1.442695, %v2643_v40 }
  0x36   : > { %v2217_v3 = vpop.eup %2216  ;;  %2236 = vrcp.f32 %v575_v59  ;;  %v573_v4 = vadd.f32 1.0, %v2215_v61  ;;  %v1867_v9 = vmul.f32 -1.442695, %v2664_v63 }
  0x37   : > { %v2219_v6 = vpop.eup %2218  ;;  %2238 = vrcp.f32 %v572_v62  ;;  %v576_v7 = vadd.f32 1.0, %v2217_v3  ;;  %v1866_v3 = vmul.f32 -1.442695, %v2654_v55 }
  0x38   : > { %v2221_v10 = vpop.eup %2220  ;;  %2240 = vrcp.f32 %v573_v4  ;;  %v577_v11 = vadd.f32 1.0, %v2219_v6 }
  0x39   : > { %v2223_v13 = vpop.eup %2222  ;;  %2242 = vrcp.f32 %v576_v7  ;;  %v580_v14 = vadd.f32 1.0, %v2221_v10 }
  0x3a   : > { %v2225_v24 = vpop.eup %2224  ;;  %2244 = vrcp.f32 %v577_v11  ;;  %v581_v25 = vadd.f32 1.0, %v2223_v13  ;;  %v942_v11 = vstv %s941_s30  ;;  %s2385_s30 = smov 64  }
  0x3b   : > { %v2227_v27 = vpop.eup %2226  ;;  %2246 = vrcp.f32 %v580_v14  ;;  %v578_v28 = vadd.f32 1.0, %v2225_v24  ;;  %vm943_vm0 = vcmp.eq.s32.totalorder %v942_v11, 1 }
  0x3c   : > { %v2229_v30 = vpop.eup %2228  ;;  %v910_v31 = vadd.f32 1.0, %v2227_v27  ;;  %2248 = vrcp.f32 %v581_v25 }
  0x3d   : > { %v2231_v37 = vpop.eup %2230  ;;  %v911_v38 = vadd.f32 1.0, %v2229_v30  ;;  %2250 = vrcp.f32 %v578_v28 }
  0x3e   : > { %v2233_v41 = vpop.eup %2232  ;;  %2252 = vrcp.f32 %v910_v31  ;;  %v579_v43 = vadd.f32 1.0, %v2231_v37 }
  0x3f   : > { %v2235_v46 = vpop.eup %2234  ;;  %2254 = vrcp.f32 %v911_v38  ;;  %v584_v6 = vadd.f32 1.0, %v2233_v41 }
  0x40   : > { %v2237_v52 = vpop.eup %2236  ;;  %v622_v53 = vmul.f32 %v2235_v46, %v2543_v16  ;;  %2256 = vrcp.f32 %v579_v43 }
  0x41   : > { %v2239_v56 = vpop.eup %2238  ;;  %v623_v57 = vmul.f32 %v2237_v52, %v2546_v17  ;;  %2258 = vpow2.f32 %v1861_v39 }
  0x42   : > { %v2241_v59 = vpop.eup %2240  ;;  %v620_v0 = vmul.f32 %v2239_v56, %v2549_v18  ;;  %2260 = vpow2.f32 %v1858_v50 }
  0x43   : > { %v2243_v16 = vpop.eup %2242  ;;  %v2660_v61 = vpack.c.bf16 %v623_v57, %v622_v53  ;;  %v621_v62 = vmul.f32 %v2241_v59, %v2553_v20  ;;  %2262 = vpow2.f32 %v1859_v54 }
  0x44   : > { %v2245_v2 = vpop.eup %2244  ;;  %v624_v17 = vmul.f32 %v2243_v16, %v2556_v21  ;;  %2264 = vpow2.f32 %v1862_v58 }
  0x45   : > { %v2247_v18 = vpop.eup %2246  ;;  %654 = vrot.lane.b32.xlu1 %v2660_v61, %s2384_s20  ;;  %v2672_v4 = vpack.c.bf16 %v621_v62, %v620_v0  ;;  %v625_v20 = vmul.f32 %v2245_v2, %v2559_v22  ;;  %2266 = vpow2.f32 %v1863_v60  ;;  %v694_v24 = vshrl.u32 %v2660_v61, 16 }
  0x46   : > { %v2249_v1 = vpop.eup %2248  ;;  %v628_v5 = vmul.f32 %v2247_v18, %v2573_v32  ;;  %2268 = vpow2.f32 %v1866_v3 }
  0x47   : > { %v2251_v21 = vpop.eup %2250  ;;  %652 = vrot.lane.b32.xlu0 %v2672_v4, %s2384_s20  ;;  %v2678_v7 = vpack.c.bf16 %v625_v20, %v624_v17  ;;  %v629_v8 = vmul.f32 %v2249_v1, %v2577_v34  ;;  %2270 = vrcp.f32 %v584_v6  ;;  %v687_v27 = vshrl.u32 %v2672_v4, 16 }
  0x48   : > { %v2253_v10 = vpop.eup %2252  ;;  %v626_v19 = vmul.f32 %v2251_v21, %v2592_v42  ;;  %2272 = vpow2.f32 %v1867_v9  ;;  %v690_v42 = vshll.u32 %v2672_v4, 16 }
  0x49   : > { %v2255_v22 = vpop.eup %2254  ;;  %656 = vrot.lane.b32.xlu1 %v2678_v7, %s2384_s20  ;;  %v916_v32 = vmul.f32 %v2253_v10, %v2608_v48  ;;  %v2685_v12 = vpack.c.bf16 %v629_v8, %v628_v5  ;;  %v697_v48 = vshll.u32 %v2660_v61, 16  ;;  %v689_v43 = vrot.slane %v687_v27, 7  ;;  %v2193_v61 = vld [vmem:[%s3211_s4 + $0x8] sm:$0xff]  }
  0x4a   : > { %v2257_v13 = vpop.eup %2256  ;;  %v917_v14 = vmul.f32 %v2255_v22, %v2611_v49  ;;  %v701_v49 = vshrl.u32 %v2678_v7, 16  ;;  %v704_v59 = vshll.u32 %v2678_v7, 16  ;;  %v804_v11 = vrot.slane %v690_v42, 1  ;;  %v2198_v7 = vld [vmem:[%s3211_s4 + $0x50] sm:$0xff]  }
  0x4b   : > { %v2259_v34 = vpop.eup %2258  ;;  %v627_v23 = vmul.f32 %v2257_v13, %v2599_v45  ;;  %v696_v45 = vrot.slane %v694_v24, 7  ;;  %v715_v30 = vshrl.u32 %v2685_v12, 16  ;;  %v718_v60 = vshll.u32 %v2685_v12, 16 }
  0x4c   : > { %v918_v25 = vpack.c.bf16 %v917_v14, %v916_v32  ;;  %v585_v26 = vadd.f32 1.0, %v2259_v34  ;;  %v2261_v28 = vpop.eup %2260  ;;  %v703_v46 = vrot.slane %v701_v49, 7  ;;  %v2730_v18 = vor.u32 %v690_v42, %v689_v43  ;;  %v2190_v32 = vld [vmem:[%s3211_s4 + $0x30] sm:$0xff]   ;;  %v2191_v42 = vld [vmem:[%s3211_s4] sm:$0xff]  }
  0x4d   : > { %660 = vrot.lane.b32.xlu1 %v2685_v12, %s2384_s20  ;;  %v2263_v31 = vpop.eup %2262  ;;  %v2702_v36 = vpack.c.bf16 %v627_v23, %v626_v19  ;;  %v582_v37 = vadd.f32 1.0, %v2261_v28  ;;  %v717_v53 = vrot.slane %v715_v30, 7  ;;  %v2728_v3 = vor.u32 %v697_v48, %v696_v45  ;;  %1987 = vmatprep.subr.bf16.mxu1 %v2190_v32 }
  0x4e   : > { %v2700_v35 = vsel %vm943_vm0, %v918_v25, 0  ;;  %2274 = vrcp.f32 %v585_v26  ;;  %v2265_v38 = vpop.eup %2264  ;;  %v583_v41 = vadd.f32 1.0, %v2263_v31  ;;  %v2734_v20 = vor.u32 %v704_v59, %v703_v46  ;;  %1988 = vmatpush3.bf16.msra.mxu1 %v2190_v32  ;;  %2015 = vmatprep.subr.bf16.mxu0 %v2191_v42  ;;  %v2199_v32 = vld [vmem:[%s3211_s4 + $0x20] sm:$0xff]  }
  0x4f   : > { %v951_v39 = vshrl.u32 %v2700_v35, 16  ;;  %946 = vrot.lane.b32.xlu0 %v2700_v35, %s2384_s20  ;;  %v2267_v50 = vpop.eup %2266  ;;  %2276 = vrcp.f32 %v582_v37  ;;  %v586_v51 = vadd.f32 1.0, %v2265_v38  ;;  %v708_v52 = vshrl.u32 %v2702_v36, 16  ;;  %2016 = vmatpush3.bf16.msra.mxu0 %v2191_v42 }
  0x50   : > { %v954_v56 = vshll.u32 %v2700_v35, 16  ;;  %2278 = vrcp.f32 %v583_v41  ;;  %v587_v57 = vadd.f32 1.0, %v2267_v50  ;;  %v2269_v58 = vpop.eup %2268  ;;  %v711_v2 = vshll.u32 %v2702_v36, 16  ;;  %2017 = vmatprep.subr.bf16.mxu0 %v2193_v61  ;;  %v2195_v35 = vld [vmem:[%s3211_s4 + $0x10] sm:$0xff]  }
  0x51   : > { %v953_v54 = vrot.slane %v951_v39, 7  ;;  %2280 = vrcp.f32 %v586_v51  ;;  %v710_v0 = vrot.slane %v708_v52, 7  ;;  %v931_v62 = vadd.f32 1.0, %v2269_v58  ;;  %v2271_v17 = vpop.eup %2270 }
  0x52   : > { %2282 = vrcp.f32 %v587_v57  ;;  %v2273_v1 = vpop.eup %2272  ;;  %v2738_v5 = vor.u32 %v718_v60, %v717_v53  ;;  %v632_v8 = vmul.f32 %v2271_v17, %v2603_v47  ;;  %v805_v25 = vor.u32 %v804_v11, %v687_v27  ;;  %v2197_v11 = vld [vmem:[%s3211_s4 + $0x18] sm:$0xff]  }
  0x53   : > { %v2721_v16 = vor.u32 %v954_v56, %v953_v54  ;;  %658 = vrot.lane.b32.xlu0 %v2702_v36, %s2384_s20  ;;  %2284 = vrcp.f32 %v931_v62  ;;  %v2740_v6 = vor.u32 %v711_v2, %v710_v0  ;;  %v932_v21 = vadd.f32 1.0, %v2273_v1  ;;  %2018 = vmatpush3.bf16.msra.mxu0 %v2193_v61 }
  0x54   : > { %v806_v26 = vrot.slane %v697_v48, 1  ;;  %v977_v31 = vstv %s2752_s17  ;;  %v810_v43 = vrot.slane %v711_v2, 1  ;;  %v812_v17 = vrot.slane %v718_v60, 1  ;;  %2019 = vmatprep.subr.bf16.mxu0 %v2195_v35  ;;  %s3063_s17 = sshll.u32 %s400_s16, 7 }
  0x55   : > { %2286 = vrcp.f32 %v932_v21  ;;  %vm2799_vm1 = vcmp.eq.s32.totalorder %v977_v31, 1  ;;  %v2207_v31 = vld [vmem:[%s3211_s4 + $0x88] sm:$0xff]   ;;  %s3084_s13 = scalar_lea.vmem [#allocation3], %s3063_s17 }
  0x56   : > { %v807_v38 = vor.u32 %v806_v26, %v694_v24  ;;  %v808_v24 = vrot.slane %v704_v59, 1  ;;  %s1648_s9 = sshll.u32 %s3084_s13, 4  ;;  %s3139_s9 = int_to_ptr.vmem [resolvable:$true] %s1648_s9 }
  0x57   : > { %2020 = vmatpush3.bf16.msra.mxu0 %v2195_v35  ;;  %s2288_s29 = scalar_lea.vmem %s3139_s9, 2048 }
  0x58   : > { %v2275_v9 = vpop.eup %2274  ;;  %2021 = vmatprep.subr.bf16.mxu0 %v2197_v11  ;;  %p2289_p6 = scmp.ne.s32.totalorder %s3139_s9, %s2288_s29 }
  0x59   : > { %v633_v10 = vmul.f32 %v2275_v9, %v2630_v15  ;;  %v2277_v22 = vpop.eup %2276 }
  0x5a   : > { %v2279_v13 = vpop.eup %2278  ;;  %v630_v19 = vmul.f32 %v2277_v22, %v2635_v29  ;;  %p2290_p7 = pnand %p2289_p6, %p2475_p3 }
  0x5b   : > { %v2748_v14 = vpack.c.bf16 %v633_v10, %v632_v8  ;;  %v2281_v34 = vpop.eup %2280  ;;  %v631_v23 = vmul.f32 %v2279_v13, %v2638_v33  ;;  %v813_v8 = vor.u32 %v812_v17, %v715_v30  ;;  %2022 = vmatpush3.bf16.msra.mxu0 %v2197_v11  ;;  %v2200_v13 = vld [vmem:[%s3211_s4 + $0x58] sm:$0xff]  }
  0x5c   : > { %v2283_v47 = vpop.eup %2282  ;;  %v634_v15 = vmul.f32 %v2281_v34, %v2643_v40  ;;  %v2192_v40 = vld [vmem:[%s3211_s4 + $0x38] sm:$0xff]   ;;  %2023 = vmatprep.subr.bf16.mxu0 %v2199_v32  ;;  %p2291_p9 = pneg %p2290_p7 }
  0x5d   : > { %664 = vrot.lane.b32.xlu1 %v2748_v14, %s2384_s20  ;;  %v729_v29 = vshrl.u32 %v2748_v14, 16  ;;  %v2762_v33 = vpack.c.bf16 %v631_v23, %v630_v19  ;;  %v635_v28 = vmul.f32 %v2283_v47, %v2646_v44  ;;  %v2285_v4 = vpop.eup %2284  ;;  %v732_v48 = vshll.u32 %v2748_v14, 16  ;;  %1989 = vmatprep.subr.bf16.mxu1 %v2192_v40  ;;  %v2201_v23 = vld [vmem:[%s3211_s4 + $0x28] sm:$0xff]  }
  0x5e   : > { %v964_v44 = vrot.slane %v954_v56, 1  ;;  %v937_v41 = vmul.f32 %v2285_v4, %v2654_v55  ;;  %1990 = vmatpush3.bf16.msra.mxu1 %v2192_v40  ;;  %v2194_v55 = vld [vmem:[%s3211_s4 + $0x40] sm:$0xff]  }
  0x5f   : > { %v731_v27 = vrot.slane %v729_v29, 7  ;;  %662 = vrot.lane.b32.xlu0 %v2762_v33, %s2384_s20  ;;  %v2776_v45 = vpack.c.bf16 %v635_v28, %v634_v15  ;;  %v722_v37 = vshrl.u32 %v2762_v33, 16  ;;  %v2287_v50 = vpop.eup %2286  ;;  %v725_v53 = vshll.u32 %v2762_v33, 16  ;;  %1991 = vmatprep.subr.bf16.mxu1 %v2194_v55  ;;  %v2862_v15 = vld [vmem:[%s3211_s4 + $0x60] sm:$0xff]  }
  0x60   : > { %v938_v56 = vmul.f32 %v2287_v50, %v2664_v63  ;;  %v965_v58 = vor.u32 %v964_v44, %v951_v39  ;;  %v811_v63 = vor.u32 %v810_v43, %v708_v52  ;;  %v2196_v39 = vld [vmem:[%s3211_s4 + $0x48] sm:$0xff]   ;;  %v809_v52 = vor.u32 %v808_v24, %v701_v49  ;;  %2024 = vmatpush3.bf16.msra.mxu0 %v2199_v32 }
  0x61   : > { %820 = vrot.lane.b32.xlu1 %v805_v25, %s2385_s30  ;;  %v2784_v46 = vor.u32 %v732_v48, %v731_v27  ;;  %v724_v51 = vrot.slane %v722_v37, 7  ;;  %v736_v54 = vshrl.u32 %v2776_v45, 16  ;;  %v739_v62 = vshll.u32 %v2776_v45, 16  ;;  %2025 = vmatprep.subr.bf16.mxu0 %v2201_v23 }
  0x62   : > { %v939_v59 = vpack.c.bf16 %v938_v56, %v937_v41  ;;  %1992 = vmatpush3.bf16.msra.mxu1 %v2194_v55  ;;  %v816_v9 = vrot.slane %v732_v48, 1  ;;  %v814_v22 = vrot.slane %v725_v53, 1 }
  0x63   : > { %666 = vrot.lane.b32.xlu0 %v2776_v45, %s2384_s20  ;;  %v738_v0 = vrot.slane %v736_v54, 7  ;;  %v2808_v2 = vor.u32 %v725_v53, %v724_v51  ;;  %1993 = vmatprep.subr.bf16.mxu1 %v2196_v39  ;;  %v818_v34 = vrot.slane %v739_v62, 1 }
  0x64   : > { %v979_v36 = vsel %vm2799_vm1, %v939_v59, 0  ;;  %v817_v12 = vor.u32 %v816_v9, %v729_v29  ;;  %v815_v19 = vor.u32 %v814_v22, %v722_v37  ;;  %2026 = vmatpush3.bf16.msra.mxu0 %v2201_v23 }
  0x65   : > { %822 = vrot.lane.b32.xlu1 %v807_v38, %s2385_s30  ;;  %v2815_v1 = vor.u32 %v739_v62, %v738_v0  ;;  %v987_v60 = vshrl.u32 %v979_v36, 16  ;;  %v990_v21 = vshll.u32 %v979_v36, 16  ;;  %v819_v47 = vor.u32 %v818_v34, %v736_v54  ;;  %2043 = vmatprep.subr.bf16.mxu0 %v2862_v15 }
  0x66   : > { %1994 = vmatpush3.bf16.msra.mxu1 %v2196_v39 }
  0x67   : > { %966 = vrot.lane.b32.xlu0 %v965_v58, %s2385_s30  ;;  %v989_v10 = vrot.slane %v987_v60, 7  ;;  %v1000_v30 = vrot.slane %v990_v21, 1  ;;  %1995 = vmatprep.subr.bf16.mxu1 %v2198_v7 }
  0x69   : > { %826 = vrot.lane.b32.xlu1 %v811_v63, %s2385_s30  ;;  %v2838_v49 = vor.u32 %v990_v21, %v989_v10  ;;  %v1001_v14 = vor.u32 %v1000_v30, %v987_v60 }
  0x6a   : > { %1996 = vmatpush3.bf16.msra.mxu1 %v2198_v7 }
  0x6b   : > { %824 = vrot.lane.b32.xlu0 %v809_v52, %s2385_s30  ;;  %1997 = vmatprep.subr.bf16.mxu1 %v2200_v13 }
  0x6d   : > { %828 = vrot.lane.b32.xlu1 %v813_v8, %s2385_s30 }
  0x6e   : > { %1998 = vmatpush3.bf16.msra.mxu1 %v2200_v13 }
  0x6f   : > { %981 = vrot.lane.b32.xlu0 %v979_v36, %s2384_s20  ;;  %2071 = vmatprep.subr.bf16.mxu1 %v2862_v15 }
  0x71   : > { %832 = vrot.lane.b32.xlu1 %v817_v12, %s2385_s30 }
  0x73   : > { %830 = vrot.lane.b32.xlu0 %v815_v19, %s2385_s30 }
  0x75   : > { %1002 = vrot.lane.b32.xlu1 %v1001_v14, %s2385_s30 }
  0x77   : > { %834 = vrot.lane.b32.xlu0 %v819_v47, %s2385_s30 }
  0xb7   : > { %v655_v25 = vpop.permute.xlu1 %654 }
  0xb8   : > { %679 = vst.msk [vmem:[#allocation2 + $0x10] sm:$0xff] %vm677_vm2, %v655_v25 }
  0xb9   : > { %v653_v26 = vpop.permute.xlu0 %652 }
  0xba   : > { %678 = vst.msk [vmem:[#allocation2 + $0x8] sm:$0xff] %vm677_vm2, %v653_v26 }
  0xbb   : > { %v657_v29 = vpop.permute.xlu1 %656 }
  0xbc   : > { %680 = vst.msk [vmem:[#allocation2 + $0x18] sm:$0xff] %vm677_vm2, %v657_v29 }
  0xbf   : > { %v756_v28 = vld [vmem:[#allocation2 + $0x10] sm:$0xff]  ;;  %v661_v42 = vpop.permute.xlu1 %660 }
  0xc0   : > { %v757_v40 = vsel %vm2870_vm5, %v2728_v3, %v756_v28  ;;  %682 = vst.msk [vmem:[#allocation2 + $0x28] sm:$0xff] %vm677_vm2, %v661_v42 }
  0xc1   : > { %758 = vst [vmem:[#allocation2 + $0x10] sm:$0xff] %v757_v40  ;;  %v753_v4 = vld [vmem:[#allocation2 + $0x8] sm:$0xff]  ;;  %v947_v27 = vpop.permute.xlu0 %946 }
  0xc2   : > { %v754_v48 = vsel %vm2870_vm5, %v2730_v18, %v753_v4  ;;  %949 = vst.msk [vmem:[#allocation2] sm:$0xff] %vm677_vm2, %v947_v27 }
  0xc3   : > { %755 = vst [vmem:[#allocation2 + $0x8] sm:$0xff] %v754_v48  ;;  %v759_v45 = vld [vmem:[#allocation2 + $0x18] sm:$0xff] }
  0xc4   : > { %v760_v44 = vsel %vm2870_vm5, %v2734_v20, %v759_v45 }
  0xc5   : > { %761 = vst [vmem:[#allocation2 + $0x18] sm:$0xff] %v760_v44  ;;  %v659_v3 = vpop.permute.xlu0 %658 }
  0xc6   : > { %681 = vst.msk [vmem:[#allocation2 + $0x20] sm:$0xff] %vm677_vm2, %v659_v3 }
  0xc7   : > { %v765_v37 = vld [vmem:[#allocation2 + $0x28] sm:$0xff] }
  0xc8   : > { %v783_v18 = vld [vmem:[#allocation2 + $0x10] sm:$0x1]  ;;  %v766_v38 = vsel %vm2870_vm5, %v2738_v5, %v765_v37 }
  0xc9   : > { %v784_v41 = vsel %vm2885_vm8, 0, %v783_v18  ;;  %v958_v43 = vld [vmem:[#allocation2] sm:$0xff]  ;;  %767 = vst [vmem:[#allocation2 + $0x28] sm:$0xff] %v766_v38  ;;  %v2203_v38 = vld [vmem:[%s3211_s4 + $0x68] sm:$0xff]  }
  0xca   : > { %785 = vst [vmem:[#allocation2 + $0x10] sm:$0x1] %v784_v41  ;;  %v780_v20 = vld [vmem:[#allocation2 + $0x8] sm:$0x1]  ;;  %v959_v50 = vsel %vm2870_vm5, %v2721_v16, %v958_v43 }
  0xcb   : > { %v781_v51 = vsel %vm2885_vm8, 0, %v780_v20  ;;  %960 = vst [vmem:[#allocation2] sm:$0xff] %v959_v50 }
  0xcc   : > { %782 = vst [vmem:[#allocation2 + $0x8] sm:$0x1] %v781_v51  ;;  %v786_v53 = vld [vmem:[#allocation2 + $0x18] sm:$0x1] }
  0xcd   : > { %v787_v5 = vsel %vm2885_vm8, 0, %v786_v53  ;;  %v762_v54 = vld [vmem:[#allocation2 + $0x20] sm:$0xff] }
  0xce   : > { %788 = vst [vmem:[#allocation2 + $0x18] sm:$0x1] %v787_v5  ;;  %v763_v61 = vsel %vm2870_vm5, %v2740_v6, %v762_v54 }
  0xcf   : > { %764 = vst [vmem:[#allocation2 + $0x20] sm:$0xff] %v763_v61  ;;  %v665_v55 = vpop.permute.xlu1 %664 }
  0xd0   : > { %v792_v16 = vld [vmem:[#allocation2 + $0x28] sm:$0x1]  ;;  %684 = vst.msk [vmem:[#allocation2 + $0x38] sm:$0xff] %vm677_vm2, %v665_v55 }
  0xd1   : > { %v793_v24 = vsel %vm2885_vm8, 0, %v792_v16  ;;  %v663_v58 = vpop.permute.xlu0 %662  ;;  %v850_v63 = vld [vmem:[#allocation2 + $0x10] sm:$0xff] }
  0xd2   : > { %v961_v57 = vld [vmem:[#allocation2] sm:$0x1]  ;;  %794 = vst [vmem:[#allocation2 + $0x28] sm:$0x1] %v793_v24  ;;  %683 = vst.msk [vmem:[#allocation2 + $0x30] sm:$0xff] %vm677_vm2, %v663_v58 }
  0xd3   : > { %v962_v6 = vsel %vm2885_vm8, 0, %v961_v57  ;;  %v821_v0 = vpop.permute.xlu1 %820  ;;  %v847_v62 = vld [vmem:[#allocation2 + $0x8] sm:$0xff] }
  0xd4   : > { %963 = vst [vmem:[#allocation2] sm:$0x1] %v962_v6  ;;  %v848_v59 = vsel %vm2908_vm11, %v821_v0, %v847_v62  ;;  %v2204_v62 = vld [vmem:[%s3211_s4 + $0x70] sm:$0xff]  }
  0xd5   : > { %849 = vst [vmem:[#allocation2 + $0x8] sm:$0xff] %v848_v59  ;;  %v667_v35 = vpop.permute.xlu0 %666  ;;  %v853_v30 = vld [vmem:[#allocation2 + $0x18] sm:$0xff] }
  0xd6   : > { %v789_v17 = vld [vmem:[#allocation2 + $0x20] sm:$0x1]  ;;  %685 = vst.msk [vmem:[#allocation2 + $0x40] sm:$0xff] %vm677_vm2, %v667_v35  ;;  %v2205_v59 = vld [vmem:[%s3211_s4 + $0x78] sm:$0xff]  }
  0xd7   : > { %v790_v39 = vsel %vm2885_vm8, 0, %v789_v17  ;;  %v771_v36 = vld [vmem:[#allocation2 + $0x38] sm:$0xff]  ;;  %v823_v52 = vpop.permute.xlu1 %822 }
  0xd8   : > { %791 = vst [vmem:[#allocation2 + $0x20] sm:$0x1] %v790_v39  ;;  %v772_v60 = vsel %vm2870_vm5, %v2784_v46, %v771_v36  ;;  %v851_v21 = vsel %vm2908_vm11, %v823_v52, %v850_v63 }
  0xd9   : > { %773 = vst [vmem:[#allocation2 + $0x38] sm:$0xff] %v772_v60  ;;  %852 = vst [vmem:[#allocation2 + $0x10] sm:$0xff] %v851_v21  ;;  %v768_v8 = vld [vmem:[#allocation2 + $0x30] sm:$0xff]  ;;  %v967_v10 = vpop.permute.xlu0 %966  ;;  %v859_v13 = vld [vmem:[#allocation2 + $0x28] sm:$0xff] }
  0xda   : > { %v769_v11 = vsel %vm2870_vm5, %v2808_v2, %v768_v8  ;;  %v2206_v21 = vld [vmem:[%s3211_s4 + $0x80] sm:$0xff]  }
  0xdb   : > { %v969_v7 = vld [vmem:[#allocation2] sm:$0xff]  ;;  %v827_v22 = vpop.permute.xlu1 %826  ;;  %770 = vst [vmem:[#allocation2 + $0x30] sm:$0xff] %v769_v11 }
  0xdc   : > { %v970_v46 = vsel %vm2908_vm11, %v967_v10, %v969_v7  ;;  %v874_v12 = vld [vmem:[#allocation2 + $0x8] sm:$0x80] }
  0xdd   : > { %971 = vst [vmem:[#allocation2] sm:$0xff] %v970_v46  ;;  %v875_v32 = vsel %vm2925_vm14, 0, %v874_v12  ;;  %v774_v19 = vld [vmem:[#allocation2 + $0x40] sm:$0xff]  ;;  %v825_v34 = vpop.permute.xlu0 %824 }
  0xde   : > { %876 = vst [vmem:[#allocation2 + $0x8] sm:$0x80] %v875_v32  ;;  %v775_v2 = vsel %vm2870_vm5, %v2815_v1, %v774_v19  ;;  %v854_v14 = vsel %vm2908_vm11, %v825_v34, %v853_v30 }
  0xdf   : > { %v856_v23 = vld [vmem:[#allocation2 + $0x20] sm:$0xff]  ;;  %v829_v47 = vpop.permute.xlu1 %828  ;;  %776 = vst [vmem:[#allocation2 + $0x40] sm:$0xff] %v775_v2  ;;  %855 = vst [vmem:[#allocation2 + $0x18] sm:$0xff] %v854_v14 }
  0xe0   : > { %v798_v25 = vld [vmem:[#allocation2 + $0x38] sm:$0x1]  ;;  %v877_v26 = vld [vmem:[#allocation2 + $0x10] sm:$0x80]  ;;  %v857_v29 = vsel %vm2908_vm11, %v827_v22, %v856_v23  ;;  %v860_v28 = vsel %vm2908_vm11, %v829_v47, %v859_v13 }
  0xe1   : > { %v799_v42 = vsel %vm2885_vm8, 0, %v798_v25  ;;  %v878_v1 = vsel %vm2925_vm14, 0, %v877_v26  ;;  %858 = vst [vmem:[#allocation2 + $0x20] sm:$0xff] %v857_v29  ;;  %861 = vst [vmem:[#allocation2 + $0x28] sm:$0xff] %v860_v28  ;;  %v982_v40 = vpop.permute.xlu0 %981 }
  0xe2   : > { %800 = vst [vmem:[#allocation2 + $0x38] sm:$0x1] %v799_v42  ;;  %879 = vst [vmem:[#allocation2 + $0x10] sm:$0x80] %v878_v1  ;;  %v795_v4 = vld [vmem:[#allocation2 + $0x30] sm:$0x1] }
  0xe3   : > { %985 = vst.msk [vmem:[#allocation2 + $0x48] sm:$0xff] %vm677_vm2, %v982_v40  ;;  %v796_v27 = vsel %vm2885_vm8, 0, %v795_v4  ;;  %v833_v18 = vpop.permute.xlu1 %832 }
  0xe4   : > { %v972_v48 = vld [vmem:[#allocation2] sm:$0x80]  ;;  %797 = vst [vmem:[#allocation2 + $0x30] sm:$0x1] %v796_v27 }
  0xe5   : > { %v973_v45 = vsel %vm2925_vm14, 0, %v972_v48  ;;  %v1031_v44 = vld [vmem:[#allocation2 + $0x8] sm:$0xff]  ;;  %v831_v51 = vpop.permute.xlu0 %830 }
  0xe6   : > { %974 = vst [vmem:[#allocation2] sm:$0x80] %v973_v45  ;;  %1999 = vmatprep.mubr.msk.bf16.mxu1 %vm1088_vm15, %v1031_v44  ;;  %v801_v3 = vld [vmem:[#allocation2 + $0x40] sm:$0x1]  ;;  %v880_v37 = vld [vmem:[#allocation2 + $0x18] sm:$0x80] }
  0xe7   : > { %v802_v41 = vsel %vm2885_vm8, 0, %v801_v3  ;;  %v881_v43 = vsel %vm2925_vm14, 0, %v880_v37  ;;  %v1003_v7 = vpop.permute.xlu1 %1002 }
  0xe8   : > { %v883_v20 = vld [vmem:[#allocation2 + $0x20] sm:$0x80]  ;;  %v886_v50 = vld [vmem:[#allocation2 + $0x28] sm:$0x80]  ;;  %803 = vst [vmem:[#allocation2 + $0x40] sm:$0x1] %v802_v41 }
  0xe9   : > { %882 = vst [vmem:[#allocation2 + $0x18] sm:$0x80] %v881_v43  ;;  %v884_v53 = vsel %vm2925_vm14, 0, %v883_v20  ;;  %v887_v5 = vsel %vm2925_vm14, 0, %v886_v50  ;;  %v865_v54 = vld [vmem:[#allocation2 + $0x38] sm:$0xff]  ;;  %v2966_v61 = vld [vmem:[#allocation2 + $0x10] sm:$0xff]  ;;  %v835_v0 = vpop.permute.xlu0 %834 }
  0xea   : > { %v994_v55 = vld [vmem:[#allocation2 + $0x48] sm:$0xff]  ;;  %885 = vst [vmem:[#allocation2 + $0x20] sm:$0x80] %v884_v53  ;;  %888 = vst [vmem:[#allocation2 + $0x28] sm:$0x80] %v887_v5  ;;  %v866_v16 = vsel %vm2908_vm11, %v833_v18, %v865_v54  ;;  %2000 = vmatmul.mubr.msk.bf16.vlgmr.msra.gmra.mrb[0].mxu1 %vm1088_vm15, %v2966_v61 }
  0xeb   : > { %v995_v24 = vsel %vm2870_vm5, %v2838_v49, %v994_v55  ;;  %867 = vst [vmem:[#allocation2 + $0x38] sm:$0xff] %v866_v16  ;;  %2077 = vmatpush3.bf16.msra.mxu1 %v2862_v15  ;;  %v862_v57 = vld [vmem:[#allocation2 + $0x30] sm:$0xff]  ;;  %v3059_v16 = vld [vmem:[%s2507_s12 + $0x2] ss:$0 sm:$0xff]  ;;  %s1938_s12 = sshll.u32 %s2370_s25, 5 }
  0xec   : > { %996 = vst [vmem:[#allocation2 + $0x48] sm:$0xff] %v995_v24  ;;  %2072 = vmatprep.subr.bf16.mxu1 %v2203_v38  ;;  %v863_v58 = vsel %vm2908_vm11, %v831_v51, %v862_v57  ;;  %s3100_s24 = sadd.s32 %s1944_s8, %s1938_s12 }
  0xed   : > { %v1011_v6 = vld [vmem:[#allocation2] sm:$0xff]  ;;  %864 = vst [vmem:[#allocation2 + $0x30] sm:$0xff] %v863_v58  ;;  %s1939_s25 = sshll.u32 %s3100_s24, 7 }
  0xee   : > { %2027 = vmatprep.mubr.msk.bf16.mxu0 %vm1088_vm15, %v1011_v6  ;;  %s3137_s30 = scalar_lea.hbm %s3213_s6, %s1939_s25 }
  0xef   : > { %2028 = vmatmul.mubr.msk.bf16.vlgmr.msra.gmra.mrb[0].mxu0 %vm1088_vm15, %v1031_v44  ;;  %2078 = vmatpush3.bf16.msra.mxu1 %v2203_v38  ;;  %v868_v49 = vld [vmem:[#allocation2 + $0x40] sm:$0xff] }
  0xf0   : > { %v2983_v33 = vld [vmem:[#allocation2 + $0x18] sm:$0xff]  ;;  %2044 = vmatpush3.bf16.msra.mxu0 %v2862_v15  ;;  %2031 = vmatprep.mubr.msk.bf16.mxu0 %vm1088_vm15, %v2966_v61  ;;  %v869_v63 = vsel %vm2908_vm11, %v835_v0, %v868_v49  ;;  %v1592_v49 = vld [vmem:[%s3056_s14 + $0x50] sm:$0xff] }
  0xf1   : > { %2003 = vmatprep.mubr.msk.bf16.mxu1 %vm1088_vm15, %v2983_v33  ;;  %v1034_v17 = vld [vmem:[#allocation2 + $0x20] sm:$0xff]  ;;  %2045 = vmatprep.subr.bf16.mxu0 %v2203_v38  ;;  %870 = vst [vmem:[#allocation2 + $0x40] sm:$0xff] %v869_v63  ;;  %v1035_v15 = vld [vmem:[#allocation2 + $0x28] sm:$0xff]  ;;  %v1584_v63 = vld [vmem:[%s3056_s14 + $0x10] sm:$0xff] }
  0xf2   : > { %v892_v35 = vld [vmem:[#allocation2 + $0x38] sm:$0x80]  ;;  %2004 = vmatmul.mubr.msk.bf16.gmra.mrb[4].mxu1 %vm1088_vm15, %v1034_v17  ;;  %2073 = vmatprep.subr.bf16.mxu1 %v2204_v62 }
  0xf3   : > { %v997_v39 = vld [vmem:[#allocation2 + $0x48] sm:$0x1]  ;;  %v893_v36 = vsel %vm2925_vm14, 0, %v892_v35  ;;  %2007 = vmatprep.mubr.msk.bf16.mxu1 %vm1088_vm15, %v1035_v15  ;;  %2079 = vmatpush3.bf16.msra.mxu1 %v2204_v62 }
  0xf4   : > { %v998_v52 = vsel %vm2885_vm8, 0, %v997_v39  ;;  %894 = vst [vmem:[#allocation2 + $0x38] sm:$0x80] %v893_v36  ;;  %2046 = vmatpush3.bf16.msra.mxu0 %v2203_v38  ;;  %2074 = vmatprep.subr.bf16.mxu1 %v2205_v59  ;;  %v889_v60 = vld [vmem:[#allocation2 + $0x30] sm:$0x80]  ;;  %v1590_v39 = vld [vmem:[%s3056_s14 + $0x40] sm:$0xff] }
  0xf5   : > { %999 = vst [vmem:[#allocation2 + $0x48] sm:$0x1] %v998_v52  ;;  %2047 = vmatprep.subr.bf16.mxu0 %v2204_v62  ;;  %v890_v8 = vsel %vm2925_vm14, 0, %v889_v60 }
  0xf6   : > { %891 = vst [vmem:[#allocation2 + $0x30] sm:$0x80] %v890_v8 }
  0xf7   : > { %2032 = vmatmul.mubr.msk.bf16.gmra.mrb[4].mxu0 %vm1088_vm15, %v2983_v33  ;;  %2080 = vmatpush3.bf16.msra.mxu1 %v2205_v59 }
  0xf8   : > { %2035 = vmatprep.mubr.msk.bf16.mxu0 %vm1088_vm15, %v1034_v17  ;;  %2048 = vmatpush3.bf16.msra.mxu0 %v2204_v62  ;;  %v895_v10 = vld [vmem:[#allocation2 + $0x40] sm:$0x80] }
  0xf9   : > { %2049 = vmatprep.subr.bf16.mxu0 %v2205_v59  ;;  %2075 = vmatprep.subr.bf16.mxu1 %v2206_v21  ;;  %v896_v11 = vsel %vm2925_vm14, 0, %v895_v10 }
  0xfa   : > { %897 = vst [vmem:[#allocation2 + $0x40] sm:$0x80] %v896_v11  ;;  %v1593_v11 = vld [vmem:[%s3056_s14 + $0x58] sm:$0xff] }
  0xfb   : > { %2081 = vmatpush3.bf16.msra.mxu1 %v2206_v21  ;;  %v1037_v30 = vld [vmem:[#allocation2 + $0x38] sm:$0xff] }
  0xfc   : > { %v1005_v22 = vld [vmem:[#allocation2 + $0x48] sm:$0xff]  ;;  %2050 = vmatpush3.bf16.msra.mxu0 %v2205_v59  ;;  %2076 = vmatprep.subr.bf16.mxu1 %v2207_v31 }
  0xfd   : > { %v1006_v46 = vsel %vm2908_vm11, %v1003_v7, %v1005_v22  ;;  %2051 = vmatprep.subr.bf16.mxu0 %v2206_v21  ;;  %v1036_v12 = vld [vmem:[#allocation2 + $0x30] sm:$0xff] }
  0xfe   : > { %1007 = vst [vmem:[#allocation2 + $0x48] sm:$0xff] %v1006_v46  ;;  %2008 = vmatmul.mubr.msk.bf16.gmra.mrb[8].mxu1 %vm1088_vm15, %v1036_v12  ;;  %v1585_v46 = vld [vmem:[%s3056_s14 + $0x18] sm:$0xff] }
  0xff   : > { %2036 = vmatmul.mubr.msk.bf16.gmra.mrb[8].mxu0 %vm1088_vm15, %v1035_v15  ;;  %2011 = vmatprep.mubr.msk.bf16.mxu1 %vm1088_vm15, %v1037_v30 }
 0x100   : > { %2039 = vmatprep.mubr.msk.bf16.mxu0 %vm1088_vm15, %v1036_v12  ;;  %2052 = vmatpush3.bf16.msra.mxu0 %v2206_v21  ;;  %v1582_v21 = vld [vmem:[%s3056_s14] sm:$0xff] }
 0x101   : > { %2082 = vmatpush3.bf16.msra.mxu1 %v2207_v31  ;;  %2053 = vmatprep.subr.bf16.mxu0 %v2207_v31  ;;  %v1038_v13 = vld [vmem:[#allocation2 + $0x40] sm:$0xff] }
 0x104   : > { %2054 = vmatpush3.bf16.msra.mxu0 %v2207_v31 }
 0x105   : > { %v1008_v32 = vld [vmem:[#allocation2 + $0x48] sm:$0x80] }
 0x106   : > { %v1009_v56 = vsel %vm2925_vm14, 0, %v1008_v32  ;;  %2012 = vmatmul.mubr.msk.bf16.gmra.mrb[12].mxu1 %vm1088_vm15, %v1038_v13 }
 0x107   : > { %1010 = vst [vmem:[#allocation2 + $0x48] sm:$0x80] %v1009_v56  ;;  %2040 = vmatmul.mubr.msk.bf16.gmra.mrb[12].mxu0 %vm1088_vm15, %v1037_v30  ;;  %2063 = vmatprep.mubr.msk.bf16.mxu1 %vm1088_vm15, %v1036_v12  ;;  %v1591_v56 = vld [vmem:[%s3056_s14 + $0x48] sm:$0xff] }
 0x108   : > { %2055 = vmatprep.mubr.msk.bf16.mxu0 %vm1088_vm15, %v2966_v61 }
 0x10e   : > { %2064 = vmatmul.mubr.msk.bf16.vlgmr.msra.gmra.mrb[16].mxu1 %vm1088_vm15, %v1037_v30  ;;  %v1375_v9 = vld [vmem:[#allocation2 + $0x48] sm:$0xff] }
 0x10f   : > { %2056 = vmatmul.mubr.msk.bf16.vlgmr.msra.gmra.mrb[0].mxu0 %vm1088_vm15, %v2983_v33  ;;  %2067 = vmatprep.mubr.msk.bf16.mxu1 %vm1088_vm15, %v1038_v13 }
 0x110   : > { %2059 = vmatprep.mubr.msk.bf16.mxu0 %vm1088_vm15, %v1034_v17 }
 0x116   : > { %2068 = vmatmul.mubr.msk.bf16.gmra.mrb[20].mxu1 %vm1088_vm15, %v1375_v9 }
 0x117   : > { %2060 = vmatmul.mubr.msk.bf16.gmra.mrb[4].mxu0 %vm1088_vm15, %v1035_v15 }
 0x1bd   : > { %v2001_v19 = vpop.f32.mrb[0].mxu1 }
 0x1be   : > { %v1147_v34 = vpop.f32.mrb[1].mxu1 }
 0x1bf   : > { %v2002_v2 = vpop.f32.mrb[2].mxu1 }
 0x1c0   : > { %v1150_v14 = vpop.f32.mrb[3].mxu1 }
 0x1c5   : > { %v3034_v23 = vpop.f32.mrb[4].mxu1 }
 0x1c6   : > { %v3036_v47 = vpop.f32.mrb[5].mxu1 }
 0x1c7   : > { %v3038_v25 = vpop.f32.mrb[6].mxu1 }
 0x1c8   : > { %v3040_v26 = vpop.f32.mrb[7].mxu1 }
 0x1d1   : > { %v2009_v29 = vpop.f32.mrb[8].mxu1 }
 0x1d2   : > { %v2037_v28 = vpop.f32.mrb[8].mxu0  ;;  %v1179_v42 = vpop.f32.mrb[9].mxu1 }
 0x1d3   : > { %v1345_v1 = vadd.f32 %v2037_v28, %v2009_v29  ;;  %v1336_v40 = vpop.f32.mrb[9].mxu0  ;;  %v2010_v4 = vpop.f32.mrb[10].mxu1 }
 0x1d4   : > { %v1337_v27 = vadd.f32 %v1336_v40, %v1179_v42  ;;  %v2038_v48 = vpop.f32.mrb[10].mxu0  ;;  %v1182_v45 = vpop.f32.mrb[11].mxu1 }
 0x1d5   : > { %v1348_v44 = vadd.f32 %v2038_v48, %v2010_v4  ;;  %v1339_v3 = vpop.f32.mrb[11].mxu0 }
 0x1d6   : > { %v1340_v37 = vadd.f32 %v1339_v3, %v1182_v45 }
 0x1d9   : > { %v2013_v18 = vpop.f32.mrb[12].mxu1 }
 0x1da   : > { %v2041_v38 = vpop.f32.mrb[12].mxu0  ;;  %v1195_v41 = vpop.f32.mrb[13].mxu1 }
 0x1db   : > { %v3042_v43 = vadd.f32 %v2041_v38, %v2013_v18  ;;  %v1352_v20 = vpop.f32.mrb[13].mxu0  ;;  %v2014_v50 = vpop.f32.mrb[14].mxu1 }
 0x1dc   : > { %v3044_v51 = vadd.f32 %v1352_v20, %v1195_v41  ;;  %v2042_v53 = vpop.f32.mrb[14].mxu0  ;;  %v1198_v5 = vpop.f32.mrb[15].mxu1  ;;  %v1588_v41 = vld [vmem:[%s3056_s14 + $0x30] sm:$0xff] }
 0x1dd   : > { %v3046_v54 = vadd.f32 %v2042_v53, %v2014_v50  ;;  %v1355_v61 = vpop.f32.mrb[15].mxu0  ;;  %v1594_v50 = vld [vmem:[%s3056_s14 + $0x60] sm:$0xff] }
 0x1de   : > { %v3048_v55 = vadd.f32 %v1355_v61, %v1198_v5 }
 0x1e1   : > { %v2065_v24 = vpop.f32.mrb[16].mxu1 }
 0x1e2   : > { %v2057_v57 = vpop.f32.mrb[0].mxu0  ;;  %v1556_v58 = vadd.f32 %v2065_v24, %v1345_v1  ;;  %v1515_v6 = vpop.f32.mrb[17].mxu1  ;;  %v1586_v24 = vld [vmem:[%s3056_s14 + $0x20] sm:$0xff] }
 0x1e3   : > { %v2083_v0 = vadd.f32 %v2057_v57, %v2001_v19  ;;  %v1483_v62 = vpop.f32.mrb[1].mxu0  ;;  %v1554_v33 = vadd.f32 %v1515_v6, %v1337_v27  ;;  %v2066_v59 = vpop.f32.mrb[18].mxu1  ;;  %v1583_v19 = vld [vmem:[%s3056_s14 + $0x8] sm:$0xff] }
 0x1e4   : > { %v2084_v17 = vadd.f32 %v1483_v62, %v1147_v34  ;;  %v2058_v35 = vpop.f32.mrb[2].mxu0  ;;  %v1576_v15 = vadd.f32 %v3059_v16, %v1556_v58  ;;  %v1557_v36 = vadd.f32 %v2066_v59, %v1348_v44  ;;  %v1518_v52 = vpop.f32.mrb[19].mxu1  ;;  %v1589_v62 = vld [vmem:[%s3056_s14 + $0x38] sm:$0xff] }
 0x1e5   : > { %v1568_v60 = vadd.f32 %v2083_v0, %v3059_v16  ;;  %v2085_v8 = vadd.f32 %v2058_v35, %v2002_v2  ;;  %v1486_v31 = vpop.f32.mrb[3].mxu0  ;;  %v1574_v10 = vadd.f32 %v3059_v16, %v1554_v33  ;;  %v1555_v7 = vadd.f32 %v1518_v52, %v1340_v37  ;;  %v1596_v37 = vld [vmem:[%s3056_s14 + $0x70] sm:$0xff] }
 0x1e6   : > { %v1566_v22 = vadd.f32 %v2084_v17, %v3059_v16  ;;  %v2086_v12 = vadd.f32 %v1486_v31, %v1150_v14  ;;  %v1608_v30 = vadd.f32 %v1592_v49, %v1576_v15  ;;  %v1577_v32 = vadd.f32 %v3059_v16, %v1557_v36 }
 0x1e7   : > { %v1600_v13 = vadd.f32 %v1584_v63, %v1568_v60  ;;  %v1569_v9 = vadd.f32 %v2085_v8, %v3059_v16  ;;  %v1606_v34 = vadd.f32 %v1590_v39, %v1574_v10  ;;  %v1575_v2 = vadd.f32 %v3059_v16, %v1555_v7 }
 0x1e8   : > { %v1598_v29 = vadd.f32 %v1582_v21, %v1566_v22  ;;  %v1567_v28 = vadd.f32 %v2086_v12, %v3059_v16  ;;  %1625 = vst.msk [vmem:[%s3084_s13 + $0x50] sm:$0xff] %vm750_vm3, %v1608_v30  ;;  %v1609_v14 = vadd.f32 %v1593_v11, %v1577_v32 }
 0x1e9   : > { %1617 = vst.msk [vmem:[%s3084_s13 + $0x10] sm:$0xff] %vm750_vm3, %v1600_v13  ;;  %v1601_v42 = vadd.f32 %v1585_v46, %v1569_v9  ;;  %1623 = vst.msk [vmem:[%s3084_s13 + $0x40] sm:$0xff] %vm750_vm3, %v1606_v34  ;;  %v1607_v1 = vadd.f32 %v1591_v56, %v1575_v2  ;;  %v2069_v4 = vpop.f32.mrb[20].mxu1 }
 0x1ea   : > { %1615 = vst.msk [vmem:[%s3084_s13] sm:$0xff] %vm750_vm3, %v1598_v29  ;;  %v1599_v40 = vadd.f32 %v1583_v19, %v1567_v28  ;;  %v2061_v27 = vpop.f32.mrb[4].mxu0  ;;  %1626 = vst.msk [vmem:[%s3084_s13 + $0x58] sm:$0xff] %vm750_vm3, %v1609_v14  ;;  %v1560_v48 = vadd.f32 %v2069_v4, %v3042_v43  ;;  %v1531_v45 = vpop.f32.mrb[21].mxu1 }
 0x1eb   : > { %1618 = vst.msk [vmem:[%s3084_s13 + $0x18] sm:$0xff] %vm750_vm3, %v1601_v42  ;;  %v2087_v44 = vadd.f32 %v2061_v27, %v3034_v23  ;;  %v1499_v3 = vpop.f32.mrb[5].mxu0  ;;  %1624 = vst.msk [vmem:[%s3084_s13 + $0x48] sm:$0xff] %vm750_vm3, %v1607_v1  ;;  %v1558_v18 = vadd.f32 %v1531_v45, %v3044_v51  ;;  %v2070_v38 = vpop.f32.mrb[22].mxu1 }
 0x1ec   : > { %1616 = vst.msk [vmem:[%s3084_s13 + $0x8] sm:$0xff] %vm750_vm3, %v1599_v40  ;;  %v2088_v43 = vadd.f32 %v1499_v3, %v3036_v47  ;;  %v2062_v20 = vpop.f32.mrb[6].mxu0  ;;  %v1580_v23 = vadd.f32 %v3059_v16, %v1560_v48  ;;  %v1561_v53 = vadd.f32 %v2070_v38, %v3046_v54  ;;  %v1534_v5 = vpop.f32.mrb[23].mxu1  ;;  %v1597_v47 = vld [vmem:[%s3056_s14 + $0x78] sm:$0xff] }
 0x1ed   : > { %v1572_v61 = vadd.f32 %v2087_v44, %v3059_v16  ;;  %v2089_v51 = vadd.f32 %v2062_v20, %v3038_v25  ;;  %v1502_v57 = vpop.f32.mrb[7].mxu0  ;;  %v1578_v58 = vadd.f32 %v3059_v16, %v1558_v18  ;;  %v1559_v6 = vadd.f32 %v1534_v5, %v3048_v55  ;;  %v1595_v25 = vld [vmem:[%s3056_s14 + $0x68] sm:$0xff] }
 0x1ee   : > { %v1570_v0 = vadd.f32 %v2088_v43, %v3059_v16  ;;  %v2090_v54 = vadd.f32 %v1502_v57, %v3040_v26  ;;  %v1612_v49 = vadd.f32 %v1596_v37, %v1580_v23  ;;  %v1581_v33 = vadd.f32 %v3059_v16, %v1561_v53  ;;  %v1587_v55 = vld [vmem:[%s3056_s14 + $0x28] sm:$0xff]  ;;  %s2386_s14 = smov [#allocation3]  }
 0x1ef   : > { %v1604_v59 = vadd.f32 %v1588_v41, %v1572_v61  ;;  %v1573_v63 = vadd.f32 %v2089_v51, %v3059_v16  ;;  %v1610_v17 = vadd.f32 %v1594_v50, %v1578_v58  ;;  %v1579_v35 = vadd.f32 %v3059_v16, %v1559_v6  ;;  %s2292_s17 = sshll.u32 %s2386_s14, 4  ;;  %s2293_s17 = int_to_ptr.vmem [resolvable:$false] %s2292_s17 }
 0x1f0   : > { %v1602_v26 = vadd.f32 %v1586_v24, %v1570_v0  ;;  %v1571_v15 = vadd.f32 %v2090_v54, %v3059_v16  ;;  %1629 = vst.msk [vmem:[%s3084_s13 + $0x70] sm:$0xff] %vm750_vm3, %v1612_v49  ;;  %v1613_v39 = vadd.f32 %v1597_v47, %v1581_v33  ;;  %s2294_s8 = scalar_lea.vmem %s2293_s17, 4096  ;;  %p2295_p10 = scmp.lt.s32.totalorder %s3139_s9, %s2293_s17 }
 0x1f1   : > { %1621 = vst.msk [vmem:[%s3084_s13 + $0x30] sm:$0xff] %vm750_vm3, %v1604_v59  ;;  %v1605_v36 = vadd.f32 %v1589_v62, %v1573_v63  ;;  %1627 = vst.msk [vmem:[%s3084_s13 + $0x60] sm:$0xff] %vm750_vm3, %v1610_v17  ;;  %v1611_v52 = vadd.f32 %v1595_v25, %v1579_v35  ;;  %p2296_p11 = scmp.lt.s32.totalorder %s2294_s8, %s2288_s29 }
 0x1f2   : > { %1619 = vst.msk [vmem:[%s3084_s13 + $0x20] sm:$0xff] %vm750_vm3, %v1602_v26  ;;  %v1603_v16 = vadd.f32 %v1587_v55, %v1571_v15  ;;  %1630 = vst.msk [vmem:[%s3084_s13 + $0x78] sm:$0xff] %vm750_vm3, %v1613_v39 }
 0x1f3   : > { %1622 = vst.msk [vmem:[%s3084_s13 + $0x38] sm:$0xff] %vm750_vm3, %v1605_v36  ;;  %1628 = vst.msk [vmem:[%s3084_s13 + $0x68] sm:$0xff] %vm750_vm3, %v1611_v52  ;;  %p2297_p12 = por %p2296_p11, %p2295_p10 }
 0x1f4   : > { %1620 = vst.msk [vmem:[%s3084_s13 + $0x28] sm:$0xff] %vm750_vm3, %v1603_v16 }
 0x1f5   : > { %p2298_p13 = pnand %p2297_p12, %p2291_p9 }
 0x1f7   : > { %2301 = shalt.err (!%p2298_p13)
}
 0x1f8   : > { %s2302_s16 = scalar_lea.hbm %s3137_s30, 2048  ;;  %s2306_s24 = scalar_lea.hbm %s3213_s6, 8192 }
 0x1f9   : > { %p2303_p0 = scmp.ne.s32.totalorder %s3137_s30, %s2302_s16  ;;  %p2307_p4 = scmp.lt.u32.totalorder %s3137_s30, %s3213_s6 }
 0x1fa   : > { %p2308_p5 = scmp.lt.u32.totalorder %s2306_s24, %s2302_s16  ;;  %p2310_p7 = scmp.lt.u32.totalorder %s2302_s16, %s3137_s30 }
 0x1fb   : > { %p2304_p1 = pnand %p2303_p0, %p2475_p3 }
 0x1fc   : > { %p2309_p6 = por %p2308_p5, %p2307_p4 }
 0x1fd   : > { %p2305_p2 = pneg %p2304_p1 }
 0x1fe   : > { %p2311_p9 = por %p2310_p7, %p2309_p6 }
 0x200   : > { %p2312_p10 = pnand %p2311_p9, %p2305_p2 }
 0x202   : > { %2315 = shalt.err (!%p2312_p10)
}
 0x203   : > { %s2387_s19 = smov 128   ;;  %s2388_s29 = smov 8  }
 0x204   : > { %2115 = dma.vmem_to_hbm [thread:$0]  (%p2475_p3), %s3139_s9, 2048, %s3137_s30, %s3155_s18, %s2387_s19, %s2387_s19, %s2388_s29  }
 0x205 PF: > { %p2121_p11 = scmp.ge.s32.totalorder %s2382_s28, 2  ;;  %s1663_s14 = sand.u32 1, %s2354_s21  }
 0x206   : > { %s1664_s17 = scalar_lea.sflag [#allocation4], %s1663_s14 }
 0x207   : > { %p2118_p12 = pnand %p2121_p11, %p2484_p8 }
 0x209   : > { %2349 = dma.done.wait (!%p2118_p12), %s1664_s17, 2048  }
 0x20a   : > { %2351 = vsyncadd (!%p2118_p12), %s1664_s17, 4294965248  ;;  %s19_s28 = sadd.s32 1, %s2382_s28   ;;  %s3229_s10 = sld [smem:[#allocation6_spill]] }
 0x20b   : > { %p16_p13 = scmp.ge.s32.totalorder %s19_s28, 6   ;;  %s3230_s21 = smov %s2358_s22 }
 0x20c   : > { %s3231_s22 = smov %s2362_s23  ;;  %s3232_s23 = smov %s2493_s15 }
 0x20d   : > { %s3233_s24 = smov %s2374_s26  ;;  %s3234_s25 = smov %s2378_s27 }
 0x20e   : > { %s3235_s26 = smov %s3238_s7  ;;  %18 = sbr.rel (!%p16_p13) target bundleno = 5 (0x5), region = 96 }
 0x210   : > { %s3236_s27 = smov %s3229_s10 }
 0x215   :  { %1669 = vsyncpa [#allocation4], 1 }
 0x216   :  { %1671 = vsyncpa [#allocation4 + $0x1], 1 }

// kernel: resblock_forward.2
= control target key start
LH: loop header
LB: loop body
LE: loop exit
PB: predicated region body
PF: predicated region fallthrough
CT: control target
= control target key end

     0   :  { %s2405_s21 = smov 0   ;;  %s2407_s22 = smov 0   ;;  %s3111_s0 = inlined_call_operand.vmem [shape: f32[2,16,16,32], index: 0, kind: input, shape index: {}, may-alias: {0,1,2}]   ;;  %s3112_s1 = inlined_call_operand.vmem [shape: f32[2,16,16,32], index: 1, kind: input, shape index: {}, may-alias: {0,1,2}]   ;;  %s3113_s2 = inlined_call_operand.vmem [shape: f32[2,16,16,32], index: 2, kind: input, shape index: {}, may-alias: {0,1,2}]   ;;  %s3114_s3 = inlined_call_operand.vmem [shape: f32[2,3,32], index: 3, kind: input, shape index: {}]   ;;  %s3115_s4 = inlined_call_operand.vmem [shape: bf16[3,96,32], index: 4, kind: input, shape index: {}]   ;;  %s3116_s5 = inlined_call_operand.vmem [shape: f32[2,16,16,32], index: 5, kind: output, shape index: {0}]   ;;  %s3117_s6 = inlined_call_operand.vmem [shape: f32[2,2,2,32], index: 6, kind: output, shape index: {1}]  }
   0x1   :  { %s2409_s23 = smov 0   ;;  %s2411_s24 = smov 0  }
   0x2   :  { %s2413_s25 = smov 0  }
   0x3 LB: > { %s26_s26 = sadd.s32 1, %s2358_s23  ;;  %s29_s27 = sadd.s32 1, %s2362_s24  ;;  %s2366_s25 = sphi %s2413_s25, %s17_s25   ;;  %s2362_s24 = sphi %s2411_s24, %s3132_s24   ;;  %s2358_s23 = sphi %s2409_s23, %s3131_s23   ;;  %s2354_s22 = sphi %s2407_s22, %s3130_s22   ;;  %s2350_s21 = sphi %s2405_s21, %s3129_s21  }
   0x4   : > { %p27_p0 = scmp.ge.s32.totalorder %s26_s26, 2  ;;  %p1896_p1 = scmp.ge.s32.totalorder %s2366_s25, 1 }
   0x5   : > { %p312_p2 = scmp.lt.s32.totalorder %s2366_s25, 5 }
   0x6   : > { %s3134_s26 = smov (%p27_p0, %s26_s26), 0  ;;  %s3136_s27 = smov (!%p27_p0, %s29_s27), %s2362_s24 }
   0x7   : > { %p313_p3 = pnand %p1896_p1, %p312_p2  ;;  %p31_p4 = scmp.ge.s32.totalorder %s3136_s27, 2 }
   0x8   : > { %s2438_s28 = sshll.u32 (!%p313_p3), %s2350_s21, 3  ;;  %p391_p5 = scmp.lt.s32.totalorder (!%p313_p3), %s2354_s22, 1  ;;  %vm671_vm2 = vcmask (!%p313_p3), 523520   ;;  %vm744_vm3 = vcmask (!%p313_p3), 261120   ;;  %vm745_vm4 = vsmask.f32 (!%p313_p3), 7938 }
   0x9   : > { %s3138_s27 = smov (%p31_p4, %s3136_s27), 0  ;;  %316 = sbr.rel (%p313_p3) target bundleno = 529 (0x211), region = 40 }
   0xa   : > { %p393_p6 = scmp.lt.s32.totalorder (!%p313_p3), %s2438_s28, 15  ;;  %s1902_s13 = sadd.s32 (!%p313_p3), 4294967295, %s2438_s28  ;;  %vm2789_vm5 = vmand (!%p313_p3), %vm744_vm3, %vm745_vm4  ;;  %vm771_vm6 = vcmask (!%p313_p3), 253952   ;;  %vm772_vm7 = vsmask.f32 (!%p313_p3), 256  ;;  %vm838_vm9 = vcmask (!%p313_p3), 785920  }
   0xb   : > { %p403_p7 = scmp.gt.s32.totalorder (!%p313_p3), %s1902_s13, 0  ;;  %p1903_p8 = scmp.lt.s32.totalorder (!%p313_p3), %s1902_s13, 15  ;;  %vm2804_vm8 = vmand (!%p313_p3), %vm771_vm6, %vm772_vm7  ;;  %vm839_vm10 = vsmask.f32 (!%p313_p3), 7424  ;;  %vm865_vm12 = vcmask (!%p313_p3), 785927   ;;  %vm1082_vm15 = vcmask (!%p313_p3), 785408  }
   0xc   : > { %s419_s19 = sadd.s32 (!%p313_p3), 8, %s2438_s28  ;;  %p452_p10 = scmp.lt.s32.totalorder (!%p313_p3), %s2350_s21, 1  ;;  %vm2832_vm11 = vmand (!%p313_p3), %vm838_vm9, %vm839_vm10  ;;  %vm866_vm13 = vsmask.f32 (!%p313_p3), 7966 }
   0xd   : > { %p2526_p9 = scmp.lt.s32.totalorder (!%p313_p3), %s419_s19, 15  ;;  %p934_p11 = scmp.gt.s32.totalorder (!%p313_p3), %s2350_s21, 0  ;;  %vm2850_vm14 = vmand (!%p313_p3), %vm865_vm12, %vm866_vm13 }
  0x10   : > { %s3140_s22 = smov (!%p391_p5, %s2354_s22), 1  ;;  %s3142_s13 = smov (!%p403_p7, %s1902_s13), 0 }
  0x11   : > { %s394_s29 = scalar_select %p393_p6, %s2438_s28, 15 }
  0x12   : > { %s2445_s30 = sshll.u32 %s3140_s22, 5  ;;  %s1918_s7 = sshll.u32 %s3140_s22, 2 }
  0x13   : > { %s1898_s8 = sshll.u32 %s394_s29, 1  ;;  %s2451_s11 = scalar_lea.vmem %s3114_s3, %s1918_s7 }
  0x14   : > { %s2454_s12 = sadd.s32 %s2445_s30, %s1898_s8  ;;  %v2457_v0 = vld [vmem:[%s2451_s11] ss:$0 sm:$0xff]  ;;  %v2462_v1 = vld [vmem:[%s2451_s11 + $0x1] ss:$0 sm:$0xff]  ;;  %s3144_s13 = smov (!%p1903_p8, %s3142_s13), 15 }
  0x15   : > { %s1900_s14 = sshll.u32 %s2454_s12, 3  ;;  %s1908_s18 = sshll.u32 %s3144_s13, 1 }
  0x16   : > { %s2469_s17 = scalar_lea.vmem %s3111_s0, %s1900_s14  ;;  %s411_s20 = sadd.s32 %s1908_s18, %s2445_s30 }
  0x17   : > { %v464_v2 = vld [vmem:[%s2469_s17 + $0x10] sm:$0xff]  ;;  %v465_v3 = vld [vmem:[%s2469_s17 + $0x18] sm:$0xff]  ;;  %v466_v4 = vld [vmem:[%s2469_s17 + $0x20] sm:$0xff]  ;;  %s1910_s29 = sshll.u32 %s411_s20, 3  ;;  %s1923_s10 = sshll.u32 %s3140_s22, 1 }
  0x18   : > { %v484_v5 = vmul.f32 %v2457_v0, %v464_v2  ;;  %v485_v6 = vmul.f32 %v2457_v0, %v465_v3  ;;  %v467_v7 = vld [vmem:[%s2469_s17 + $0x28] sm:$0xff]  ;;  %v486_v8 = vmul.f32 %v2457_v0, %v466_v4  ;;  %v470_v9 = vld [vmem:[%s2469_s17 + $0x40] sm:$0xff]  ;;  %v468_v26 = vld [vmem:[%s2469_s17 + $0x30] sm:$0xff]  ;;  %s413_s8 = scalar_lea.vmem %s3112_s1, %s1910_s29  ;;  %s3146_s19 = smov (!%p2526_p9, %s419_s19), 15 }
  0x19   : > { %v471_v10 = vld [vmem:[%s2469_s17 + $0x48] sm:$0xff]  ;;  %v487_v11 = vmul.f32 %v2457_v0, %v467_v7  ;;  %v490_v12 = vmul.f32 %v2457_v0, %v470_v9  ;;  %v462_v14 = vld [vmem:[%s2469_s17] sm:$0xff]  ;;  %v488_v40 = vmul.f32 %v2457_v0, %v468_v26  ;;  %s453_s13 = scalar_select %p452_p10, %s2350_s21, 1  ;;  %v469_v54 = vld [vmem:[%s2469_s17 + $0x38] sm:$0xff] }
  0x1a   : > { %v491_v13 = vmul.f32 %v2457_v0, %v471_v10  ;;  %v463_v15 = vld [vmem:[%s2469_s17 + $0x8] sm:$0xff]  ;;  %v2486_v16 = vadd.f32 %v2462_v1, %v484_v5  ;;  %v2489_v17 = vadd.f32 %v2462_v1, %v485_v6  ;;  %v2492_v18 = vadd.f32 %v2462_v1, %v486_v8  ;;  %v474_v24 = vld [vmem:[%s2469_s17 + $0x60] sm:$0xff]  ;;  %s3148_s19 = smov (!%p2526_p9, %s3146_s19), 15  ;;  %v472_v60 = vld [vmem:[%s2469_s17 + $0x50] sm:$0xff]  ;;  %s2368_s29 = smov 32  }
  0x1b   : > { %v482_v19 = vmul.f32 %v2457_v0, %v462_v14  ;;  %v2496_v20 = vadd.f32 %v2462_v1, %v487_v11  ;;  %v2499_v21 = vadd.f32 %v2462_v1, %v490_v12  ;;  %v483_v23 = vmul.f32 %v2457_v0, %v463_v15  ;;  %v475_v25 = vld [vmem:[%s2469_s17 + $0x68] sm:$0xff]  ;;  %v892_v36 = vld [vmem:[%s413_s8] sm:$0xff]  ;;  %s2560_s22 = sadd.s32 %s1923_s10, %s453_s13  ;;  %s1915_s15 = sshll.u32 %s3148_s19, 1  ;;  %v473_v2 = vld [vmem:[%s2469_s17 + $0x58] sm:$0xff] }
  0x1c   : > { %v2502_v22 = vadd.f32 %v2462_v1, %v491_v13  ;;  %v1929_v27 = vmul.f32 -1.442695, %v2486_v16  ;;  %v1930_v28 = vmul.f32 -1.442695, %v2489_v17  ;;  %v1931_v29 = vmul.f32 -1.442695, %v2492_v18  ;;  %s428_s16 = sadd.s32 %s1915_s15, %s2445_s30 }
  0x1d   : > { %v1932_v30 = vmul.f32 -1.442695, %v2496_v20  ;;  %v1935_v31 = vmul.f32 -1.442695, %v2499_v21  ;;  %v2516_v32 = vadd.f32 %v2462_v1, %v482_v19  ;;  %v2523_v34 = vadd.f32 %v2462_v1, %v483_v23  ;;  %v893_v37 = vld [vmem:[%s413_s8 + $0x8] sm:$0xff]  ;;  %v476_v5 = vld [vmem:[%s2469_s17 + $0x70] sm:$0xff] }
  0x1e   : > { %2248 = vpow2.f32 %v1929_v27  ;;  %v1936_v33 = vmul.f32 -1.442695, %v2502_v22  ;;  %v494_v35 = vmul.f32 %v2457_v0, %v474_v24  ;;  %v495_v39 = vmul.f32 %v2457_v0, %v475_v25  ;;  %s1917_s18 = sshll.u32 %s428_s16, 3  ;;  %v477_v12 = vld [vmem:[%s2469_s17 + $0x78] sm:$0xff]  ;;  %s2369_s7 = smov 64  }
  0x1f   : > { %2250 = vpow2.f32 %v1930_v28  ;;  %v1927_v38 = vmul.f32 -1.442695, %v2516_v32  ;;  %v894_v41 = vmul.f32 %v2457_v0, %v892_v36  ;;  %v895_v42 = vmul.f32 %v2457_v0, %v893_v37  ;;  %s430_s20 = scalar_lea.vmem %s3113_s2, %s1917_s18 }
  0x20   : > { %2252 = vpow2.f32 %v1931_v29  ;;  %v1928_v43 = vmul.f32 -1.442695, %v2523_v34  ;;  %v2541_v44 = vadd.f32 %v2462_v1, %v494_v35  ;;  %v2544_v45 = vadd.f32 %v2462_v1, %v495_v39  ;;  %v913_v37 = vld [vmem:[%s430_s20] sm:$0xff]  ;;  %s2602_s17 = scalar_select %p934_p11, 1, 0 }
  0x21   : > { %2254 = vpow2.f32 %v1932_v30  ;;  %v2550_v46 = vadd.f32 %v2462_v1, %v894_v41  ;;  %v2553_v47 = vadd.f32 %v2462_v1, %v895_v42  ;;  %v2556_v48 = vadd.f32 %v2462_v1, %v488_v40  ;;  %v914_v41 = vld [vmem:[%s430_s20 + $0x8] sm:$0xff]  ;;  %s970_s30 = scalar_select %p452_p10, 1, 0 }
  0x22   : > { %2256 = vpow2.f32 %v1935_v31  ;;  %v1939_v51 = vmul.f32 -1.442695, %v2541_v44  ;;  %v1940_v52 = vmul.f32 -1.442695, %v2544_v45  ;;  %v489_v63 = vmul.f32 %v2457_v0, %v469_v54 }
  0x23   : > { %2258 = vpow2.f32 %v1936_v33  ;;  %v1943_v49 = vmul.f32 -1.442695, %v2550_v46  ;;  %v1944_v50 = vmul.f32 -1.442695, %v2553_v47  ;;  %v1933_v53 = vmul.f32 -1.442695, %v2556_v48 }
  0x24   : > { %2260 = vpow2.f32 %v1927_v38  ;;  %v492_v8 = vmul.f32 %v2457_v0, %v472_v60  ;;  %v493_v11 = vmul.f32 %v2457_v0, %v473_v2  ;;  %v2577_v15 = vadd.f32 %v2462_v1, %v489_v63 }
  0x25   : > { %2262 = vpow2.f32 %v1928_v43  ;;  %v496_v24 = vmul.f32 %v2457_v0, %v476_v5  ;;  %v497_v28 = vmul.f32 %v2457_v0, %v477_v12  ;;  %v936_v63 = vstv %s2602_s17  ;;  %s2977_s17 = scalar_lea.vmem %s3116_s5, %s1900_s14 }
  0x26   : > { %2264 = vpow2.f32 %v1943_v49  ;;  %v2584_v27 = vadd.f32 %v2462_v1, %v492_v8  ;;  %v2589_v31 = vadd.f32 %v2462_v1, %v493_v11  ;;  %v1934_v36 = vmul.f32 -1.442695, %v2577_v15 }
  0x27   : > { %2266 = vpow2.f32 %v1944_v50  ;;  %v2593_v40 = vadd.f32 %v2462_v1, %v496_v24  ;;  %v2597_v49 = vadd.f32 %v2462_v1, %v497_v28  ;;  %vm2630_vm0 = vcmp.eq.s32.totalorder %v936_v63, 1 }
  0x28   : > { %v2249_v55 = vpop.eup %2248  ;;  %2268 = vpow2.f32 %v1939_v51  ;;  %v1937_v43 = vmul.f32 -1.442695, %v2584_v27 }
  0x29   : > { %v2251_v56 = vpop.eup %2250  ;;  %v568_v57 = vadd.f32 1.0, %v2249_v55  ;;  %2270 = vpow2.f32 %v1940_v52  ;;  %v1938_v52 = vmul.f32 -1.442695, %v2589_v31  ;;  %v1942_v2 = vmul.f32 -1.442695, %v2597_v49 }
  0x2a   : > { %v2253_v58 = vpop.eup %2252  ;;  %v569_v59 = vadd.f32 1.0, %v2251_v56  ;;  %2272 = vpow2.f32 %v1933_v53  ;;  %v915_v53 = vmul.f32 %v2457_v0, %v913_v37  ;;  %v916_v56 = vmul.f32 %v2457_v0, %v914_v41 }
  0x2b   : > { %v2255_v61 = vpop.eup %2254  ;;  %2274 = vrcp.f32 %v568_v57  ;;  %v570_v62 = vadd.f32 1.0, %v2253_v58 }
  0x2c   : > { %v2257_v3 = vpop.eup %2256  ;;  %2276 = vrcp.f32 %v569_v59  ;;  %v571_v4 = vadd.f32 1.0, %v2255_v61 }
  0x2d   : > { %v2259_v6 = vpop.eup %2258  ;;  %2278 = vrcp.f32 %v570_v62  ;;  %v574_v7 = vadd.f32 1.0, %v2257_v3 }
  0x2e   : > { %v2261_v9 = vpop.eup %2260  ;;  %2280 = vrcp.f32 %v571_v4  ;;  %v575_v10 = vadd.f32 1.0, %v2259_v6  ;;  %v2625_v4 = vadd.f32 %v2462_v1, %v916_v56 }
  0x2f   : > { %v2263_v13 = vpop.eup %2262  ;;  %2282 = vrcp.f32 %v574_v7  ;;  %v566_v14 = vadd.f32 1.0, %v2261_v9 }
  0x30   : > { %v2265_v19 = vpop.eup %2264  ;;  %2284 = vrcp.f32 %v575_v10  ;;  %v567_v23 = vadd.f32 1.0, %v2263_v13 }
  0x31   : > { %v2267_v25 = vpop.eup %2266  ;;  %v904_v26 = vadd.f32 1.0, %v2265_v19  ;;  %2286 = vrcp.f32 %v566_v14 }
  0x32   : > { %v2269_v29 = vpop.eup %2268  ;;  %v905_v30 = vadd.f32 1.0, %v2267_v25  ;;  %2288 = vrcp.f32 %v567_v23 }
  0x33   : > { %v2271_v33 = vpop.eup %2270  ;;  %2290 = vrcp.f32 %v904_v26  ;;  %v578_v35 = vadd.f32 1.0, %v2269_v29 }
  0x34   : > { %v2273_v38 = vpop.eup %2272  ;;  %2292 = vrcp.f32 %v905_v30  ;;  %v579_v39 = vadd.f32 1.0, %v2271_v33 }
  0x35   : > { %v2275_v42 = vpop.eup %2274  ;;  %2294 = vrcp.f32 %v578_v35  ;;  %v572_v7 = vadd.f32 1.0, %v2273_v38 }
  0x36   : > { %v2277_v50 = vpop.eup %2276  ;;  %v616_v51 = vmul.f32 %v2275_v42, %v2486_v16  ;;  %2296 = vrcp.f32 %v579_v39  ;;  %v1941_v16 = vmul.f32 -1.442695, %v2593_v40 }
  0x37   : > { %v2279_v54 = vpop.eup %2278  ;;  %v617_v55 = vmul.f32 %v2277_v50, %v2489_v17  ;;  %2298 = vpow2.f32 %v1934_v36  ;;  %v2616_v17 = vadd.f32 %v2462_v1, %v915_v53 }
  0x38   : > { %v2281_v57 = vpop.eup %2280  ;;  %v618_v58 = vmul.f32 %v2279_v54, %v2492_v18  ;;  %2300 = vpow2.f32 %v1937_v43 }
  0x39   : > { %v2283_v59 = vpop.eup %2282  ;;  %v2610_v60 = vpack.c.bf16 %v617_v55, %v616_v51  ;;  %v619_v61 = vmul.f32 %v2281_v57, %v2496_v20  ;;  %2302 = vpow2.f32 %v1938_v52 }
  0x3a   : > { %v2285_v62 = vpop.eup %2284  ;;  %v622_v3 = vmul.f32 %v2283_v59, %v2499_v21  ;;  %2304 = vpow2.f32 %v1941_v16  ;;  %v1945_v21 = vmul.f32 -1.442695, %v2616_v17 }
  0x3b   : > { %v2287_v0 = vpop.eup %2286  ;;  %648 = vrot.lane.b32.xlu1 %v2610_v60, %s2368_s29  ;;  %v2620_v18 = vpack.c.bf16 %v619_v61, %v618_v58  ;;  %v623_v20 = vmul.f32 %v2285_v62, %v2502_v22  ;;  %2306 = vpow2.f32 %v1942_v2  ;;  %v688_v19 = vshrl.u32 %v2610_v60, 16 }
  0x3c   : > { %v2289_v5 = vpop.eup %2288  ;;  %v614_v6 = vmul.f32 %v2287_v0, %v2516_v32  ;;  %2308 = vrcp.f32 %v572_v7  ;;  %v691_v23 = vshll.u32 %v2610_v60, 16 }
  0x3d   : > { %v2291_v8 = vpop.eup %2290  ;;  %v615_v9 = vmul.f32 %v2289_v5, %v2523_v34  ;;  %v2638_v32 = vpack.c.bf16 %v623_v20, %v622_v3  ;;  %v1946_v34 = vmul.f32 -1.442695, %v2625_v4  ;;  %v698_v28 = vshll.u32 %v2620_v18, 16 }
  0x3e   : > { %v2293_v10 = vpop.eup %2292  ;;  %v910_v11 = vmul.f32 %v2291_v8, %v2550_v46  ;;  %v690_v30 = vrot.slane %v688_v19, 7  ;;  %v695_v33 = vshrl.u32 %v2620_v18, 16 }
  0x3f   : > { %v2295_v1 = vpop.eup %2294  ;;  %v911_v22 = vmul.f32 %v2293_v10, %v2553_v47  ;;  %650 = vrot.lane.b32.xlu1 %v2620_v18, %s2368_s29  ;;  %v630_v13 = vpack.c.bf16 %v615_v9, %v614_v6  ;;  %v802_v52 = vrot.slane %v698_v28, 1  ;;  %v712_v63 = vshll.u32 %v2638_v32, 16 }
  0x40   : > { %v2297_v14 = vpop.eup %2296  ;;  %v626_v46 = vmul.f32 %v2295_v1, %v2541_v44  ;;  %v709_v44 = vshrl.u32 %v2638_v32, 16  ;;  %v697_v43 = vrot.slane %v695_v33, 7  ;;  %v2671_v59 = vor.u32 %v691_v23, %v690_v30 }
  0x41   : > { %v2299_v24 = vpop.eup %2298  ;;  %v912_v25 = vpack.c.bf16 %v911_v22, %v910_v11  ;;  %v627_v47 = vmul.f32 %v2297_v14, %v2544_v45  ;;  %v684_v26 = vshll.u32 %v630_v13, 16  ;;  %v681_v37 = vshrl.u32 %v630_v13, 16 }
  0x42   : > { %v573_v29 = vadd.f32 1.0, %v2299_v24  ;;  %v2301_v35 = vpop.eup %2300  ;;  %v711_v53 = vrot.slane %v709_v44, 7  ;;  %v2679_v18 = vor.u32 %v698_v28, %v697_v43  ;;  %v803_v7 = vor.u32 %v802_v52, %v695_v33  ;;  %v2230_v28 = vld [vmem:[%s3115_s4] sm:$0xff]  }
  0x43   : > { %v2652_v36 = vsel %vm2630_vm0, %v912_v25, 0  ;;  %654 = vrot.lane.b32.xlu1 %v2638_v32, %s2368_s29  ;;  %v2656_v45 = vpack.c.bf16 %v627_v47, %v626_v46  ;;  %v798_v38 = vrot.slane %v684_v26, 1  ;;  %v2303_v39 = vpop.eup %2302  ;;  %v576_v42 = vadd.f32 1.0, %v2301_v35  ;;  %2088 = vmatprep.subr.bf16.mxu0 %v2230_v28 }
  0x44   : > { %940 = vrot.lane.b32.xlu0 %v2652_v36, %s2368_s29  ;;  %v945_v41 = vshrl.u32 %v2652_v36, 16  ;;  %2310 = vrcp.f32 %v573_v29  ;;  %v948_v50 = vshll.u32 %v2652_v36, 16  ;;  %v577_v51 = vadd.f32 1.0, %v2303_v39  ;;  %v2305_v54 = vpop.eup %2304  ;;  %2089 = vmatpush3.bf16.msra.mxu0 %v2230_v28  ;;  %v2233_v36 = vld [vmem:[%s3115_s4 + $0x38] sm:$0xff]  }
  0x45   : > { %2312 = vrcp.f32 %v576_v42  ;;  %v683_v56 = vrot.slane %v681_v37, 7  ;;  %v723_v57 = vshrl.u32 %v2656_v45, 16  ;;  %v799_v58 = vor.u32 %v798_v38, %v681_v37  ;;  %v2307_v61 = vpop.eup %2306 }
  0x46   : > { %v947_v55 = vrot.slane %v945_v41, 7  ;;  %2314 = vrcp.f32 %v577_v51  ;;  %v580_v16 = vadd.f32 1.0, %v2305_v54  ;;  %v581_v0 = vadd.f32 1.0, %v2307_v61  ;;  %v2309_v3 = vpop.eup %2308 }
  0x47   : > { %658 = vrot.lane.b32.xlu1 %v2656_v45, %s2368_s29  ;;  %v725_v2 = vrot.slane %v723_v57, 7  ;;  %2316 = vpow2.f32 %v1945_v21  ;;  %v726_v20 = vshll.u32 %v2656_v45, 16  ;;  %v2684_v5 = vor.u32 %v712_v63, %v711_v53 }
  0x48   : > { %v2673_v62 = vor.u32 %v948_v50, %v947_v55  ;;  %646 = vrot.lane.b32.xlu0 %v630_v13, %s2368_s29  ;;  %2318 = vrcp.f32 %v580_v16  ;;  %v2686_v6 = vor.u32 %v684_v26, %v683_v56  ;;  %v620_v9 = vmul.f32 %v2309_v3, %v2556_v48  ;;  %v2235_v16 = vld [vmem:[%s3115_s4 + $0x40] sm:$0xff]   ;;  %v2236_v3 = vld [vmem:[%s3115_s4 + $0x18] sm:$0xff]  }
  0x49   : > { %2320 = vpow2.f32 %v1946_v34  ;;  %v2691_v8 = vor.u32 %v726_v20, %v725_v2  ;;  %v958_v46 = vrot.slane %v948_v50, 1  ;;  %v800_v35 = vrot.slane %v691_v23, 1 }
  0x4a   : > { %2322 = vrcp.f32 %v581_v0  ;;  %v806_v61 = vrot.slane %v712_v63, 1  ;;  %v971_v0 = vstv %s970_s30  ;;  %v810_v63 = vrot.slane %v726_v20, 1 }
  0x4b   : > { %814 = vrot.lane.b32.xlu1 %v799_v58, %s2369_s7  ;;  %v959_v39 = vor.u32 %v958_v46, %v945_v41  ;;  %v801_v54 = vor.u32 %v800_v35, %v688_v19  ;;  %v2234_v58 = vld [vmem:[%s3115_s4 + $0x10] sm:$0xff]   ;;  %vm972_vm1 = vcmp.eq.s32.totalorder %v971_v0, 1 }
  0x4c   : > { %v811_v32 = vor.u32 %v810_v63, %v723_v57 }
  0x4e   : > { %v2311_v10 = vpop.eup %2310 }
  0x4f   : > { %v621_v11 = vmul.f32 %v2311_v10, %v2577_v15  ;;  %818 = vrot.lane.b32.xlu1 %v803_v7, %s2369_s7  ;;  %v2313_v12 = vpop.eup %2312 }
  0x50   : > { %v2315_v21 = vpop.eup %2314  ;;  %v624_v22 = vmul.f32 %v2313_v12, %v2584_v27  ;;  %v2238_v12 = vld [vmem:[%s3115_s4 + $0x20] sm:$0xff]  }
  0x51   : > { %v633_v1 = vpack.c.bf16 %v621_v11, %v620_v9  ;;  %v2317_v13 = vpop.eup %2316  ;;  %v625_v34 = vmul.f32 %v2315_v21, %v2589_v31  ;;  %v2231_v31 = vld [vmem:[%s3115_s4 + $0x30] sm:$0xff]   ;;  %v2237_v9 = vld [vmem:[%s3115_s4 + $0x48] sm:$0xff]  }
  0x52   : > { %v2319_v14 = vpop.eup %2318  ;;  %v925_v48 = vadd.f32 1.0, %v2317_v13  ;;  %2060 = vmatprep.subr.bf16.mxu1 %v2231_v31 }
  0x53   : > { %652 = vrot.lane.b32.xlu0 %v633_v1, %s2368_s29  ;;  %v702_v24 = vshrl.u32 %v633_v1, 16  ;;  %v705_v25 = vshll.u32 %v633_v1, 16  ;;  %v2321_v47 = vpop.eup %2320  ;;  %v635_v26 = vpack.c.bf16 %v625_v34, %v624_v22  ;;  %v628_v15 = vmul.f32 %v2319_v14, %v2593_v40  ;;  %2061 = vmatpush3.bf16.msra.mxu1 %v2231_v31  ;;  %v2240_v22 = vld [vmem:[%s3115_s4 + $0x28] sm:$0xff]   ;;  %v2241_v14 = vld [vmem:[%s3115_s4 + $0x58] sm:$0xff]  }
  0x54   : > { %v2323_v29 = vpop.eup %2322  ;;  %v926_v33 = vadd.f32 1.0, %v2321_v47  ;;  %2324 = vrcp.f32 %v925_v48  ;;  %2062 = vmatprep.subr.bf16.mxu1 %v2233_v36 }
  0x55   : > { %v704_v27 = vrot.slane %v702_v24, 7  ;;  %v804_v30 = vrot.slane %v705_v25, 1  ;;  %v629_v37 = vmul.f32 %v2323_v29, %v2597_v49  ;;  %v716_v38 = vshrl.u32 %v635_v26, 16  ;;  %v2232_v49 = vld [vmem:[%s3115_s4 + $0x8] sm:$0xff]  }
  0x56   : > { %v719_v40 = vshll.u32 %v635_v26, 16  ;;  %2326 = vrcp.f32 %v926_v33  ;;  %2090 = vmatprep.subr.bf16.mxu0 %v2232_v49 }
  0x57   : > { %656 = vrot.lane.b32.xlu0 %v635_v26, %s2368_s29  ;;  %v805_v42 = vor.u32 %v804_v30, %v702_v24  ;;  %v2712_v43 = vor.u32 %v705_v25, %v704_v27  ;;  %v2714_v50 = vpack.c.bf16 %v629_v37, %v628_v15  ;;  %v718_v51 = vrot.slane %v716_v38, 7  ;;  %2091 = vmatpush3.bf16.msra.mxu0 %v2232_v49  ;;  %v2781_v24 = vld [vmem:[%s3115_s4 + $0x60] sm:$0xff]  }
  0x58   : > { %v808_v23 = vrot.slane %v719_v40, 1  ;;  %2063 = vmatpush3.bf16.msra.mxu1 %v2233_v36  ;;  %2092 = vmatprep.subr.bf16.mxu0 %v2234_v58 }
  0x59   : > { %820 = vrot.lane.b32.xlu1 %v805_v42, %s2369_s7  ;;  %v730_v52 = vshrl.u32 %v2714_v50, 16  ;;  %v2724_v53 = vor.u32 %v719_v40, %v718_v51  ;;  %v733_v56 = vshll.u32 %v2714_v50, 16  ;;  %2064 = vmatprep.subr.bf16.mxu1 %v2235_v16 }
  0x5a   : > { %v809_v41 = vor.u32 %v808_v23, %v716_v38 }
  0x5b   : > { %960 = vrot.lane.b32.xlu0 %v959_v39, %s2369_s7  ;;  %v732_v55 = vrot.slane %v730_v52, 7  ;;  %2093 = vmatpush3.bf16.msra.mxu0 %v2234_v58  ;;  %v812_v1 = vrot.slane %v733_v56, 1 }
  0x5c   : > { %2065 = vmatpush3.bf16.msra.mxu1 %v2235_v16  ;;  %2094 = vmatprep.subr.bf16.mxu0 %v2236_v3 }
  0x5d   : > { %824 = vrot.lane.b32.xlu1 %v809_v41, %s2369_s7  ;;  %v2739_v60 = vor.u32 %v733_v56, %v732_v55  ;;  %2066 = vmatprep.subr.bf16.mxu1 %v2237_v9  ;;  %v813_v57 = vor.u32 %v812_v1, %v730_v52 }
  0x5e   : > { %v2325_v19 = vpop.eup %2324 }
  0x5f   : > { %816 = vrot.lane.b32.xlu0 %v801_v54, %s2369_s7  ;;  %v931_v2 = vmul.f32 %v2325_v19, %v2616_v17  ;;  %v807_v17 = vor.u32 %v806_v61, %v709_v44  ;;  %2095 = vmatpush3.bf16.msra.mxu0 %v2236_v3 }
  0x60   : > { %v2327_v7 = vpop.eup %2326  ;;  %2067 = vmatpush3.bf16.msra.mxu1 %v2237_v9  ;;  %2096 = vmatprep.subr.bf16.mxu0 %v2238_v12 }
  0x61   : > { %v932_v10 = vmul.f32 %v2327_v7, %v2625_v4  ;;  %v2239_v4 = vld [vmem:[%s3115_s4 + $0x50] sm:$0xff]  }
  0x62   : > { %2068 = vmatprep.subr.bf16.mxu1 %v2239_v4 }
  0x63   : > { %660 = vrot.lane.b32.xlu0 %v2714_v50, %s2368_s29  ;;  %v933_v11 = vpack.c.bf16 %v932_v10, %v931_v2  ;;  %2097 = vmatpush3.bf16.msra.mxu0 %v2238_v12 }
  0x64   : > { %2069 = vmatpush3.bf16.msra.mxu1 %v2239_v4  ;;  %2098 = vmatprep.subr.bf16.mxu0 %v2240_v22 }
  0x65   : > { %v973_v21 = vsel %vm972_vm1, %v933_v11, 0  ;;  %2070 = vmatprep.subr.bf16.mxu1 %v2241_v14 }
  0x66   : > { %v981_v44 = vshrl.u32 %v973_v21, 16  ;;  %v984_v20 = vshll.u32 %v973_v21, 16  ;;  %975 = vrot.lane.b32.xlu1 %v973_v21, %s2368_s29 }
  0x67   : > { %822 = vrot.lane.b32.xlu0 %v807_v17, %s2369_s7  ;;  %2099 = vmatpush3.bf16.msra.mxu0 %v2240_v22 }
  0x68   : > { %v983_v13 = vrot.slane %v981_v44, 7  ;;  %v994_v34 = vrot.slane %v984_v20, 1  ;;  %2071 = vmatpush3.bf16.msra.mxu1 %v2241_v14  ;;  %2116 = vmatprep.subr.bf16.mxu0 %v2781_v24 }
  0x69   : > { %2144 = vmatprep.subr.bf16.mxu1 %v2781_v24 }
  0x6a   : > { %v2775_v45 = vor.u32 %v984_v20, %v983_v13  ;;  %v995_v46 = vor.u32 %v994_v34, %v981_v44 }
  0x6b   : > { %826 = vrot.lane.b32.xlu0 %v811_v32, %s2369_s7 }
  0x6c   : > { %996 = vrot.lane.b32.xlu1 %v995_v46, %s2369_s7 }
  0x6f   : > { %828 = vrot.lane.b32.xlu0 %v813_v57, %s2369_s7 }
  0xad   : > { %v649_v25 = vpop.permute.xlu1 %648 }
  0xae   : > { %673 = vst.msk [vmem:[#allocation2 + $0x10] sm:$0xff] %vm671_vm2, %v649_v25 }
  0xb1   : > { %v651_v48 = vpop.permute.xlu1 %650 }
  0xb2   : > { %674 = vst.msk [vmem:[#allocation2 + $0x18] sm:$0xff] %vm671_vm2, %v651_v48 }
  0xb5   : > { %v750_v26 = vld [vmem:[#allocation2 + $0x10] sm:$0xff]  ;;  %v655_v15 = vpop.permute.xlu1 %654 }
  0xb6   : > { %v751_v28 = vsel %vm2789_vm5, %v2671_v59, %v750_v26  ;;  %v941_v29 = vpop.permute.xlu0 %940  ;;  %676 = vst.msk [vmem:[#allocation2 + $0x28] sm:$0xff] %vm671_vm2, %v655_v15 }
  0xb7   : > { %752 = vst [vmem:[#allocation2 + $0x10] sm:$0xff] %v751_v28  ;;  %943 = vst.msk [vmem:[#allocation2] sm:$0xff] %vm671_vm2, %v941_v29 }
  0xb9   : > { %v753_v27 = vld [vmem:[#allocation2 + $0x18] sm:$0xff]  ;;  %v659_v30 = vpop.permute.xlu1 %658 }
  0xba   : > { %v754_v33 = vsel %vm2789_vm5, %v2679_v18, %v753_v27  ;;  %v647_v31 = vpop.permute.xlu0 %646  ;;  %678 = vst.msk [vmem:[#allocation2 + $0x38] sm:$0xff] %vm671_vm2, %v659_v30 }
  0xbb   : > { %755 = vst [vmem:[#allocation2 + $0x18] sm:$0xff] %v754_v33  ;;  %672 = vst.msk [vmem:[#allocation2 + $0x8] sm:$0xff] %vm671_vm2, %v647_v31 }
  0xbd   : > { %v759_v35 = vld [vmem:[#allocation2 + $0x28] sm:$0xff]  ;;  %v815_v36 = vpop.permute.xlu1 %814 }
  0xbe   : > { %v777_v37 = vld [vmem:[#allocation2 + $0x10] sm:$0x1]  ;;  %v952_v38 = vld [vmem:[#allocation2] sm:$0xff]  ;;  %v760_v40 = vsel %vm2789_vm5, %v2684_v5, %v759_v35 }
  0xbf   : > { %v778_v18 = vsel %vm2804_vm8, 0, %v777_v37  ;;  %v953_v39 = vsel %vm2789_vm5, %v2673_v62, %v952_v38  ;;  %761 = vst [vmem:[#allocation2 + $0x28] sm:$0xff] %v760_v40 }
  0xc0   : > { %779 = vst [vmem:[#allocation2 + $0x10] sm:$0x1] %v778_v18  ;;  %954 = vst [vmem:[#allocation2] sm:$0xff] %v953_v39 }
  0xc1   : > { %v765_v42 = vld [vmem:[#allocation2 + $0x38] sm:$0xff]  ;;  %v819_v55 = vpop.permute.xlu1 %818 }
  0xc2   : > { %v780_v50 = vld [vmem:[#allocation2 + $0x18] sm:$0x1]  ;;  %v747_v51 = vld [vmem:[#allocation2 + $0x8] sm:$0xff]  ;;  %v766_v23 = vsel %vm2789_vm5, %v2691_v8, %v765_v42 }
  0xc3   : > { %v781_v5 = vsel %vm2804_vm8, 0, %v780_v50  ;;  %v748_v49 = vsel %vm2789_vm5, %v2686_v6, %v747_v51  ;;  %767 = vst [vmem:[#allocation2 + $0x38] sm:$0xff] %v766_v23 }
  0xc4   : > { %782 = vst [vmem:[#allocation2 + $0x18] sm:$0x1] %v781_v5  ;;  %749 = vst [vmem:[#allocation2 + $0x8] sm:$0xff] %v748_v49 }
  0xc5   : > { %v653_v62 = vpop.permute.xlu0 %652 }
  0xc6   : > { %v786_v41 = vld [vmem:[#allocation2 + $0x28] sm:$0x1]  ;;  %675 = vst.msk [vmem:[#allocation2 + $0x20] sm:$0xff] %vm671_vm2, %v653_v62 }
  0xc7   : > { %v955_v52 = vld [vmem:[#allocation2] sm:$0x1]  ;;  %v787_v54 = vsel %vm2804_vm8, 0, %v786_v41  ;;  %v844_v17 = vld [vmem:[#allocation2 + $0x10] sm:$0xff]  ;;  %v2243_v62 = vld [vmem:[%s3115_s4 + $0x68] sm:$0xff]  }
  0xc8   : > { %v956_v8 = vsel %vm2804_vm8, 0, %v955_v52  ;;  %788 = vst [vmem:[#allocation2 + $0x28] sm:$0x1] %v787_v54 }
  0xc9   : > { %957 = vst [vmem:[#allocation2] sm:$0x1] %v956_v8  ;;  %v657_v6 = vpop.permute.xlu0 %656 }
  0xca   : > { %v792_v56 = vld [vmem:[#allocation2 + $0x38] sm:$0x1]  ;;  %677 = vst.msk [vmem:[#allocation2 + $0x30] sm:$0xff] %vm671_vm2, %v657_v6 }
  0xcb   : > { %v774_v58 = vld [vmem:[#allocation2 + $0x8] sm:$0x1]  ;;  %v793_v16 = vsel %vm2804_vm8, 0, %v792_v56  ;;  %v847_v61 = vld [vmem:[#allocation2 + $0x18] sm:$0xff]  ;;  %v821_v9 = vpop.permute.xlu1 %820 }
  0xcc   : > { %v775_v2 = vsel %vm2804_vm8, 0, %v774_v58  ;;  %794 = vst [vmem:[#allocation2 + $0x38] sm:$0x1] %v793_v16  ;;  %v848_v0 = vsel %vm2832_vm11, %v819_v55, %v847_v61  ;;  %v2244_v58 = vld [vmem:[%s3115_s4 + $0x70] sm:$0xff]  }
  0xcd   : > { %776 = vst [vmem:[#allocation2 + $0x8] sm:$0x1] %v775_v2  ;;  %v756_v3 = vld [vmem:[#allocation2 + $0x20] sm:$0xff]  ;;  %v961_v7 = vpop.permute.xlu0 %960  ;;  %849 = vst [vmem:[#allocation2 + $0x18] sm:$0xff] %v848_v0 }
  0xce   : > { %v757_v10 = vsel %vm2789_vm5, %v2712_v43, %v756_v3 }
  0xcf   : > { %758 = vst [vmem:[#allocation2 + $0x20] sm:$0xff] %v757_v10  ;;  %v825_v43 = vpop.permute.xlu1 %824  ;;  %v853_v57 = vld [vmem:[#allocation2 + $0x28] sm:$0xff] }
  0xd0   : > { %v963_v63 = vld [vmem:[#allocation2] sm:$0xff] }
  0xd1   : > { %v762_v11 = vld [vmem:[#allocation2 + $0x30] sm:$0xff]  ;;  %v964_v12 = vsel %vm2832_vm11, %v961_v7, %v963_v63  ;;  %v817_v4 = vpop.permute.xlu0 %816  ;;  %v2245_v7 = vld [vmem:[%s3115_s4 + $0x78] sm:$0xff]  }
  0xd2   : > { %v763_v21 = vsel %vm2789_vm5, %v2724_v53, %v762_v11  ;;  %965 = vst [vmem:[#allocation2] sm:$0xff] %v964_v12  ;;  %v845_v32 = vsel %vm2832_vm11, %v817_v4, %v844_v17  ;;  %v2246_v17 = vld [vmem:[%s3115_s4 + $0x80] sm:$0xff]   ;;  %v2247_v4 = vld [vmem:[%s3115_s4 + $0x88] sm:$0xff]  }
  0xd3   : > { %764 = vst [vmem:[#allocation2 + $0x30] sm:$0xff] %v763_v21  ;;  %846 = vst [vmem:[#allocation2 + $0x10] sm:$0xff] %v845_v32  ;;  %v859_v33 = vld [vmem:[#allocation2 + $0x38] sm:$0xff] }
  0xd4   : > { %v841_v20 = vld [vmem:[#allocation2 + $0x8] sm:$0xff]  ;;  %v874_v1 = vld [vmem:[#allocation2 + $0x18] sm:$0x80] }
  0xd5   : > { %v842_v22 = vsel %vm2832_vm11, %v815_v36, %v841_v20  ;;  %v661_v13 = vpop.permute.xlu0 %660  ;;  %v875_v53 = vsel %vm2850_vm14, 0, %v874_v1 }
  0xd6   : > { %v783_v34 = vld [vmem:[#allocation2 + $0x20] sm:$0x1]  ;;  %843 = vst [vmem:[#allocation2 + $0x8] sm:$0xff] %v842_v22  ;;  %679 = vst.msk [vmem:[#allocation2 + $0x40] sm:$0xff] %vm671_vm2, %v661_v13 }
  0xd7   : > { %876 = vst [vmem:[#allocation2 + $0x18] sm:$0x80] %v875_v53  ;;  %v784_v14 = vsel %vm2804_vm8, 0, %v783_v34 }
  0xd8   : > { %785 = vst [vmem:[#allocation2 + $0x20] sm:$0x1] %v784_v14  ;;  %v976_v48 = vpop.permute.xlu1 %975 }
  0xd9   : > { %v966_v46 = vld [vmem:[#allocation2] sm:$0x80]  ;;  %v823_v25 = vpop.permute.xlu0 %822  ;;  %979 = vst.msk [vmem:[#allocation2 + $0x48] sm:$0xff] %vm671_vm2, %v976_v48 }
  0xda   : > { %v789_v26 = vld [vmem:[#allocation2 + $0x30] sm:$0x1]  ;;  %v967_v15 = vsel %vm2850_vm14, 0, %v966_v46  ;;  %v871_v28 = vld [vmem:[#allocation2 + $0x10] sm:$0x80]  ;;  %v854_v29 = vsel %vm2832_vm11, %v823_v25, %v853_v57 }
  0xdb   : > { %v790_v27 = vsel %vm2804_vm8, 0, %v789_v26  ;;  %968 = vst [vmem:[#allocation2] sm:$0x80] %v967_v15  ;;  %v872_v30 = vsel %vm2850_vm14, 0, %v871_v28  ;;  %855 = vst [vmem:[#allocation2 + $0x28] sm:$0xff] %v854_v29 }
  0xdc   : > { %791 = vst [vmem:[#allocation2 + $0x30] sm:$0x1] %v790_v27  ;;  %873 = vst [vmem:[#allocation2 + $0x10] sm:$0x80] %v872_v30 }
  0xdd   : > { %v868_v31 = vld [vmem:[#allocation2 + $0x8] sm:$0x80]  ;;  %v768_v35 = vld [vmem:[#allocation2 + $0x40] sm:$0xff]  ;;  %v827_v37 = vpop.permute.xlu0 %826 }
  0xde   : > { %v869_v38 = vsel %vm2850_vm14, 0, %v868_v31  ;;  %v769_v40 = vsel %vm2789_vm5, %v2739_v60, %v768_v35  ;;  %v860_v18 = vsel %vm2832_vm11, %v827_v37, %v859_v33  ;;  %v2901_v55 = vld [vmem:[#allocation2 + $0x18] sm:$0xff]  ;;  %v997_v10 = vpop.permute.xlu1 %996 }
  0xdf   : > { %870 = vst [vmem:[#allocation2 + $0x8] sm:$0x80] %v869_v38  ;;  %770 = vst [vmem:[#allocation2 + $0x40] sm:$0xff] %v769_v40  ;;  %v850_v39 = vld [vmem:[#allocation2 + $0x20] sm:$0xff] }
  0xe0   : > { %861 = vst [vmem:[#allocation2 + $0x38] sm:$0xff] %v860_v18  ;;  %v851_v42 = vsel %vm2832_vm11, %v821_v9, %v850_v39  ;;  %v988_v50 = vld [vmem:[#allocation2 + $0x48] sm:$0xff] }
  0xe1   : > { %852 = vst [vmem:[#allocation2 + $0x20] sm:$0xff] %v851_v42  ;;  %v989_v23 = vsel %vm2789_vm5, %v2775_v45, %v988_v50  ;;  %v829_v3 = vpop.permute.xlu0 %828 }
  0xe2   : > { %v880_v51 = vld [vmem:[#allocation2 + $0x28] sm:$0x80]  ;;  %v1005_v5 = vld [vmem:[#allocation2] sm:$0xff]  ;;  %990 = vst [vmem:[#allocation2 + $0x48] sm:$0xff] %v989_v23 }
  0xe3   : > { %v881_v60 = vsel %vm2850_vm14, 0, %v880_v51  ;;  %v856_v49 = vld [vmem:[#allocation2 + $0x30] sm:$0xff]  ;;  %2100 = vmatprep.mubr.msk.bf16.mxu0 %vm1082_vm15, %v1005_v5 }
  0xe4   : > { %882 = vst [vmem:[#allocation2 + $0x28] sm:$0x80] %v881_v60  ;;  %v857_v36 = vsel %vm2832_vm11, %v825_v43, %v856_v49  ;;  %v2896_v8 = vld [vmem:[#allocation2 + $0x10] sm:$0xff] }
  0xe5   : > { %858 = vst [vmem:[#allocation2 + $0x30] sm:$0xff] %v857_v36 }
  0xe6   : > { %v795_v41 = vld [vmem:[#allocation2 + $0x40] sm:$0x1]  ;;  %v1025_v45 = vld [vmem:[#allocation2 + $0x8] sm:$0xff] }
  0xe7   : > { %v886_v47 = vld [vmem:[#allocation2 + $0x38] sm:$0x80]  ;;  %v796_v52 = vsel %vm2804_vm8, 0, %v795_v41  ;;  %2072 = vmatprep.mubr.msk.bf16.mxu1 %vm1082_vm15, %v1025_v45  ;;  %2101 = vmatmul.mubr.msk.bf16.vlgmr.msra.gmra.mrb[0].mxu0 %vm1082_vm15, %v1025_v45 }
  0xe8   : > { %v887_v54 = vsel %vm2850_vm14, 0, %v886_v47  ;;  %797 = vst [vmem:[#allocation2 + $0x40] sm:$0x1] %v796_v52  ;;  %v877_v6 = vld [vmem:[#allocation2 + $0x20] sm:$0x80]  ;;  %2117 = vmatpush3.bf16.msra.mxu0 %v2781_v24  ;;  %2073 = vmatmul.mubr.msk.bf16.vlgmr.msra.gmra.mrb[0].mxu1 %vm1082_vm15, %v2896_v8 }
  0xe9   : > { %888 = vst [vmem:[#allocation2 + $0x38] sm:$0x80] %v887_v54  ;;  %v878_v56 = vsel %vm2850_vm14, 0, %v877_v6  ;;  %2104 = vmatprep.mubr.msk.bf16.mxu0 %vm1082_vm15, %v2896_v8  ;;  %2076 = vmatprep.mubr.msk.bf16.mxu1 %vm1082_vm15, %v2901_v55  ;;  %v991_v16 = vld [vmem:[#allocation2 + $0x48] sm:$0x1] }
  0xea   : > { %879 = vst [vmem:[#allocation2 + $0x20] sm:$0x80] %v878_v56  ;;  %2118 = vmatprep.subr.bf16.mxu0 %v2243_v62  ;;  %2150 = vmatpush3.bf16.msra.mxu1 %v2781_v24  ;;  %v992_v61 = vsel %vm2804_vm8, 0, %v991_v16  ;;  %v2970_v47 = vld [vmem:[%s2451_s11 + $0x2] ss:$0 sm:$0xff]  ;;  %s1924_s11 = sshll.u32 %s2560_s22, 1 }
  0xeb   : > { %2145 = vmatprep.subr.bf16.mxu1 %v2243_v62  ;;  %993 = vst [vmem:[#allocation2 + $0x48] sm:$0x1] %v992_v61  ;;  %v1029_v63 = vld [vmem:[#allocation2 + $0x28] sm:$0xff]  ;;  %s457_s29 = scalar_lea.vmem %s3117_s6, %s1924_s11 }
  0xec   : > { %v883_v2 = vld [vmem:[#allocation2 + $0x30] sm:$0x80]  ;;  %2119 = vmatpush3.bf16.msra.mxu0 %v2243_v62 }
  0xed   : > { %v884_v0 = vsel %vm2850_vm14, 0, %v883_v2  ;;  %2120 = vmatprep.subr.bf16.mxu0 %v2244_v58 }
  0xee   : > { %885 = vst [vmem:[#allocation2 + $0x30] sm:$0x80] %v884_v0  ;;  %2151 = vmatpush3.bf16.msra.mxu1 %v2243_v62 }
  0xef   : > { %v862_v9 = vld [vmem:[#allocation2 + $0x40] sm:$0xff]  ;;  %2105 = vmatmul.mubr.msk.bf16.gmra.mrb[4].mxu0 %vm1082_vm15, %v2901_v55  ;;  %2146 = vmatprep.subr.bf16.mxu1 %v2244_v58 }
  0xf0   : > { %v863_v24 = vsel %vm2832_vm11, %v829_v3, %v862_v9  ;;  %2121 = vmatpush3.bf16.msra.mxu0 %v2244_v58  ;;  %v1031_v19 = vld [vmem:[#allocation2 + $0x38] sm:$0xff] }
  0xf1   : > { %864 = vst [vmem:[#allocation2 + $0x40] sm:$0xff] %v863_v24  ;;  %v1028_v59 = vld [vmem:[#allocation2 + $0x20] sm:$0xff]  ;;  %2122 = vmatprep.subr.bf16.mxu0 %v2245_v7 }
  0xf2   : > { %2077 = vmatmul.mubr.msk.bf16.gmra.mrb[4].mxu1 %vm1082_vm15, %v1028_v59  ;;  %2108 = vmatprep.mubr.msk.bf16.mxu0 %vm1082_vm15, %v1028_v59  ;;  %v999_v11 = vld [vmem:[#allocation2 + $0x48] sm:$0xff] }
  0xf3   : > { %2080 = vmatprep.mubr.msk.bf16.mxu1 %vm1082_vm15, %v1029_v63  ;;  %2152 = vmatpush3.bf16.msra.mxu1 %v2244_v58  ;;  %v1000_v12 = vsel %vm2832_vm11, %v997_v10, %v999_v11 }
  0xf4   : > { %2123 = vmatpush3.bf16.msra.mxu0 %v2245_v7  ;;  %2147 = vmatprep.subr.bf16.mxu1 %v2245_v7  ;;  %1001 = vst [vmem:[#allocation2 + $0x48] sm:$0xff] %v1000_v12 }
  0xf5   : > { %2124 = vmatprep.subr.bf16.mxu0 %v2246_v17  ;;  %v1030_v21 = vld [vmem:[#allocation2 + $0x30] sm:$0xff] }
  0xf7   : > { %2109 = vmatmul.mubr.msk.bf16.gmra.mrb[8].mxu0 %vm1082_vm15, %v1029_v63  ;;  %2153 = vmatpush3.bf16.msra.mxu1 %v2245_v7 }
  0xf8   : > { %v889_v32 = vld [vmem:[#allocation2 + $0x40] sm:$0x80]  ;;  %2112 = vmatprep.mubr.msk.bf16.mxu0 %vm1082_vm15, %v1030_v21  ;;  %2125 = vmatpush3.bf16.msra.mxu0 %v2246_v17 }
  0xf9   : > { %v890_v43 = vsel %vm2850_vm14, 0, %v889_v32  ;;  %2148 = vmatprep.subr.bf16.mxu1 %v2246_v17  ;;  %2126 = vmatprep.subr.bf16.mxu0 %v2247_v4 }
  0xfa   : > { %891 = vst [vmem:[#allocation2 + $0x40] sm:$0x80] %v890_v43  ;;  %2081 = vmatmul.mubr.msk.bf16.gmra.mrb[8].mxu1 %vm1082_vm15, %v1030_v21 }
  0xfb   : > { %2084 = vmatprep.mubr.msk.bf16.mxu1 %vm1082_vm15, %v1031_v19  ;;  %2154 = vmatpush3.bf16.msra.mxu1 %v2246_v17  ;;  %v1002_v20 = vld [vmem:[#allocation2 + $0x48] sm:$0x80] }
  0xfc   : > { %2127 = vmatpush3.bf16.msra.mxu0 %v2247_v4  ;;  %2149 = vmatprep.subr.bf16.mxu1 %v2247_v4  ;;  %v1003_v1 = vsel %vm2850_vm14, 0, %v1002_v20 }
  0xfd   : > { %1004 = vst [vmem:[#allocation2 + $0x48] sm:$0x80] %v1003_v1 }
  0xff   : > { %2113 = vmatmul.mubr.msk.bf16.gmra.mrb[12].mxu0 %vm1082_vm15, %v1031_v19  ;;  %2155 = vmatpush3.bf16.msra.mxu1 %v2247_v4 }
 0x100   : > { %2128 = vmatprep.mubr.msk.bf16.mxu0 %vm1082_vm15, %v2896_v8 }
 0x101   : > { %v1032_v22 = vld [vmem:[#allocation2 + $0x40] sm:$0xff] }
 0x102   : > { %2085 = vmatmul.mubr.msk.bf16.gmra.mrb[12].mxu1 %vm1082_vm15, %v1032_v22 }
 0x103   : > { %2136 = vmatprep.mubr.msk.bf16.mxu1 %vm1082_vm15, %v1030_v21 }
 0x104   : > { %v1369_v44 = vld [vmem:[#allocation2 + $0x48] sm:$0xff] }
 0x107   : > { %2129 = vmatmul.mubr.msk.bf16.vlgmr.msra.gmra.mrb[0].mxu0 %vm1082_vm15, %v2901_v55 }
 0x108   : > { %2132 = vmatprep.mubr.msk.bf16.mxu0 %vm1082_vm15, %v1028_v59 }
 0x10a   : > { %2137 = vmatmul.mubr.msk.bf16.vlgmr.msra.gmra.mrb[16].mxu1 %vm1082_vm15, %v1031_v19 }
 0x10b   : > { %2140 = vmatprep.mubr.msk.bf16.mxu1 %vm1082_vm15, %v1032_v22 }
 0x10f   : > { %2133 = vmatmul.mubr.msk.bf16.gmra.mrb[4].mxu0 %vm1082_vm15, %v1029_v63 }
 0x112   : > { %2141 = vmatmul.mubr.msk.bf16.gmra.mrb[20].mxu1 %vm1082_vm15, %v1369_v44 }
 0x1bb   : > { %v2074_v13 = vpop.f32.mrb[0].mxu1 }
 0x1bc   : > { %v1141_v53 = vpop.f32.mrb[1].mxu1 }
 0x1bd   : > { %v2075_v34 = vpop.f32.mrb[2].mxu1 }
 0x1be   : > { %v1144_v14 = vpop.f32.mrb[3].mxu1 }
 0x1c5   : > { %v2955_v57 = vpop.f32.mrb[4].mxu1 }
 0x1c6   : > { %v2957_v46 = vpop.f32.mrb[5].mxu1 }
 0x1c7   : > { %v2959_v25 = vpop.f32.mrb[6].mxu1 }
 0x1c8   : > { %v2961_v48 = vpop.f32.mrb[7].mxu1 }
 0x1ca   : > { %v2110_v26 = vpop.f32.mrb[8].mxu0 }
 0x1cb   : > { %v1330_v15 = vpop.f32.mrb[9].mxu0 }
 0x1cc   : > { %v2111_v28 = vpop.f32.mrb[10].mxu0 }
 0x1cd   : > { %v2082_v29 = vpop.f32.mrb[8].mxu1  ;;  %v1333_v27 = vpop.f32.mrb[11].mxu0 }
 0x1ce   : > { %v1339_v30 = vadd.f32 %v2110_v26, %v2082_v29  ;;  %v1173_v33 = vpop.f32.mrb[9].mxu1 }
 0x1cf   : > { %v1331_v31 = vadd.f32 %v1330_v15, %v1173_v33  ;;  %v2083_v35 = vpop.f32.mrb[10].mxu1 }
 0x1d0   : > { %v1342_v37 = vadd.f32 %v2111_v28, %v2083_v35  ;;  %v1176_v38 = vpop.f32.mrb[11].mxu1 }
 0x1d1   : > { %v1334_v40 = vadd.f32 %v1333_v27, %v1176_v38 }
 0x1d2   : > { %v2114_v18 = vpop.f32.mrb[12].mxu0 }
 0x1d3   : > { %v1346_v39 = vpop.f32.mrb[13].mxu0 }
 0x1d4   : > { %v2115_v42 = vpop.f32.mrb[14].mxu0 }
 0x1d5   : > { %v2086_v50 = vpop.f32.mrb[12].mxu1  ;;  %v1349_v51 = vpop.f32.mrb[15].mxu0 }
 0x1d6   : > { %v1355_v23 = vadd.f32 %v2114_v18, %v2086_v50  ;;  %v1189_v5 = vpop.f32.mrb[13].mxu1 }
 0x1d7   : > { %v2963_v60 = vadd.f32 %v1346_v39, %v1189_v5  ;;  %v2087_v49 = vpop.f32.mrb[14].mxu1 }
 0x1d8   : > { %v2965_v36 = vadd.f32 %v2115_v42, %v2087_v49  ;;  %v1192_v62 = vpop.f32.mrb[15].mxu1 }
 0x1d9   : > { %v2967_v41 = vadd.f32 %v1349_v51, %v1192_v62 }
 0x1da   : > { %v2130_v45 = vpop.f32.mrb[0].mxu0 }
 0x1db   : > { %v2156_v52 = vadd.f32 %v2130_v45, %v2074_v13  ;;  %v1477_v54 = vpop.f32.mrb[1].mxu0 }
 0x1dc   : > { %v2157_v8 = vadd.f32 %v1477_v54, %v1141_v53  ;;  %v2131_v6 = vpop.f32.mrb[2].mxu0 }
 0x1dd   : > { %v1562_v55 = vadd.f32 %v2156_v52, %v2970_v47  ;;  %v2138_v56 = vpop.f32.mrb[16].mxu1  ;;  %v2158_v58 = vadd.f32 %v2131_v6, %v2075_v34  ;;  %v1480_v16 = vpop.f32.mrb[3].mxu0 }
 0x1de   : > { %v1560_v61 = vadd.f32 %v2157_v8, %v2970_v47  ;;  %v1550_v2 = vadd.f32 %v2138_v56, %v1339_v30  ;;  %v1509_v0 = vpop.f32.mrb[17].mxu1  ;;  %v2159_v3 = vadd.f32 %v1480_v16, %v1144_v14 }
 0x1df   : > { %1579 = vst.msk [vmem:[%s2977_s17 + $0x10] sm:$0xff] %vm744_vm3, %v1562_v55  ;;  %v1563_v7 = vadd.f32 %v2158_v58, %v2970_v47  ;;  %v1548_v9 = vadd.f32 %v1509_v0, %v1331_v31  ;;  %v2139_v24 = vpop.f32.mrb[18].mxu1  ;;  %v1596_v32 = vsel %vm744_vm3, %v1562_v55, 0.0  ;;  %v1634_v43 = vmul.f32 %v1562_v55, %v1562_v55 }
 0x1e0   : > { %1577 = vst.msk [vmem:[%s2977_s17] sm:$0xff] %vm744_vm3, %v1560_v61  ;;  %v2987_v59 = vadd.f32 %v2970_v47, %v1550_v2  ;;  %v1561_v10 = vadd.f32 %v2159_v3, %v2970_v47  ;;  %v1512_v17 = vpop.f32.mrb[19].mxu1  ;;  %v1632_v63 = vmul.f32 %v1560_v61, %v1560_v61  ;;  %v1593_v12 = vsel %vm744_vm3, %v1560_v61, 0.0 }
 0x1e1   : > { %1580 = vst.msk [vmem:[%s2977_s17 + $0x18] sm:$0xff] %vm744_vm3, %v1563_v7  ;;  %v2993_v11 = vadd.f32 %v2970_v47, %v1548_v9  ;;  %v1598_v19 = vsel %vm744_vm3, %v1563_v7, 0.0  ;;  %v1635_v22 = vmul.f32 %v1563_v7, %v1563_v7  ;;  %v1551_v13 = vadd.f32 %v2139_v24, %v1342_v37 }
 0x1e2   : > { %1587 = vst.msk [vmem:[%s2977_s17 + $0x50] sm:$0xff] %vm744_vm3, %v2987_v59  ;;  %1578 = vst.msk [vmem:[%s2977_s17 + $0x8] sm:$0xff] %vm744_vm3, %v1561_v10  ;;  %v1594_v4 = vsel %vm744_vm3, %v1561_v10, 0.0  ;;  %v2134_v21 = vpop.f32.mrb[4].mxu0  ;;  %v1633_v44 = vmul.f32 %v1561_v10, %v1561_v10  ;;  %v1549_v53 = vadd.f32 %v1512_v17, %v1334_v40  ;;  %v1648_v14 = vsel %vm744_vm3, %v1632_v63, 0.0 }
 0x1e3   : > { %1585 = vst.msk [vmem:[%s2977_s17 + $0x40] sm:$0xff] %vm744_vm3, %v2993_v11  ;;  %v1595_v20 = vadd.f32 %v1594_v4, %v1593_v12  ;;  %v1493_v1 = vpop.f32.mrb[5].mxu0  ;;  %v2160_v15 = vadd.f32 %v2134_v21, %v2955_v57  ;;  %v3012_v33 = vadd.f32 %v2970_v47, %v1551_v13  ;;  %v1651_v39 = vsel %vm744_vm3, %v1634_v43, 0.0 }
 0x1e4   : > { %v2135_v34 = vpop.f32.mrb[6].mxu0  ;;  %v2161_v28 = vadd.f32 %v1493_v1, %v2957_v46  ;;  %v1649_v30 = vsel %vm744_vm3, %v1633_v44, 0.0  ;;  %v1569_v31 = vadd.f32 %v2970_v47, %v1549_v53  ;;  %v1640_v17 = vmul.f32 %v2993_v11, %v2993_v11 }
 0x1e5   : > { %v1597_v26 = vadd.f32 %v1596_v32, %v1595_v20  ;;  %v2142_v29 = vpop.f32.mrb[20].mxu1  ;;  %v1496_v27 = vpop.f32.mrb[7].mxu0  ;;  %v1650_v38 = vadd.f32 %v1649_v30, %v1648_v14  ;;  %v1566_v40 = vadd.f32 %v2160_v15, %v2970_v47  ;;  %1588 = vst.msk [vmem:[%s2977_s17 + $0x58] sm:$0xff] %vm744_vm3, %v3012_v33  ;;  %v2162_v52 = vadd.f32 %v2135_v34, %v2959_v25 }
 0x1e6   : > { %v1554_v35 = vadd.f32 %v2142_v29, %v1355_v23  ;;  %v1525_v37 = vpop.f32.mrb[21].mxu1  ;;  %v1564_v57 = vadd.f32 %v2161_v28, %v2970_v47  ;;  %1586 = vst.msk [vmem:[%s2977_s17 + $0x48] sm:$0xff] %vm744_vm3, %v1569_v31  ;;  %v1653_v23 = vsel %vm744_vm3, %v1635_v22, 0.0  ;;  %v2163_v6 = vadd.f32 %v1496_v27, %v2961_v48 }
 0x1e7   : > { %v1599_v18 = vadd.f32 %v1598_v19, %v1597_v26  ;;  %v2143_v46 = vpop.f32.mrb[22].mxu1  ;;  %v1652_v50 = vadd.f32 %v1651_v39, %v1650_v38  ;;  %1583 = vst.msk [vmem:[%s2977_s17 + $0x30] sm:$0xff] %vm744_vm3, %v1566_v40  ;;  %v1552_v8 = vadd.f32 %v1525_v37, %v2963_v60  ;;  %v1567_v58 = vadd.f32 %v2162_v52, %v2970_v47 }
 0x1e8   : > { %v1528_v42 = vpop.f32.mrb[23].mxu1  ;;  %1581 = vst.msk [vmem:[%s2977_s17 + $0x20] sm:$0xff] %vm744_vm3, %v1564_v57  ;;  %v1600_v51 = vsel %vm744_vm3, %v1564_v57, 0.0  ;;  %v1636_v49 = vmul.f32 %v1564_v57, %v1564_v57  ;;  %v3030_v45 = vadd.f32 %v2970_v47, %v1554_v35  ;;  %v1555_v55 = vadd.f32 %v2143_v46, %v2965_v36 }
 0x1e9   : > { %v1601_v5 = vadd.f32 %v1600_v51, %v1599_v18  ;;  %v1654_v62 = vadd.f32 %v1653_v23, %v1652_v50  ;;  %v1572_v16 = vadd.f32 %v2970_v47, %v1552_v8  ;;  %v1565_v61 = vadd.f32 %v2163_v6, %v2970_v47  ;;  %1584 = vst.msk [vmem:[%s2977_s17 + $0x38] sm:$0xff] %vm744_vm3, %v1567_v58 }
 0x1ea   : > { %v1655_v54 = vsel %vm744_vm3, %v1636_v49, 0.0  ;;  %1591 = vst.msk [vmem:[%s2977_s17 + $0x70] sm:$0xff] %vm744_vm3, %v3030_v45  ;;  %v1575_v25 = vadd.f32 %v2970_v47, %v1555_v55  ;;  %v1553_v2 = vadd.f32 %v1528_v42, %v2967_v41  ;;  %v1638_v60 = vmul.f32 %v1566_v40, %v1566_v40 }
 0x1eb   : > { %v1656_v56 = vadd.f32 %v1655_v54, %v1654_v62  ;;  %1589 = vst.msk [vmem:[%s2977_s17 + $0x60] sm:$0xff] %vm744_vm3, %v1572_v16  ;;  %1582 = vst.msk [vmem:[%s2977_s17 + $0x28] sm:$0xff] %vm744_vm3, %v1565_v61  ;;  %v1602_v48 = vsel %vm744_vm3, %v1565_v61, 0.0  ;;  %v1637_v36 = vmul.f32 %v1565_v61, %v1565_v61  ;;  %v1604_v3 = vsel %vm744_vm3, %v1566_v40, 0.0 }
 0x1ec   : > { %1592 = vst.msk [vmem:[%s2977_s17 + $0x78] sm:$0xff] %vm744_vm3, %v1575_v25  ;;  %v1603_v0 = vadd.f32 %v1602_v48, %v1601_v5  ;;  %v1639_v7 = vmul.f32 %v1567_v58, %v1567_v58  ;;  %v1573_v41 = vadd.f32 %v2970_v47, %v1553_v2  ;;  %v1659_v63 = vsel %vm744_vm3, %v1638_v60, 0.0 }
 0x1ed   : > { %v1657_v9 = vsel %vm744_vm3, %v1637_v36, 0.0  ;;  %v1606_v12 = vsel %vm744_vm3, %v1567_v58, 0.0  ;;  %v1608_v32 = vsel %vm744_vm3, %v2993_v11, 0.0  ;;  %v1641_v43 = vmul.f32 %v1569_v31, %v1569_v31 }
 0x1ee   : > { %v1605_v24 = vadd.f32 %v1604_v3, %v1603_v0  ;;  %v1658_v10 = vadd.f32 %v1657_v9, %v1656_v56  ;;  %1590 = vst.msk [vmem:[%s2977_s17 + $0x68] sm:$0xff] %vm744_vm3, %v1573_v41  ;;  %v1661_v19 = vsel %vm744_vm3, %v1639_v7, 0.0  ;;  %v1642_v1 = vmul.f32 %v2987_v59, %v2987_v59 }
 0x1ef   : > { %v1663_v22 = vsel %vm744_vm3, %v1640_v17, 0.0  ;;  %v1610_v44 = vsel %vm744_vm3, %v1569_v31, 0.0  ;;  %v1612_v34 = vsel %vm744_vm3, %v2987_v59, 0.0  ;;  %v1643_v11 = vmul.f32 %v3012_v33, %v3012_v33 }
 0x1f0   : > { %v1607_v4 = vadd.f32 %v1606_v12, %v1605_v24  ;;  %v1660_v21 = vadd.f32 %v1659_v63, %v1658_v10  ;;  %v1665_v14 = vsel %vm744_vm3, %v1641_v43, 0.0  ;;  %v1667_v28 = vsel %vm744_vm3, %v1642_v1, 0.0 }
 0x1f1   : > { %v1614_v29 = vsel %vm744_vm3, %v3012_v33, 0.0  ;;  %v1644_v27 = vmul.f32 %v1572_v16, %v1572_v16  ;;  %v1669_v35 = vsel %vm744_vm3, %v1643_v11, 0.0  ;;  %v1616_v37 = vsel %vm744_vm3, %v1572_v16, 0.0 }
 0x1f2   : > { %v1609_v47 = vadd.f32 %v1608_v32, %v1607_v4  ;;  %v1662_v20 = vadd.f32 %v1661_v19, %v1660_v21  ;;  %v1645_v59 = vmul.f32 %v1573_v41, %v1573_v41  ;;  %v1646_v57 = vmul.f32 %v3030_v45, %v3030_v45 }
 0x1f3   : > { %v1671_v18 = vsel %vm744_vm3, %v1644_v27, 0.0  ;;  %v1618_v46 = vsel %vm744_vm3, %v1573_v41, 0.0  ;;  %v1620_v33 = vsel %vm744_vm3, %v3030_v45, 0.0  ;;  %v1647_v50 = vmul.f32 %v1575_v25, %v1575_v25 }
 0x1f4   : > { %v1664_v13 = vadd.f32 %v1663_v22, %v1662_v20  ;;  %v1611_v53 = vadd.f32 %v1610_v44, %v1609_v47  ;;  %v1673_v51 = vsel %vm744_vm3, %v1645_v59, 0.0  ;;  %v1675_v49 = vsel %vm744_vm3, %v1646_v57, 0.0 }
 0x1f5   : > { %v1622_v62 = vsel %vm744_vm3, %v1575_v25, 0.0  ;;  %v1677_v8 = vsel %vm744_vm3, %v1647_v50, 0.0 }
 0x1f6   : > { %v1613_v26 = vadd.f32 %v1612_v34, %v1611_v53  ;;  %v1666_v15 = vadd.f32 %v1665_v14, %v1664_v13 }
 0x1f8   : > { %v1615_v30 = vadd.f32 %v1614_v29, %v1613_v26  ;;  %v1668_v31 = vadd.f32 %v1667_v28, %v1666_v15 }
 0x1fa   : > { %v1617_v38 = vadd.f32 %v1616_v37, %v1615_v30  ;;  %v1670_v40 = vadd.f32 %v1669_v35, %v1668_v31 }
 0x1fc   : > { %v1619_v39 = vadd.f32 %v1618_v46, %v1617_v38  ;;  %v1672_v42 = vadd.f32 %v1671_v18, %v1670_v40 }
 0x1fe   : > { %v1621_v23 = vadd.f32 %v1620_v33, %v1619_v39  ;;  %v1674_v5 = vadd.f32 %v1673_v51, %v1672_v42 }
 0x200   : > { %v1623_v52 = vadd.f32 %v1622_v62, %v1621_v23  ;;  %v1676_v54 = vadd.f32 %v1675_v49, %v1674_v5 }
 0x202   : > { %v1624_v6 = vrot.slane %v1623_v52, 4  ;;  %v1678_v55 = vadd.f32 %v1677_v8, %v1676_v54 }
 0x204   : > { %v1625_v56 = vadd.f32 %v1624_v6, %v1623_v52  ;;  %v1679_v58 = vrot.slane %v1678_v55, 4 }
 0x206   : > { %v1626_v16 = vrot.slane %v1625_v56, 2  ;;  %v1680_v45 = vadd.f32 %v1679_v58, %v1678_v55 }
 0x208   : > { %v1627_v61 = vadd.f32 %v1626_v16, %v1625_v56  ;;  %v1681_v2 = vrot.slane %v1680_v45, 2 }
 0x20a   : > { %v1628_v60 = vrot.slane %v1627_v61, 1  ;;  %v1682_v48 = vadd.f32 %v1681_v2, %v1680_v45 }
 0x20c   : > { %v1629_v25 = vadd.f32 %v1628_v60, %v1627_v61  ;;  %v1683_v36 = vrot.slane %v1682_v48, 1 }
 0x20e   : > { %1631 = vst.msk [vmem:[%s457_s29] sm:$0x1] %vm771_vm6, %v1629_v25  ;;  %v1684_v0 = vadd.f32 %v1683_v36, %v1682_v48 }
 0x210   : > { %1685 = vst.msk [vmem:[%s457_s29 + $0x1] sm:$0x1] %vm771_vm6, %v1684_v0 }
 0x211 PF: > { %s17_s25 = sadd.s32 1, %s2366_s25   ;;  %s3129_s21 = smov %s2358_s23 }
 0x212   : > { %p14_p12 = scmp.ge.s32.totalorder %s17_s25, 6   ;;  %s3130_s22 = smov %s2362_s24 }
 0x213   : > { %s3131_s23 = smov %s3134_s26  ;;  %s3132_s24 = smov %s3138_s27 }
 0x214   :  { %16 = sbr.rel (!%p14_p12) target bundleno = 3 (0x3), region = 96 }

</bundles_post_ra>
